<compile_context>
chip_gen: v6e
topology: v6e:2x2x1
jax: 0.10.0
libtpu: 0.0.40
codegen_flags: <defaults>
</compile_context>

<pallas_src>
import jax
import jax.numpy as jnp
from jax.experimental import pallas as pl
from jax.experimental.pallas import tpu as pltpu


# For output row-phase a (or col-phase b) and low-res offset u (or v) in {0,1}:
# which original 3x3 taps ky (or kx) in {0,1,2} collapse onto that offset.
#   phase 0: offset 0 <- {0},    offset 1 <- {1,2}
#   phase 1: offset 0 <- {0,1},  offset 1 <- {2}
_PHASE_TAPS = {0: ((0,), (1, 2)), 1: ((0, 1), (2,))}


def up_conv_kernel(x_ref, w_ref, shift_ref, out_ref, xpad_ref, cols_ref):
    """Fused nearest-2x upsample + Conv3x3(pad=1) + BN(eval) + ReLU, one image.

    x_ref    : (1, H, W, Cin)      bf16 low-res NHWC input (un-padded)
    w_ref    : (4*Cout, 9*Cin)     bf16 effective phase/offset weights,
                                   BN scale folded in, unused offsets zero
    shift_ref: (4*Cout, 1)         f32 folded conv-bias + BN shift (tiled x4)
    out_ref  : (1, 4*Cout, H*W)    out[0, (a*2+b)*Cout+c, i*W+j] = y[c,2i+a,2j+b]
    xpad_ref : (H+2, W+2, Cin)     bf16 VMEM scratch (zero halo)
    cols_ref : (H*W, 9*Cin)        bf16 VMEM scratch (shared im2col)
    """
    H, W, cin = x_ref.shape[1], x_ref.shape[2], x_ref.shape[3]

    # 1) Zero-halo pad in VMEM (replaces a wrapper-side jnp.pad HBM pass).
    xpad_ref[...] = jnp.zeros_like(xpad_ref)
    xpad_ref[1:H + 1, 1:W + 1, :] = x_ref[0]

    # 2) Build the 9-offset im2col ONCE; the 4 output phases each read a
    #    (zero-weighted) subset of these columns, so one matmul covers all.
    for dy in range(3):
        for dx in range(3):
            k = dy * 3 + dx
            cols_ref[:, k * cin:(k + 1) * cin] = (
                xpad_ref[dy:dy + H, dx:dx + W, :].reshape(H * W, cin))

    # 3) Single bf16 MXU contraction for all 4 phases and channels:
    #    (4*Cout, 9*Cin) x (H*W, 9*Cin)^T -> (4*Cout, H*W), spatial lane-dense.
    acc = jax.lax.dot_general(
        w_ref[...], cols_ref[...],
        dimension_numbers=(((1,), (1,)), ((), ())),
        preferred_element_type=jnp.float32)

    # 4) Folded conv-bias + BatchNorm(eval) shift, ReLU (BN scale is already in
    #    the weights), then 5) one unmasked, fully dense store of the tile.
    out_ref[0, :, :] = jnp.maximum(acc + shift_ref[...], 0.0).astype(out_ref.dtype)


def up_conv_forward(x_nchw, conv_w, conv_b, bn_gamma, bn_beta,
                    bn_mean, bn_var, eps=1e-5):
    """up_conv(bilinear=False) forward.

    x_nchw: (B, Cin, H, W) f32.  conv_w: (Cout, Cin, 3, 3) PyTorch OIHW.
    Returns (B, Cout, 2H, 2W) f32.
    """
    B, Cin, H, W = x_nchw.shape
    Cout = conv_w.shape[0]

    # Low-res NHWC activations in bf16 (single fused transpose+cast; the 1-px
    # halo is handled in-kernel, so there is no jnp.pad pass here).
    x_nhwc = jnp.transpose(x_nchw, (0, 2, 3, 1)).astype(jnp.bfloat16)

    # Fold eval-mode BatchNorm into per-channel scale/shift; the scale goes
    # into the effective weights, the shift is the only epilogue add.
    inv_std = jax.lax.rsqrt(bn_var.astype(jnp.float32) + eps)
    scale = bn_gamma.astype(jnp.float32) * inv_std                      # (Cout,)
    shift = (bn_beta.astype(jnp.float32)
             + (conv_b.astype(jnp.float32) - bn_mean.astype(jnp.float32)) * scale)
    shift_col = jnp.tile(shift.reshape(1, Cout), (4, 1)).reshape(4 * Cout, 1)

    # Effective weights.  Rows of w_all: (dy, dx, ci) over the 9 low-res
    # offsets; cols: (a, b, co) over the 4 output phases.  Offset (dy, dx) is
    # used by phase (a, b) iff dy-a and dx-b are in {0,1}; its value is the sum
    # of the original 3x3 taps that collapse onto it, times the BN scale.
    w_hwio = jnp.transpose(conv_w, (2, 3, 1, 0)).astype(jnp.float32)    # (3,3,Ci,Co)
    w_scaled = w_hwio * scale
    zero_blk = jnp.zeros((Cin, Cout), jnp.float32)
    phase_cols = []
    for a in (0, 1):
        for b in (0, 1):
            rows = []
            for dy in range(3):
                for dx in range(3):
                    u, v = dy - a, dx - b
                    if 0 <= u <= 1 and 0 <= v <= 1:
                        blk = sum(w_scaled[ky, kx]
                                  for ky in _PHASE_TAPS[a][u]
                                  for kx in _PHASE_TAPS[b][v])
                    else:
                        blk = zero_blk
                    rows.append(blk)
            phase_cols.append(jnp.concatenate(rows, axis=0))            # (9*Cin, Cout)
    w_all = jnp.concatenate(phase_cols, axis=1)                          # (9*Cin, 4*Cout)
    w_t = jnp.transpose(w_all).astype(jnp.bfloat16)                      # (4*Cout, 9*Cin)

    out = pl.pallas_call(
        up_conv_kernel,
        out_shape=jax.ShapeDtypeStruct((B, 4 * Cout, H * W), jnp.float32),
        grid=(B,),
        in_specs=[
            pl.BlockSpec((1, H, W, Cin), lambda i: (i, 0, 0, 0)),
            pl.BlockSpec((4 * Cout, 9 * Cin), lambda i: (0, 0)),
            pl.BlockSpec((4 * Cout, 1), lambda i: (0, 0)),
        ],
        out_specs=pl.BlockSpec((1, 4 * Cout, H * W), lambda i: (i, 0, 0)),
        scratch_shapes=[
            pltpu.VMEM((H + 2, W + 2, Cin), jnp.bfloat16),   # zero-halo image
            pltpu.VMEM((H * W, 9 * Cin), jnp.bfloat16),      # shared im2col
        ],
        compiler_params=pltpu.CompilerParams(
            dimension_semantics=("parallel",)),
        cost_estimate=pl.CostEstimate(
            flops=2 * B * (4 * Cout) * (H * W) * (9 * Cin),
            transcendentals=0,
            bytes_accessed=(2 * B * H * W * Cin + 2 * 4 * Cout * 9 * Cin
                            + 4 * 4 * Cout + 4 * B * 4 * Cout * H * W)),
    )(x_nhwc, w_t, shift_col)

    # (B, 4*Cout, H*W) -> (B, 2, 2, Cout, H, W) is a pure (free) reshape; one
    # small transpose interleaves the phases into the module's NCHW layout.
    out6 = out.reshape(B, 2, 2, Cout, H, W)
    y = jnp.transpose(out6, (0, 3, 4, 1, 5, 2))      # (B, Cout, H, 2, W, 2)
    return y.reshape(B, Cout, 2 * H, 2 * W)


def reference_forward(x_nchw, conv_w, conv_b, gamma, beta, mean, var, eps=1e-5):
    """Pure-JAX f32 reference: nearest 2x upsample -> conv3x3(pad=1) -> BN -> ReLU."""
    up = jnp.repeat(jnp.repeat(x_nchw, 2, axis=2), 2, axis=3)
    z = jax.lax.conv_general_dilated(
        up, conv_w, window_strides=(1, 1), padding=((1, 1), (1, 1)),
        dimension_numbers=("NCHW", "OIHW", "NCHW"),
        precision=jax.lax.Precision.HIGHEST)
    z = z + conv_b.reshape(1, -1, 1, 1)
    z = ((z - mean.reshape(1, -1, 1, 1))
         * (gamma.reshape(1, -1, 1, 1)
            * jax.lax.rsqrt(var.reshape(1, -1, 1, 1) + eps))
         + beta.reshape(1, -1, 1, 1))
    return jnp.maximum(z, 0.0)


if __name__ == "__main__":
    # Small shapes consistent with the module: in_ch=8 -> out_ch=4, 16x16 -> 32x32.
    B, Cin, Cout, H, W = 2, 8, 4, 16, 16

    key = jax.random.PRNGKey(0)
    kx, kw, kb, kg, kbe, km, kv = jax.random.split(key, 7)

    # Activations are snapped to the bf16 grid so the kernel's bf16 cast is
    # lossless; the (BN-scale-folded) weights are NOT bf16-exact, so we use a
    # documented bf16-MXU tolerance against the f32 reference below.
    x = jax.random.normal(kx, (B, Cin, H, W), jnp.float32)
    x = x.astype(jnp.bfloat16).astype(jnp.float32)
    conv_w = 0.1 * jax.random.normal(kw, (Cout, Cin, 3, 3), jnp.float32)
    conv_b = 0.1 * jax.random.normal(kb, (Cout,), jnp.float32)
    bn_gamma = 1.0 + 0.1 * jax.random.normal(kg, (Cout,), jnp.float32)
    bn_beta = 0.1 * jax.random.normal(kbe, (Cout,), jnp.float32)
    bn_mean = 0.1 * jax.random.normal(km, (Cout,), jnp.float32)
    bn_var = jnp.abs(jax.random.normal(kv, (Cout,), jnp.float32)) + 0.5

    out = up_conv_forward(x, conv_w, conv_b, bn_gamma, bn_beta, bn_mean, bn_var)
    out = jax.block_until_ready(out)

    ref = reference_forward(x, conv_w, conv_b, bn_gamma, bn_beta, bn_mean, bn_var)
    assert out.shape == (B, Cout, 2 * H, 2 * W)
    # bf16 operands on the MXU (weights carry the folded BN scale) vs. a pure
    # f32 reference: expected max abs deviation O(1e-3..1e-2) at these
    # magnitudes -> documented tolerance 5e-2.
    err = float(jnp.max(jnp.abs(out - ref)))
    assert jnp.allclose(out, ref, atol=5e-2, rtol=5e-2), err

    print("KERNEL_OK")
</pallas_src>

<mosaic_0001>
module attributes {stable_mosaic.version = 11 : i64} {
  func.func @up_conv_kernel(%arg0: i32, %arg1: memref<1x16x16x8xbf16, #tpu.memory_space<vmem>>, %arg2: memref<16x72xbf16, #tpu.memory_space<vmem>>, %arg3: memref<16x1xf32, #tpu.memory_space<vmem>>, %arg4: memref<1x16x256xf32, #tpu.memory_space<vmem>>, %arg5: memref<18x18x8xbf16, #tpu.memory_space<vmem>>, %arg6: memref<256x72xbf16, #tpu.memory_space<vmem>>) attributes {dimension_semantics = [#tpu.dimension_semantics<parallel>], iteration_bounds = array<i64: 2>, scalar_prefetch = 0 : i64, scratch_operands = 2 : i64, tpu.core_type = #tpu.core_type<tc>, window_params = [{transform_indices = @transform_0, window_bounds = array<i64: 1, 16, 16, 8>}, {pipeline_mode = #tpu.pipeline_mode<synchronous>, transform_indices = @transform_1, window_bounds = array<i64: 16, 72>}, {pipeline_mode = #tpu.pipeline_mode<synchronous>, transform_indices = @transform_2, window_bounds = array<i64: 16, 1>}, {transform_indices = @transform_3, window_bounds = array<i64: 1, 16, 256>}]} {
    %cst = arith.constant 0.000000e+00 : bf16
    %0 = vector.broadcast %cst : bf16 to vector<18x18x8xbf16>
    %c0 = arith.constant 0 : index
    %c0_0 = arith.constant 0 : index
    %c0_1 = arith.constant 0 : index
    %1 = vector.load %arg5[%c0, %c0_0, %c0_1] : memref<18x18x8xbf16, #tpu.memory_space<vmem>>, vector<18x18x8xbf16>
    tpu.vector_store %arg5[%c0, %c0_0, %c0_1], %0 {strides = array<i32>} : memref<18x18x8xbf16, #tpu.memory_space<vmem>>, vector<18x18x8xbf16>,
    %c0_2 = arith.constant 0 : index
    %c0_3 = arith.constant 0 : index
    %c0_4 = arith.constant 0 : index
    %c0_5 = arith.constant 0 : index
    %2 = vector.load %arg1[%c0_2, %c0_3, %c0_4, %c0_5] : memref<1x16x16x8xbf16, #tpu.memory_space<vmem>>, vector<1x16x16x8xbf16>
    %3 = vector.shape_cast %2 : vector<1x16x16x8xbf16> to vector<16x16x8xbf16>
    %c1 = arith.constant 1 : index
    %c1_6 = arith.constant 1 : index
    %c0_7 = arith.constant 0 : index
    %4 = vector.load %arg5[%c1, %c1_6, %c0_7] : memref<18x18x8xbf16, #tpu.memory_space<vmem>>, vector<16x16x8xbf16>
    tpu.vector_store %arg5[%c1, %c1_6, %c0_7], %3 {strides = array<i32>} : memref<18x18x8xbf16, #tpu.memory_space<vmem>>, vector<16x16x8xbf16>,
    %c0_8 = arith.constant 0 : index
    %c0_9 = arith.constant 0 : index
    %c0_10 = arith.constant 0 : index
    %5 = vector.load %arg5[%c0_8, %c0_9, %c0_10] : memref<18x18x8xbf16, #tpu.memory_space<vmem>>, vector<16x16x8xbf16>
    %6 = vector.shape_cast %5 : vector<16x16x8xbf16> to vector<256x8xbf16>
    %c0_11 = arith.constant 0 : index
    %c0_12 = arith.constant 0 : index
    %7 = vector.load %arg6[%c0_11, %c0_12] : memref<256x72xbf16, #tpu.memory_space<vmem>>, vector<256x8xbf16>
    tpu.vector_store %arg6[%c0_11, %c0_12], %6 {strides = array<i32>} : memref<256x72xbf16, #tpu.memory_space<vmem>>, vector<256x8xbf16>,
    %c0_13 = arith.constant 0 : index
    %c1_14 = arith.constant 1 : index
    %c0_15 = arith.constant 0 : index
    %8 = vector.load %arg5[%c0_13, %c1_14, %c0_15] : memref<18x18x8xbf16, #tpu.memory_space<vmem>>, vector<16x16x8xbf16>
    %9 = vector.shape_cast %8 : vector<16x16x8xbf16> to vector<256x8xbf16>
    %c0_16 = arith.constant 0 : index
    %c8 = arith.constant 8 : index
    %10 = vector.load %arg6[%c0_16, %c8] : memref<256x72xbf16, #tpu.memory_space<vmem>>, vector<256x8xbf16>
    tpu.vector_store %arg6[%c0_16, %c8], %9 {strides = array<i32>} : memref<256x72xbf16, #tpu.memory_space<vmem>>, vector<256x8xbf16>,
    %c0_17 = arith.constant 0 : index
    %c2 = arith.constant 2 : index
    %c0_18 = arith.constant 0 : index
    %11 = vector.load %arg5[%c0_17, %c2, %c0_18] : memref<18x18x8xbf16, #tpu.memory_space<vmem>>, vector<16x16x8xbf16>
    %12 = vector.shape_cast %11 : vector<16x16x8xbf16> to vector<256x8xbf16>
    %c0_19 = arith.constant 0 : index
    %c16 = arith.constant 16 : index
    %13 = vector.load %arg6[%c0_19, %c16] : memref<256x72xbf16, #tpu.memory_space<vmem>>, vector<256x8xbf16>
    tpu.vector_store %arg6[%c0_19, %c16], %12 {strides = array<i32>} : memref<256x72xbf16, #tpu.memory_space<vmem>>, vector<256x8xbf16>,
    %c1_20 = arith.constant 1 : index
    %c0_21 = arith.constant 0 : index
    %c0_22 = arith.constant 0 : index
    %14 = vector.load %arg5[%c1_20, %c0_21, %c0_22] : memref<18x18x8xbf16, #tpu.memory_space<vmem>>, vector<16x16x8xbf16>
    %15 = vector.shape_cast %14 : vector<16x16x8xbf16> to vector<256x8xbf16>
    %c0_23 = arith.constant 0 : index
    %c24 = arith.constant 24 : index
    %16 = vector.load %arg6[%c0_23, %c24] : memref<256x72xbf16, #tpu.memory_space<vmem>>, vector<256x8xbf16>
    tpu.vector_store %arg6[%c0_23, %c24], %15 {strides = array<i32>} : memref<256x72xbf16, #tpu.memory_space<vmem>>, vector<256x8xbf16>,
    %c1_24 = arith.constant 1 : index
    %c1_25 = arith.constant 1 : index
    %c0_26 = arith.constant 0 : index
    %17 = vector.load %arg5[%c1_24, %c1_25, %c0_26] : memref<18x18x8xbf16, #tpu.memory_space<vmem>>, vector<16x16x8xbf16>
    %18 = vector.shape_cast %17 : vector<16x16x8xbf16> to vector<256x8xbf16>
    %c0_27 = arith.constant 0 : index
    %c32 = arith.constant 32 : index
    %19 = vector.load %arg6[%c0_27, %c32] : memref<256x72xbf16, #tpu.memory_space<vmem>>, vector<256x8xbf16>
    tpu.vector_store %arg6[%c0_27, %c32], %18 {strides = array<i32>} : memref<256x72xbf16, #tpu.memory_space<vmem>>, vector<256x8xbf16>,
    %c1_28 = arith.constant 1 : index
    %c2_29 = arith.constant 2 : index
    %c0_30 = arith.constant 0 : index
    %20 = vector.load %arg5[%c1_28, %c2_29, %c0_30] : memref<18x18x8xbf16, #tpu.memory_space<vmem>>, vector<16x16x8xbf16>
    %21 = vector.shape_cast %20 : vector<16x16x8xbf16> to vector<256x8xbf16>
    %c0_31 = arith.constant 0 : index
    %c40 = arith.constant 40 : index
    %22 = vector.load %arg6[%c0_31, %c40] : memref<256x72xbf16, #tpu.memory_space<vmem>>, vector<256x8xbf16>
    tpu.vector_store %arg6[%c0_31, %c40], %21 {strides = array<i32>} : memref<256x72xbf16, #tpu.memory_space<vmem>>, vector<256x8xbf16>,
    %c2_32 = arith.constant 2 : index
    %c0_33 = arith.constant 0 : index
    %c0_34 = arith.constant 0 : index
    %23 = vector.load %arg5[%c2_32, %c0_33, %c0_34] : memref<18x18x8xbf16, #tpu.memory_space<vmem>>, vector<16x16x8xbf16>
    %24 = vector.shape_cast %23 : vector<16x16x8xbf16> to vector<256x8xbf16>
    %c0_35 = arith.constant 0 : index
    %c48 = arith.constant 48 : index
    %25 = vector.load %arg6[%c0_35, %c48] : memref<256x72xbf16, #tpu.memory_space<vmem>>, vector<256x8xbf16>
    tpu.vector_store %arg6[%c0_35, %c48], %24 {strides = array<i32>} : memref<256x72xbf16, #tpu.memory_space<vmem>>, vector<256x8xbf16>,
    %c2_36 = arith.constant 2 : index
    %c1_37 = arith.constant 1 : index
    %c0_38 = arith.constant 0 : index
    %26 = vector.load %arg5[%c2_36, %c1_37, %c0_38] : memref<18x18x8xbf16, #tpu.memory_space<vmem>>, vector<16x16x8xbf16>
    %27 = vector.shape_cast %26 : vector<16x16x8xbf16> to vector<256x8xbf16>
    %c0_39 = arith.constant 0 : index
    %c56 = arith.constant 56 : index
    %28 = vector.load %arg6[%c0_39, %c56] : memref<256x72xbf16, #tpu.memory_space<vmem>>, vector<256x8xbf16>
    tpu.vector_store %arg6[%c0_39, %c56], %27 {strides = array<i32>} : memref<256x72xbf16, #tpu.memory_space<vmem>>, vector<256x8xbf16>,
    %c2_40 = arith.constant 2 : index
    %c2_41 = arith.constant 2 : index
    %c0_42 = arith.constant 0 : index
    %29 = vector.load %arg5[%c2_40, %c2_41, %c0_42] : memref<18x18x8xbf16, #tpu.memory_space<vmem>>, vector<16x16x8xbf16>
    %30 = vector.shape_cast %29 : vector<16x16x8xbf16> to vector<256x8xbf16>
    %c0_43 = arith.constant 0 : index
    %c64 = arith.constant 64 : index
    %31 = vector.load %arg6[%c0_43, %c64] : memref<256x72xbf16, #tpu.memory_space<vmem>>, vector<256x8xbf16>
    tpu.vector_store %arg6[%c0_43, %c64], %30 {strides = array<i32>} : memref<256x72xbf16, #tpu.memory_space<vmem>>, vector<256x8xbf16>,
    %c0_44 = arith.constant 0 : index
    %c0_45 = arith.constant 0 : index
    %32 = vector.load %arg2[%c0_44, %c0_45] : memref<16x72xbf16, #tpu.memory_space<vmem>>, vector<16x72xbf16>
    %c0_46 = arith.constant 0 : index
    %c0_47 = arith.constant 0 : index
    %33 = vector.load %arg6[%c0_46, %c0_47] : memref<256x72xbf16, #tpu.memory_space<vmem>>, vector<256x72xbf16>
    %cst_48 = arith.constant dense<0.000000e+00> : vector<16x256xf32>
    %34 = tpu.matmul %32, %33, %cst_48 {dimension_numbers = #tpu.dot_dimension_numbers<[1], [1], [0], [0], [0, 0, 1, 0], [], []>} : vector<16x72xbf16>, vector<256x72xbf16>, vector<16x256xf32> -> vector<16x256xf32>
    %c0_49 = arith.constant 0 : index
    %c0_50 = arith.constant 0 : index
    %35 = vector.load %arg3[%c0_49, %c0_50] : memref<16x1xf32, #tpu.memory_space<vmem>>, vector<16x1xf32>
    %36 = vector.broadcast %35 : vector<16x1xf32> to vector<16x256xf32>
    %37 = arith.addf %34, %36 : vector<16x256xf32>
    %cst_51 = arith.constant 0.000000e+00 : f32
    %38 = vector.broadcast %cst_51 : f32 to vector<16x256xf32>
    %39 = arith.maximumf %37, %38 : vector<16x256xf32>
    %c0_52 = arith.constant 0 : index
    %c0_53 = arith.constant 0 : index
    %c0_54 = arith.constant 0 : index
    %40 = vector.load %arg4[%c0_52, %c0_53, %c0_54] : memref<1x16x256xf32, #tpu.memory_space<vmem>>, vector<1x16x256xf32>
    %41 = vector.shape_cast %40 : vector<1x16x256xf32> to vector<16x256xf32>
    %42 = vector.shape_cast %39 : vector<16x256xf32> to vector<1x16x256xf32>
    tpu.vector_store %arg4[%c0_52, %c0_53, %c0_54], %42 {strides = array<i32>} : memref<1x16x256xf32, #tpu.memory_space<vmem>>, vector<1x16x256xf32>,
    return
  }
  func.func @transform_0(%arg0: i32) -> (i32, i32, i32, i32) {
    %c0_i32 = arith.constant 0 : i32
    %c0_i32_0 = arith.constant 0 : i32
    %c0_i32_1 = arith.constant 0 : i32
    %c0_i32_2 = arith.constant 0 : i32
    return %arg0, %c0_i32, %c0_i32_0, %c0_i32_1 : i32, i32, i32, i32
  }
  func.func @transform_1(%arg0: i32) -> (i32, i32) {
    %c0_i32 = arith.constant 0 : i32
    %c0_i32_0 = arith.constant 0 : i32
    %c0_i32_1 = arith.constant 0 : i32
    return %c0_i32, %c0_i32_0 : i32, i32
  }
  func.func @transform_2(%arg0: i32) -> (i32, i32) {
    %c0_i32 = arith.constant 0 : i32
    %c0_i32_0 = arith.constant 0 : i32
    %c0_i32_1 = arith.constant 0 : i32
    return %c0_i32, %c0_i32_0 : i32, i32
  }
  func.func @transform_3(%arg0: i32) -> (i32, i32, i32) {
    %c0_i32 = arith.constant 0 : i32
    %c0_i32_0 = arith.constant 0 : i32
    %c0_i32_1 = arith.constant 0 : i32
    return %arg0, %c0_i32, %c0_i32_0 : i32, i32, i32
  }
}

</mosaic_0001>

<bundles_post_ra>
// kernel: tpu_custom_call.1
= control target key start
LH: loop header
LB: loop body
LE: loop exit
PB: predicated region body
PF: predicated region fallthrough
CT: control target
= control target key end

     0   :  { %8 = vsyncpa [#allocation5], 0  ;;  %s5791_s0 = inlined_call_operand.vmem [shape: bf16[2,16,16,8], index: 0, kind: input, shape index: {}]   ;;  %s5792_s1 = inlined_call_operand.vmem [shape: bf16[16,72], index: 1, kind: input, shape index: {}]   ;;  %s5793_s2 = inlined_call_operand.vmem [shape: f32[16,1], index: 2, kind: input, shape index: {}]   ;;  %s5794_s3 = inlined_call_operand.hbm [shape: f32[2,16,256], index: 3, kind: output, shape index: {}]  }
   0x1   :  { %10 = vsyncpa [#allocation5 + $0x1], 0  ;;  %s4427_s12 = smov 0   ;;  %s4429_s13 = smov 0  }
   0x2   :  { %s4431_s14 = smov 0   ;;  %s4433_s15 = smov 0  }
   0x3 LB: > { %s4448_s16 = sadd.s32 4294967295, %s4394_s15   ;;  %s4160_s17 = sadd.s32 4294967294, %s4394_s15   ;;  %s4394_s15 = sphi %s4433_s15, %s5810_s15   ;;  %s4390_s14 = sphi %s4431_s14, %s5809_s14   ;;  %s4386_s13 = sphi %s4429_s13, %s5808_s13   ;;  %s4382_s12 = sphi %s4427_s12, %s5807_s12  }
   0x4   : > { %s4452_s18 = sadd.s32 1, %s4394_s15   ;;  %s91_s19 = sadd.s32 1, %s4390_s14 }
   0x5   : > { %s88_s20 = ssub.s32 %s4394_s15, %s4452_s18  ;;  %p101_p0 = scmp.ne.s32.totalorder %s4390_s14, %s4386_s13 }
   0x6   : > { %p89_p1 = scmp.eq.s32.totalorder %s88_s20, 0  ;;  %p102_p2 = scmp.eq.s32.totalorder %s4448_s16, 1 }
   0x7   : > { %p107_p3 = scmp.ne.s32.totalorder %s4386_s13, %s4382_s12  ;;  %p108_p4 = scmp.eq.s32.totalorder %s4160_s17, 1 }
   0x8   : > { %s4463_s21 = scalar_select %p89_p1, %s4390_s14, %s91_s19  }
   0x9   : > { %p4465_p5 = por %p102_p2, %p101_p0  ;;  %p4469_p6 = por %p108_p4, %p107_p3 }
   0xa   : > { %p4163_p7 = scmp.ge.s32.totalorder %s4394_s15, 1  ;;  %p140_p8 = scmp.lt.s32.totalorder %s4394_s15, 3 }
   0xc   : > { %p141_p9 = pnand %p4163_p7, %p140_p8 }
   0xd   : > { %p164_p10 = scmp.lt.s32.totalorder (!%p141_p9), %s4448_s16, 1  ;;  %s4397_s29 = smov (!%p141_p9), 8  }
   0xe   : > { %144 = sbr.rel (%p141_p9) target bundleno = 960 (0x3c0), region = 32  ;;  %s4398_s30 = smov (!%p141_p9), 16  }
   0xf   : > { %s4399_s4 = smov (!%p141_p9), 24   ;;  %s4400_s5 = smov (!%p141_p9), 32  }
  0x10   : > { %s4401_s6 = smov (!%p141_p9), 40   ;;  %s4402_s7 = smov (!%p141_p9), 48  }
  0x11   : > { %s4403_s8 = smov (!%p141_p9), 56   ;;  %s4404_s9 = smov (!%p141_p9), 64  }
  0x13   : > { %vm170_vm0 = vcmask 60416   ;;  %v4396_v0 = vmov 0   ;;  %vm173_vm1 = vcmask 57344   ;;  %s165_s24 = scalar_select %p164_p10, %s4448_s16, 1  ;;  %vm811_vm2 = vsmask.f32 3328 }
  0x14   : > { %171 = vst.msk [vmem:[#allocation2] sm:$0xf] %vm170_vm0, %v4396_v0  ;;  %172 = vst.msk [vmem:[#allocation2 + $0x4] sm:$0xf] %vm170_vm0, %v4396_v0  ;;  %4315 = vset.pattern.permute.xlu0 %v4396_v0  ;;  %4316 = vset.pattern.permute.xlu1 %v4396_v0  ;;  %vm812_vm3 = vsmask.f32 7440 }
  0x15   : > { %175 = vst.msk [vmem:[#allocation2 + $0xc] sm:$0xf] %vm170_vm0, %v4396_v0  ;;  %176 = vst.msk [vmem:[#allocation2 + $0x10] sm:$0xf] %vm170_vm0, %v4396_v0  ;;  %s4238_s25 = sshll.u32 %s165_s24, 7  ;;  %vm1423_vm11 = vcmask 1042432  }
  0x16   : > { %178 = vst.msk [vmem:[#allocation2 + $0x18] sm:$0xf] %vm170_vm0, %v4396_v0  ;;  %179 = vst.msk [vmem:[#allocation2 + $0x1c] sm:$0xf] %vm170_vm0, %v4396_v0  ;;  %s4534_s28 = scalar_lea.vmem %s5791_s0, %s4238_s25  ;;  %vm258_vm4 = vsmask.f32 256 }
  0x17   : > { %181 = vst.msk [vmem:[#allocation2 + $0x24] sm:$0xf] %vm170_vm0, %v4396_v0  ;;  %182 = vst.msk [vmem:[#allocation2 + $0x28] sm:$0xf] %vm170_vm0, %v4396_v0  ;;  %vm259_vm5 = vsmask.f32 4368 }
  0x18   : > { %184 = vst.msk [vmem:[#allocation2 + $0x30] sm:$0xf] %vm170_vm0, %v4396_v0  ;;  %185 = vst.msk [vmem:[#allocation2 + $0x34] sm:$0xf] %vm170_vm0, %v4396_v0  ;;  %vm583_vm6 = vsmask.f32 7938 }
  0x19   : > { %187 = vst.msk [vmem:[#allocation2 + $0x3c] sm:$0xf] %vm170_vm0, %v4396_v0  ;;  %188 = vst.msk [vmem:[#allocation2 + $0x40] sm:$0xf] %vm170_vm0, %v4396_v0  ;;  %v226_v1 = vld [vmem:[%s4534_s28] sm:$0xf] }
  0x1a   : > { %190 = vst.msk [vmem:[#allocation2 + $0x48] sm:$0xf] %vm170_vm0, %v4396_v0  ;;  %191 = vst.msk [vmem:[#allocation2 + $0x4c] sm:$0xf] %vm170_vm0, %v4396_v0  ;;  %v227_v2 = vld [vmem:[%s4534_s28 + $0x4] sm:$0xf] }
  0x1b   : > { %193 = vst.msk [vmem:[#allocation2 + $0x54] sm:$0xf] %vm170_vm0, %v4396_v0  ;;  %194 = vst.msk [vmem:[#allocation2 + $0x58] sm:$0xf] %vm170_vm0, %v4396_v0  ;;  %v228_v3 = vld [vmem:[%s4534_s28 + $0x8] sm:$0xf] }
  0x1c   : > { %196 = vst.msk [vmem:[#allocation2 + $0x60] sm:$0xf] %vm170_vm0, %v4396_v0  ;;  %197 = vst.msk [vmem:[#allocation2 + $0x64] sm:$0xf] %vm170_vm0, %v4396_v0  ;;  %v763_v4 = vld [vmem:[#allocation2] sm:$0xf] }
  0x1d   : > { %199 = vst.msk [vmem:[#allocation2 + $0x6c] sm:$0xf] %vm170_vm0, %v4396_v0  ;;  %200 = vst.msk [vmem:[#allocation2 + $0x70] sm:$0xf] %vm170_vm0, %v4396_v0  ;;  %v764_v5 = vld [vmem:[#allocation2 + $0x4] sm:$0xf] }
  0x1e   : > { %202 = vst.msk [vmem:[#allocation2 + $0x78] sm:$0xf] %vm170_vm0, %v4396_v0  ;;  %203 = vst.msk [vmem:[#allocation2 + $0x7c] sm:$0xf] %vm170_vm0, %v4396_v0  ;;  %v262_v6 = vshrl.u32 %v226_v1, 16  ;;  %v265_v7 = vshll.u32 %v226_v1, 16 }
  0x1f   : > { %205 = vst.msk [vmem:[#allocation2 + $0x84] sm:$0xf] %vm170_vm0, %v4396_v0  ;;  %206 = vst.msk [vmem:[#allocation2 + $0x88] sm:$0xf] %vm170_vm0, %v4396_v0  ;;  %v815_v8 = vshrl.u32 %v763_v4, 16  ;;  %v818_v9 = vshll.u32 %v763_v4, 16 }
  0x20   : > { %208 = vst.msk [vmem:[#allocation2 + $0x90] sm:$0xf] %vm170_vm0, %v4396_v0  ;;  %209 = vst.msk [vmem:[#allocation2 + $0x94] sm:$0xf] %vm170_vm0, %v4396_v0  ;;  %v824_v10 = vshll.u32 %v764_v5, 16  ;;  %v828_v11 = vshrl.u32 %v764_v5, 16 }
  0x21   : > { %211 = vst.msk [vmem:[#allocation2 + $0x9c] sm:$0xf] %vm170_vm0, %v4396_v0  ;;  %212 = vst.msk [vmem:[#allocation2 + $0xa0] sm:$0xf] %vm170_vm0, %v4396_v0  ;;  %v264_v12 = vrot.slane %v262_v6, 7  ;;  %v270_v13 = vshrl.u32 %v227_v2, 16 }
  0x22   : > { %214 = vst.msk [vmem:[#allocation2 + $0xa8] sm:$0xf] %vm170_vm0, %v4396_v0  ;;  %215 = vst.msk [vmem:[#allocation2 + $0xac] sm:$0xf] %vm170_vm0, %v4396_v0  ;;  %v273_v14 = vshll.u32 %v227_v2, 16  ;;  %v279_v16 = vshrl.u32 %v228_v3, 16 }
  0x23   : > { %217 = vst.msk [vmem:[#allocation2 + $0xb4] sm:$0xf] %vm170_vm0, %v4396_v0  ;;  %218 = vst.msk [vmem:[#allocation2 + $0xb8] sm:$0xf] %vm170_vm0, %v4396_v0  ;;  %v817_v17 = vrot.slane %v815_v8, 4  ;;  %v820_v18 = vrot.slane %v818_v9, 5  ;;  %v267_v24 = vor.u32 %v265_v7, %v264_v12 }
  0x24   : > { %220 = vst.msk [vmem:[#allocation2 + $0xc0] sm:$0xf] %vm170_vm0, %v4396_v0  ;;  %221 = vst.msk [vmem:[#allocation2 + $0xc4] sm:$0xf] %vm170_vm0, %v4396_v0  ;;  %v826_v19 = vrot.slane %v824_v10, 5  ;;  %v830_v20 = vrot.slane %v828_v11, 4 }
  0x25   : > { %223 = vst.msk [vmem:[#allocation2 + $0xcc] sm:$0xf] %vm170_vm0, %v4396_v0  ;;  %224 = vst.msk [vmem:[#allocation2 + $0xd0] sm:$0xf] %vm170_vm0, %v4396_v0  ;;  %v585_v22 = vld [vmem:[#allocation2 + $0xc] sm:$0xf]  ;;  %v821_v28 = vor.u32 %v820_v18, %v817_v17 }
  0x26   : > { %174 = vst.msk [vmem:[#allocation2 + $0x8] sm:$0x1] %vm173_vm1, %v4396_v0  ;;  %177 = vst.msk [vmem:[#allocation2 + $0x14] sm:$0x1] %vm173_vm1, %v4396_v0  ;;  %v268_v25 = vrot.slane %v264_v12, 4  ;;  %v272_v26 = vrot.slane %v270_v13, 7  ;;  %v831_v29 = vor.u32 %v830_v20, %v826_v19 }
  0x27   : > { %180 = vst.msk [vmem:[#allocation2 + $0x20] sm:$0x1] %vm173_vm1, %v4396_v0  ;;  %183 = vst.msk [vmem:[#allocation2 + $0x2c] sm:$0x1] %vm173_vm1, %v4396_v0  ;;  %v229_v32 = vld [vmem:[%s4534_s28 + $0xc] sm:$0xf] }
  0x28   : > { %186 = vst.msk [vmem:[#allocation2 + $0x38] sm:$0x1] %vm173_vm1, %v4396_v0  ;;  %189 = vst.msk [vmem:[#allocation2 + $0x44] sm:$0x1] %vm173_vm1, %v4396_v0  ;;  %v281_v33 = vrot.slane %v279_v16, 7  ;;  %v282_v34 = vshll.u32 %v228_v3, 16  ;;  %v275_v36 = vor.u32 %v273_v14, %v272_v26 }
  0x29   : > { %192 = vst.msk [vmem:[#allocation2 + $0x50] sm:$0x1] %vm173_vm1, %v4396_v0  ;;  %195 = vst.msk [vmem:[#allocation2 + $0x5c] sm:$0x1] %vm173_vm1, %v4396_v0  ;;  %v277_v39 = vrot.slane %v272_v26, 4  ;;  %v822_v42 = vrot.slane %v821_v28, 4 }
  0x2a   : > { %198 = vst.msk [vmem:[#allocation2 + $0x68] sm:$0x1] %vm173_vm1, %v4396_v0  ;;  %201 = vst.msk [vmem:[#allocation2 + $0x74] sm:$0x1] %vm173_vm1, %v4396_v0  ;;  %v594_v40 = vld [vmem:[#allocation2 + $0x18] sm:$0xf]  ;;  %v284_v44 = vor.u32 %v282_v34, %v281_v33 }
  0x2b   : > { %204 = vst.msk [vmem:[#allocation2 + $0x80] sm:$0x1] %vm173_vm1, %v4396_v0  ;;  %207 = vst.msk [vmem:[#allocation2 + $0x8c] sm:$0x1] %vm173_vm1, %v4396_v0  ;;  %v230_v41 = vld [vmem:[%s4534_s28 + $0x10] sm:$0xf] }
  0x2c   : > { %210 = vst.msk [vmem:[#allocation2 + $0x98] sm:$0x1] %vm173_vm1, %v4396_v0  ;;  %213 = vst.msk [vmem:[#allocation2 + $0xa4] sm:$0x1] %vm173_vm1, %v4396_v0  ;;  %v832_v43 = vrot.slane %v831_v29, 4  ;;  %v285_v45 = vrot.slane %v281_v33, 4 }
  0x2d   : > { %216 = vst.msk [vmem:[#allocation2 + $0xb0] sm:$0x1] %vm173_vm1, %v4396_v0  ;;  %219 = vst.msk [vmem:[#allocation2 + $0xbc] sm:$0x1] %vm173_vm1, %v4396_v0  ;;  %v765_v15 = vld [vmem:[#allocation2 + $0x8] sm:$0x1] }
  0x2e   : > { %222 = vst.msk [vmem:[#allocation2 + $0xc8] sm:$0x1] %vm173_vm1, %v4396_v0  ;;  %225 = vst.msk [vmem:[#allocation2 + $0xd4] sm:$0x1] %vm173_vm1, %v4396_v0  ;;  %v834_v27 = vshll.u32 %v765_v15, 16  ;;  %v287_v49 = vshrl.u32 %v229_v32, 16 }
  0x2f   : > { %vm4541_vm7 = vmand %vm170_vm0, %vm583_vm6  ;;  %v591_v31 = vld [vmem:[#allocation2 + $0x14] sm:$0x1]  ;;  %v290_v50 = vshll.u32 %v229_v32, 16  ;;  %v232_v51 = vld [vmem:[%s4534_s28 + $0x18] sm:$0xf]  ;;  %v296_v55 = vshrl.u32 %v230_v41, 16 }
  0x30   : > { %vm4547_vm8 = vmor %vm258_vm4, %vm259_vm5  ;;  %v586_v37 = vsel %vm4541_vm7, %v267_v24, %v585_v22  ;;  %v836_v38 = vrot.slane %v834_v27, 5  ;;  %v231_v46 = vld [vmem:[%s4534_s28 + $0x14] sm:$0xf]  ;;  %v595_v54 = vsel %vm4541_vm7, %v284_v44, %v594_v40  ;;  %v233_v56 = vld [vmem:[%s4534_s28 + $0x1c] sm:$0xf]  ;;  %v289_v57 = vrot.slane %v287_v49, 7 }
  0x31   : > { %vm4553_vm9 = vmand %vm173_vm1, %vm258_vm4  ;;  %587 = vst [vmem:[#allocation2 + $0xc] sm:$0xf] %v586_v37  ;;  %v276_v47 = vsel %vm4547_vm8, %v268_v25, %v275_v36  ;;  %v299_v58 = vshll.u32 %v230_v41, 16  ;;  %v304_v59 = vshrl.u32 %v231_v46, 16  ;;  %v307_v60 = vshll.u32 %v231_v46, 16  ;;  %s161_s25 = sand.u32 1, %s4386_s13  }
  0x32   : > { %vm4560_vm10 = vmor %vm811_vm2, %vm812_vm3  ;;  %v592_v48 = vsel %vm4553_vm9, %v277_v39, %v591_v31  ;;  %588 = vst.msk [vmem:[#allocation2 + $0x10] sm:$0xf] %vm170_vm0, %v276_v47  ;;  %v598_v61 = vld [vmem:[#allocation2 + $0x20] sm:$0x1]  ;;  %v298_v62 = vrot.slane %v296_v55, 7  ;;  %v313_v63 = vshrl.u32 %v232_v51, 16  ;;  %v292_v2 = vor.u32 %v290_v50, %v289_v57 }
  0x33   : > { %v827_v52 = vsel %vm4560_vm10, %v822_v42, %v826_v19  ;;  %v837_v53 = vsel %vm4560_vm10, %v832_v43, %v836_v38  ;;  %593 = vst [vmem:[#allocation2 + $0x14] sm:$0x1] %v592_v48  ;;  %596 = vst [vmem:[#allocation2 + $0x18] sm:$0xf] %v595_v54  ;;  %v316_v0 = vshll.u32 %v232_v51, 16  ;;  %v321_v1 = vshrl.u32 %v233_v56, 16 }
  0x34   : > { %1198 = vrot.lane.b32.xlu0 %v827_v52, %s4397_s29  ;;  %v294_v3 = vrot.slane %v289_v57, 4  ;;  %v306_v4 = vrot.slane %v304_v59, 7  ;;  %v601_v5 = vld [vmem:[#allocation2 + $0x24] sm:$0xf]  ;;  %v324_v6 = vshll.u32 %v233_v56, 16  ;;  %v301_v7 = vor.u32 %v299_v58, %v298_v62  ;;  %s4164_s26 = sshll.u32 %s161_s25, 5 }
  0x35   : > { %v302_v8 = vrot.slane %v298_v62, 4  ;;  %v605_v9 = vld [vmem:[#allocation2 + $0x2c] sm:$0x1]  ;;  %v315_v10 = vrot.slane %v313_v63, 7  ;;  %v323_v11 = vrot.slane %v321_v1, 7  ;;  %v293_v13 = vsel %vm4547_vm8, %v285_v45, %v292_v2  ;;  %s163_s27 = scalar_lea.vmem [#allocation4], %s4164_s26 }
  0x36   : > { %v599_v14 = vsel %vm4553_vm9, %v294_v3, %v598_v61  ;;  %v309_v15 = vor.u32 %v307_v60, %v306_v4  ;;  %v311_v16 = vrot.slane %v306_v4, 4  ;;  %597 = vst.msk [vmem:[#allocation2 + $0x1c] sm:$0xf] %vm170_vm0, %v293_v13  ;;  %v602_v19 = vsel %vm4541_vm7, %v301_v7, %v601_v5  ;;  %v608_v22 = vld [vmem:[#allocation2 + $0x30] sm:$0xf] }
  0x37   : > { %600 = vst [vmem:[#allocation2 + $0x20] sm:$0x1] %v599_v14  ;;  %v318_v20 = vor.u32 %v316_v0, %v315_v10  ;;  %603 = vst [vmem:[#allocation2 + $0x24] sm:$0xf] %v602_v19  ;;  %v319_v28 = vrot.slane %v315_v10, 4  ;;  %v326_v29 = vor.u32 %v324_v6, %v323_v11  ;;  %v328_v51 = vrot.slane %v323_v11, 4 }
  0x38   : > { %v766_v12 = vld [vmem:[#allocation2 + $0xc] sm:$0xf]  ;;  %1200 = vrot.lane.b32.xlu0 %v837_v53, %s4397_s29  ;;  %v310_v26 = vsel %vm4547_vm8, %v302_v8, %v309_v15  ;;  %v606_v27 = vsel %vm4553_vm9, %v311_v16, %v605_v9  ;;  %v4598_v41 = vld [vmem:[%s4534_s28 + $0x20] sm:$0xf]  ;;  %v612_v46 = vld [vmem:[#allocation2 + $0x38] sm:$0x1] }
  0x39   : > { %v839_v17 = vshrl.u32 %v766_v12, 16  ;;  %v842_v18 = vshll.u32 %v766_v12, 16  ;;  %v767_v24 = vld [vmem:[#allocation2 + $0x10] sm:$0xf]  ;;  %604 = vst.msk [vmem:[#allocation2 + $0x28] sm:$0xf] %vm170_vm0, %v310_v26  ;;  %v327_v40 = vsel %vm4547_vm8, %v319_v28, %v326_v29  ;;  %v609_v45 = vsel %vm4541_vm7, %v318_v20, %v608_v22 }
  0x3a   : > { %v768_v25 = vld [vmem:[#allocation2 + $0x14] sm:$0x1]  ;;  %v848_v33 = vshll.u32 %v767_v24, 16  ;;  %v852_v34 = vshrl.u32 %v767_v24, 16  ;;  %v769_v36 = vld [vmem:[#allocation2 + $0x18] sm:$0xf]  ;;  %v613_v59 = vsel %vm4553_vm9, %v328_v51, %v612_v46 }
  0x3b   : > { %v841_v31 = vrot.slane %v839_v17, 4  ;;  %v844_v32 = vrot.slane %v842_v18, 5  ;;  %607 = vst [vmem:[#allocation2 + $0x2c] sm:$0x1] %v606_v27  ;;  %v858_v37 = vshll.u32 %v768_v25, 16  ;;  %v863_v38 = vshrl.u32 %v769_v36, 16 }
  0x3c   : > { %v866_v39 = vshll.u32 %v769_v36, 16  ;;  %v850_v43 = vrot.slane %v848_v33, 5  ;;  %v854_v44 = vrot.slane %v852_v34, 4  ;;  %611 = vst.msk [vmem:[#allocation2 + $0x34] sm:$0xf] %vm170_vm0, %v327_v40  ;;  %v330_v54 = vshrl.u32 %v4598_v41, 16 }
  0x3d   : > { %v845_v42 = vor.u32 %v844_v32, %v841_v31  ;;  %v4604_v47 = vld [vmem:[%s4534_s28 + $0x24] sm:$0xf]  ;;  %v860_v48 = vrot.slane %v858_v37, 5  ;;  %v865_v49 = vrot.slane %v863_v38, 4  ;;  %610 = vst [vmem:[#allocation2 + $0x30] sm:$0xf] %v609_v45 }
  0x3e   : > { %v868_v50 = vrot.slane %v866_v39, 5  ;;  %v855_v53 = vor.u32 %v854_v44, %v850_v43  ;;  %v333_v55 = vshll.u32 %v4598_v41, 16  ;;  %v770_v56 = vld [vmem:[#allocation2 + $0x1c] sm:$0xf]  ;;  %v771_v58 = vld [vmem:[#allocation2 + $0x20] sm:$0x1] }
  0x3f   : > { %v846_v52 = vrot.slane %v845_v42, 4  ;;  %v338_v60 = vshrl.u32 %v4604_v47, 16  ;;  %v341_v61 = vshll.u32 %v4604_v47, 16  ;;  %v872_v0 = vshll.u32 %v770_v56, 16  ;;  %v772_v2 = vld [vmem:[#allocation2 + $0x24] sm:$0xf] }
  0x40   : > { %v869_v57 = vor.u32 %v868_v50, %v865_v49  ;;  %v856_v63 = vrot.slane %v855_v53, 4  ;;  %v876_v1 = vshrl.u32 %v770_v56, 16  ;;  %614 = vst [vmem:[#allocation2 + $0x38] sm:$0x1] %v613_v59  ;;  %v882_v4 = vshll.u32 %v771_v58, 16 }
  0x41   : > { %v851_v62 = vsel %vm4560_vm10, %v846_v52, %v850_v43  ;;  %v773_v5 = vld [vmem:[#allocation2 + $0x28] sm:$0xf]  ;;  %v887_v6 = vshrl.u32 %v772_v2, 16  ;;  %v890_v7 = vshll.u32 %v772_v2, 16  ;;  %v874_v9 = vrot.slane %v872_v0, 5 }
  0x42   : > { %1202 = vrot.lane.b32.xlu1 %v851_v62, %s4397_s29  ;;  %v870_v3 = vrot.slane %v869_v57, 4  ;;  %v861_v8 = vsel %vm4560_vm10, %v856_v63, %v860_v48  ;;  %v878_v10 = vrot.slane %v876_v1, 4  ;;  %v896_v11 = vshll.u32 %v773_v5, 16  ;;  %v774_v12 = vld [vmem:[#allocation2 + $0x2c] sm:$0x1] }
  0x43   : > { %v884_v13 = vrot.slane %v882_v4, 5  ;;  %v889_v14 = vrot.slane %v887_v6, 4  ;;  %v892_v15 = vrot.slane %v890_v7, 5  ;;  %v900_v16 = vshrl.u32 %v773_v5, 16  ;;  %v776_v17 = vld [vmem:[#allocation2 + $0x34] sm:$0xf] }
  0x44   : > { %v875_v18 = vsel %vm4560_vm10, %v870_v3, %v874_v9  ;;  %v879_v19 = vor.u32 %v878_v10, %v874_v9  ;;  %v898_v20 = vrot.slane %v896_v11, 5  ;;  %v906_v22 = vshll.u32 %v774_v12, 16  ;;  %v775_v24 = vld [vmem:[#allocation2 + $0x30] sm:$0xf]  ;;  %v236_v34 = vld [vmem:[%s4534_s28 + $0x28] sm:$0xf] }
  0x45   : > { %1206 = vrot.lane.b32.xlu0 %v875_v18, %s4397_s29  ;;  %v893_v25 = vor.u32 %v892_v15, %v889_v14  ;;  %v902_v26 = vrot.slane %v900_v16, 4  ;;  %v911_v27 = vshrl.u32 %v775_v24, 16  ;;  %v914_v28 = vshll.u32 %v775_v24, 16  ;;  %v615_v51 = vld [vmem:[#allocation2 + $0x3c] sm:$0xf] }
  0x46   : > { %1204 = vrot.lane.b32.xlu1 %v861_v8, %s4397_s29  ;;  %v880_v29 = vrot.slane %v879_v19, 4  ;;  %v908_v31 = vrot.slane %v906_v22, 5  ;;  %v920_v32 = vshll.u32 %v776_v17, 16  ;;  %v924_v33 = vshrl.u32 %v776_v17, 16  ;;  %v237_v57 = vld [vmem:[%s4534_s28 + $0x2c] sm:$0xf] }
  0x47   : > { %v894_v36 = vrot.slane %v893_v25, 4  ;;  %v903_v37 = vor.u32 %v902_v26, %v898_v20  ;;  %v913_v38 = vrot.slane %v911_v27, 4  ;;  %v916_v39 = vrot.slane %v914_v28, 5  ;;  %v777_v40 = vld [vmem:[#allocation2 + $0x38] sm:$0x1] }
  0x48   : > { %v885_v42 = vsel %vm4560_vm10, %v880_v29, %v884_v13  ;;  %v922_v43 = vrot.slane %v920_v32, 5  ;;  %v926_v44 = vrot.slane %v924_v33, 4  ;;  %v930_v45 = vshll.u32 %v777_v40, 16  ;;  %v240_v8 = vld [vmem:[%s4534_s28 + $0x38] sm:$0xf] }
  0x49   : > { %v899_v46 = vsel %vm4560_vm10, %v894_v36, %v898_v20  ;;  %v904_v48 = vrot.slane %v903_v37, 4  ;;  %v917_v49 = vor.u32 %v916_v39, %v913_v38  ;;  %v332_v50 = vrot.slane %v330_v54, 7  ;;  %v619_v54 = vld [vmem:[#allocation2 + $0x44] sm:$0x1]  ;;  %v622_v11 = vld [vmem:[#allocation2 + $0x48] sm:$0xf] }
  0x4a   : > { %1208 = vrot.lane.b32.xlu1 %v885_v42, %s4397_s29  ;;  %1210 = vrot.lane.b32.xlu0 %v899_v46, %s4397_s29  ;;  %v927_v52 = vor.u32 %v926_v44, %v922_v43  ;;  %v932_v53 = vrot.slane %v930_v45, 5  ;;  %v340_v56 = vrot.slane %v338_v60, 7  ;;  %v347_v58 = vshrl.u32 %v236_v34, 16  ;;  %v238_v60 = vld [vmem:[%s4534_s28 + $0x30] sm:$0xf] }
  0x4b   : > { %v909_v59 = vsel %vm4560_vm10, %v904_v48, %v908_v31  ;;  %v918_v62 = vrot.slane %v917_v49, 4  ;;  %v335_v63 = vor.u32 %v333_v55, %v332_v50  ;;  %v336_v0 = vrot.slane %v332_v50, 4  ;;  %v239_v55 = vld [vmem:[%s4534_s28 + $0x34] sm:$0xf]  ;;  %v241_v16 = vld [vmem:[%s4534_s28 + $0x3c] sm:$0xf] }
  0x4c   : > { %v928_v1 = vrot.slane %v927_v52, 4  ;;  %v343_v2 = vor.u32 %v341_v61, %v340_v56  ;;  %v345_v3 = vrot.slane %v340_v56, 4  ;;  %v349_v4 = vrot.slane %v347_v58, 7  ;;  %v626_v17 = vld [vmem:[#allocation2 + $0x50] sm:$0x1] }
  0x4d   : > { %v923_v5 = vsel %vm4560_vm10, %v918_v62, %v922_v43  ;;  %v616_v6 = vsel %vm4541_vm7, %v335_v63, %v615_v51  ;;  %v350_v7 = vshll.u32 %v236_v34, 16  ;;  %v355_v41 = vshrl.u32 %v237_v57, 16  ;;  %v629_v28 = vld [vmem:[#allocation2 + $0x54] sm:$0xf]  ;;  %v242_v34 = vld [vmem:[%s4534_s28 + $0x40] sm:$0xf] }
  0x4e   : > { %1212 = vrot.lane.b32.xlu1 %v909_v59, %s4397_s29  ;;  %1214 = vrot.lane.b32.xlu0 %v923_v5, %s4397_s29  ;;  %v933_v47 = vsel %vm4560_vm10, %v928_v1, %v932_v53  ;;  %v344_v61 = vsel %vm4547_vm8, %v336_v0, %v343_v2  ;;  %617 = vst [vmem:[#allocation2 + $0x3c] sm:$0xf] %v616_v6  ;;  %v353_v10 = vrot.slane %v349_v4, 4  ;;  %v358_v14 = vshll.u32 %v237_v57, 16  ;;  %v633_v40 = vld [vmem:[#allocation2 + $0x5c] sm:$0x1] }
  0x4f   : > { %v620_v9 = vsel %vm4553_vm9, %v345_v3, %v619_v54  ;;  %618 = vst.msk [vmem:[#allocation2 + $0x40] sm:$0xf] %vm170_vm0, %v344_v61  ;;  %v352_v12 = vor.u32 %v350_v7, %v349_v4  ;;  %v357_v13 = vrot.slane %v355_v41, 7  ;;  %v364_v15 = vshrl.u32 %v238_v60, 16  ;;  %v636_v46 = vld [vmem:[#allocation2 + $0x60] sm:$0xf] }
  0x50   : > { %621 = vst [vmem:[#allocation2 + $0x44] sm:$0x1] %v620_v9  ;;  %v367_v18 = vshll.u32 %v238_v60, 16  ;;  %v372_v19 = vshrl.u32 %v239_v55, 16  ;;  %v375_v20 = vshll.u32 %v239_v55, 16  ;;  %v381_v22 = vshrl.u32 %v240_v8, 16 }
  0x51   : > { %v360_v24 = vor.u32 %v358_v14, %v357_v13  ;;  %v623_v25 = vsel %vm4541_vm7, %v352_v12, %v622_v11  ;;  %v362_v26 = vrot.slane %v357_v13, 4  ;;  %v366_v27 = vrot.slane %v364_v15, 7  ;;  %v640_v2 = vld [vmem:[#allocation2 + $0x68] sm:$0x1] }
  0x52   : > { %1216 = vrot.lane.b32.xlu1 %v933_v47, %s4397_s29  ;;  %624 = vst [vmem:[#allocation2 + $0x48] sm:$0xf] %v623_v25  ;;  %v374_v29 = vrot.slane %v372_v19, 7  ;;  %v383_v31 = vrot.slane %v381_v22, 7  ;;  %v384_v32 = vshll.u32 %v240_v8, 16  ;;  %v389_v33 = vshrl.u32 %v241_v16, 16 }
  0x53   : > { %v361_v36 = vsel %vm4547_vm8, %v353_v10, %v360_v24  ;;  %v627_v37 = vsel %vm4553_vm9, %v362_v26, %v626_v17  ;;  %v369_v38 = vor.u32 %v367_v18, %v366_v27  ;;  %v370_v39 = vrot.slane %v366_v27, 4 }
  0x54   : > { %625 = vst.msk [vmem:[#allocation2 + $0x4c] sm:$0xf] %vm170_vm0, %v361_v36  ;;  %628 = vst [vmem:[#allocation2 + $0x50] sm:$0x1] %v627_v37  ;;  %v377_v42 = vor.u32 %v375_v20, %v374_v29  ;;  %v379_v43 = vrot.slane %v374_v29, 4  ;;  %v386_v44 = vor.u32 %v384_v32, %v383_v31  ;;  %v387_v45 = vrot.slane %v383_v31, 4 }
  0x55   : > { %v778_v48 = vld [vmem:[#allocation2 + $0x3c] sm:$0xf]  ;;  %v630_v49 = vsel %vm4541_vm7, %v369_v38, %v629_v28  ;;  %v391_v50 = vrot.slane %v389_v33, 7  ;;  %v392_v51 = vshll.u32 %v241_v16, 16  ;;  %v398_v52 = vshrl.u32 %v242_v34, 16 }
  0x56   : > { %v779_v53 = vld [vmem:[#allocation2 + $0x40] sm:$0xf]  ;;  %v935_v56 = vshrl.u32 %v778_v48, 16  ;;  %v938_v57 = vshll.u32 %v778_v48, 16  ;;  %v378_v59 = vsel %vm4547_vm8, %v370_v39, %v377_v42  ;;  %631 = vst [vmem:[#allocation2 + $0x54] sm:$0xf] %v630_v49  ;;  %v634_v62 = vsel %vm4553_vm9, %v379_v43, %v633_v40 }
  0x57   : > { %v780_v58 = vld [vmem:[#allocation2 + $0x44] sm:$0x1]  ;;  %v944_v63 = vshll.u32 %v779_v53, 16  ;;  %v948_v0 = vshrl.u32 %v779_v53, 16  ;;  %632 = vst.msk [vmem:[#allocation2 + $0x58] sm:$0xf] %vm170_vm0, %v378_v59  ;;  %v394_v1 = vor.u32 %v392_v51, %v391_v50  ;;  %v637_v60 = vsel %vm4541_vm7, %v386_v44, %v636_v46 }
  0x58   : > { %v954_v54 = vshll.u32 %v780_v58, 16  ;;  %635 = vst [vmem:[#allocation2 + $0x5c] sm:$0x1] %v634_v62  ;;  %v937_v3 = vrot.slane %v935_v56, 4  ;;  %v940_v4 = vrot.slane %v938_v57, 5  ;;  %v396_v5 = vrot.slane %v391_v50, 4 }
  0x59   : > { %v946_v6 = vrot.slane %v944_v63, 5  ;;  %v950_v7 = vrot.slane %v948_v0, 4  ;;  %v781_v55 = vld [vmem:[#allocation2 + $0x48] sm:$0xf]  ;;  %v395_v8 = vsel %vm4547_vm8, %v387_v45, %v394_v1  ;;  %638 = vst [vmem:[#allocation2 + $0x60] sm:$0xf] %v637_v60 }
  0x5a   : > { %v956_v41 = vrot.slane %v954_v54, 5  ;;  %v941_v47 = vor.u32 %v940_v4, %v937_v3  ;;  %v959_v61 = vshrl.u32 %v781_v55, 16  ;;  %v962_v9 = vshll.u32 %v781_v55, 16  ;;  %639 = vst.msk [vmem:[#allocation2 + $0x64] sm:$0xf] %vm170_vm0, %v395_v8 }
  0x5b   : > { %v641_v10 = vsel %vm4553_vm9, %v396_v5, %v640_v2  ;;  %v951_v11 = vor.u32 %v950_v7, %v946_v6  ;;  %v782_v12 = vld [vmem:[#allocation2 + $0x4c] sm:$0xf]  ;;  %v783_v13 = vld [vmem:[#allocation2 + $0x50] sm:$0x1]  ;;  %v4675_v14 = vrot.slane %v398_v52, 7  ;;  %v401_v15 = vshll.u32 %v242_v34, 16 }
  0x5c   : > { %642 = vst [vmem:[#allocation2 + $0x68] sm:$0x1] %v641_v10  ;;  %v942_v16 = vrot.slane %v941_v47, 4  ;;  %v961_v17 = vrot.slane %v959_v61, 4  ;;  %v964_v18 = vrot.slane %v962_v9, 5  ;;  %v968_v19 = vshll.u32 %v782_v12, 16 }
  0x5d   : > { %v952_v20 = vrot.slane %v951_v11, 4  ;;  %v972_v22 = vshrl.u32 %v782_v12, 16  ;;  %v978_v24 = vshll.u32 %v783_v13, 16  ;;  %v784_v25 = vld [vmem:[#allocation2 + $0x54] sm:$0xf]  ;;  %v403_v26 = vor.u32 %v401_v15, %v4675_v14 }
  0x5e   : > { %v947_v27 = vsel %vm4560_vm10, %v942_v16, %v946_v6  ;;  %v965_v28 = vor.u32 %v964_v18, %v961_v17  ;;  %v970_v29 = vrot.slane %v968_v19, 5  ;;  %v785_v31 = vld [vmem:[#allocation2 + $0x58] sm:$0xf]  ;;  %v983_v32 = vshrl.u32 %v784_v25, 16  ;;  %v243_v0 = vld [vmem:[%s4534_s28 + $0x44] sm:$0xf] }
  0x5f   : > { %v786_v33 = vld [vmem:[#allocation2 + $0x5c] sm:$0x1]  ;;  %1218 = vrot.lane.b32.xlu0 %v947_v27, %s4397_s29  ;;  %v957_v34 = vsel %vm4560_vm10, %v952_v20, %v956_v41  ;;  %v974_v36 = vrot.slane %v972_v22, 4  ;;  %v980_v37 = vrot.slane %v978_v24, 5  ;;  %v986_v38 = vshll.u32 %v784_v25, 16 }
  0x60   : > { %1220 = vrot.lane.b32.xlu1 %v957_v34, %s4397_s29  ;;  %v966_v39 = vrot.slane %v965_v28, 4  ;;  %v985_v40 = vrot.slane %v983_v32, 4  ;;  %v992_v42 = vshll.u32 %v785_v31, 16  ;;  %v996_v43 = vshrl.u32 %v785_v31, 16  ;;  %v787_v44 = vld [vmem:[#allocation2 + $0x60] sm:$0xf] }
  0x61   : > { %v975_v45 = vor.u32 %v974_v36, %v970_v29  ;;  %v988_v46 = vrot.slane %v986_v38, 5  ;;  %v1002_v48 = vshll.u32 %v786_v33, 16  ;;  %v788_v49 = vld [vmem:[#allocation2 + $0x64] sm:$0xf]  ;;  %v1007_v50 = vshrl.u32 %v787_v44, 16 }
  0x62   : > { %v971_v51 = vsel %vm4560_vm10, %v966_v39, %v970_v29  ;;  %v994_v52 = vrot.slane %v992_v42, 5  ;;  %v998_v53 = vrot.slane %v996_v43, 4  ;;  %v1010_v56 = vshll.u32 %v787_v44, 16  ;;  %v643_v4 = vld [vmem:[#allocation2 + $0x6c] sm:$0xf] }
  0x63   : > { %v789_v57 = vld [vmem:[#allocation2 + $0x68] sm:$0x1]  ;;  %1222 = vrot.lane.b32.xlu0 %v971_v51, %s4397_s29  ;;  %v976_v58 = vrot.slane %v975_v45, 4  ;;  %v989_v59 = vor.u32 %v988_v46, %v985_v40  ;;  %v1004_v62 = vrot.slane %v1002_v48, 5  ;;  %v1009_v63 = vrot.slane %v1007_v50, 4 }
  0x64   : > { %v999_v54 = vor.u32 %v998_v53, %v994_v52  ;;  %v1012_v1 = vrot.slane %v1010_v56, 5  ;;  %v1016_v2 = vshll.u32 %v788_v49, 16  ;;  %v1020_v3 = vshrl.u32 %v788_v49, 16  ;;  %v244_v41 = vld [vmem:[%s4534_s28 + $0x48] sm:$0xf] }
  0x65   : > { %v981_v60 = vsel %vm4560_vm10, %v976_v58, %v980_v37  ;;  %v990_v5 = vrot.slane %v989_v59, 4  ;;  %v1026_v6 = vshll.u32 %v789_v57, 16  ;;  %v404_v7 = vrot.slane %v4675_v14, 4  ;;  %v245_v9 = vld [vmem:[%s4534_s28 + $0x4c] sm:$0xf] }
  0x66   : > { %1224 = vrot.lane.b32.xlu1 %v981_v60, %s4397_s29  ;;  %v1000_v55 = vrot.slane %v999_v54, 4  ;;  %v1013_v8 = vor.u32 %v1012_v1, %v1009_v63  ;;  %v1018_v47 = vrot.slane %v1016_v2, 5  ;;  %v1022_v61 = vrot.slane %v1020_v3, 4  ;;  %v246_v15 = vld [vmem:[%s4534_s28 + $0x50] sm:$0xf] }
  0x67   : > { %v995_v10 = vsel %vm4560_vm10, %v990_v5, %v994_v52  ;;  %v1028_v11 = vrot.slane %v1026_v6, 5  ;;  %v406_v12 = vshrl.u32 %v243_v0, 16  ;;  %v409_v13 = vshll.u32 %v243_v0, 16  ;;  %v247_v25 = vld [vmem:[%s4534_s28 + $0x54] sm:$0xf] }
  0x68   : > { %1226 = vrot.lane.b32.xlu0 %v995_v10, %s4397_s29  ;;  %v1005_v14 = vsel %vm4560_vm10, %v1000_v55, %v1004_v62  ;;  %v1014_v16 = vrot.slane %v1013_v8, 4  ;;  %v1023_v17 = vor.u32 %v1022_v61, %v1018_v47  ;;  %v644_v18 = vsel %vm4541_vm7, %v403_v26, %v643_v4  ;;  %v647_v29 = vld [vmem:[#allocation2 + $0x74] sm:$0x1]  ;;  %v650_v37 = vld [vmem:[#allocation2 + $0x78] sm:$0xf] }
  0x69   : > { %v408_v19 = vrot.slane %v406_v12, 7  ;;  %645 = vst [vmem:[#allocation2 + $0x6c] sm:$0xf] %v644_v18  ;;  %v415_v20 = vshrl.u32 %v244_v41, 16  ;;  %v418_v22 = vshll.u32 %v244_v41, 16  ;;  %v423_v24 = vshrl.u32 %v245_v9, 16 }
  0x6a   : > { %1228 = vrot.lane.b32.xlu1 %v1005_v14, %s4397_s29  ;;  %v1019_v27 = vsel %vm4560_vm10, %v1014_v16, %v1018_v47  ;;  %v1024_v28 = vrot.slane %v1023_v17, 4  ;;  %v426_v31 = vshll.u32 %v245_v9, 16  ;;  %v432_v32 = vshrl.u32 %v246_v15, 16  ;;  %v248_v43 = vld [vmem:[%s4534_s28 + $0x58] sm:$0xf] }
  0x6b   : > { %v411_v33 = vor.u32 %v409_v13, %v408_v19  ;;  %v413_v34 = vrot.slane %v408_v19, 4  ;;  %v417_v36 = vrot.slane %v415_v20, 7  ;;  %v425_v26 = vrot.slane %v423_v24, 7  ;;  %v654_v49 = vld [vmem:[#allocation2 + $0x80] sm:$0x1] }
  0x6c   : > { %1230 = vrot.lane.b32.xlu0 %v1019_v27, %s4397_s29  ;;  %v1029_v38 = vsel %vm4560_vm10, %v1024_v28, %v1028_v11  ;;  %v434_v39 = vrot.slane %v432_v32, 7  ;;  %v435_v40 = vshll.u32 %v246_v15, 16  ;;  %v440_v42 = vshrl.u32 %v247_v25, 16  ;;  %v657_v50 = vld [vmem:[#allocation2 + $0x84] sm:$0xf] }
  0x6d   : > { %v412_v44 = vsel %vm4547_vm8, %v404_v7, %v411_v33  ;;  %v648_v45 = vsel %vm4553_vm9, %v413_v34, %v647_v29  ;;  %v420_v46 = vor.u32 %v418_v22, %v417_v36  ;;  %v421_v48 = vrot.slane %v417_v36, 4  ;;  %v249_v57 = vld [vmem:[%s4534_s28 + $0x5c] sm:$0xf]  ;;  %v250_v0 = vld [vmem:[%s4534_s28 + $0x60] sm:$0xf] }
  0x6e   : > { %1232 = vrot.lane.b32.xlu1 %v1029_v38, %s4397_s29  ;;  %646 = vst.msk [vmem:[#allocation2 + $0x70] sm:$0xf] %vm170_vm0, %v412_v44  ;;  %649 = vst [vmem:[#allocation2 + $0x74] sm:$0x1] %v648_v45  ;;  %v428_v51 = vor.u32 %v426_v31, %v425_v26  ;;  %v430_v52 = vrot.slane %v425_v26, 4  ;;  %v437_v53 = vor.u32 %v435_v40, %v434_v39  ;;  %v438_v56 = vrot.slane %v434_v39, 4 }
  0x6f   : > { %v651_v58 = vsel %vm4541_vm7, %v420_v46, %v650_v37  ;;  %v442_v59 = vrot.slane %v440_v42, 7  ;;  %v443_v62 = vshll.u32 %v247_v25, 16  ;;  %v449_v63 = vshrl.u32 %v248_v43, 16  ;;  %v661_v4 = vld [vmem:[#allocation2 + $0x8c] sm:$0x1] }
  0x70   : > { %v790_v54 = vld [vmem:[#allocation2 + $0x6c] sm:$0xf]  ;;  %v429_v1 = vsel %vm4547_vm8, %v421_v48, %v428_v51  ;;  %652 = vst [vmem:[#allocation2 + $0x78] sm:$0xf] %v651_v58  ;;  %v655_v2 = vsel %vm4553_vm9, %v430_v52, %v654_v49  ;;  %v658_v3 = vsel %vm4541_vm7, %v437_v53, %v657_v50  ;;  %v452_v60 = vshll.u32 %v248_v43, 16 }
  0x71   : > { %v1031_v5 = vshrl.u32 %v790_v54, 16  ;;  %v1034_v6 = vshll.u32 %v790_v54, 16  ;;  %653 = vst.msk [vmem:[#allocation2 + $0x7c] sm:$0xf] %vm170_vm0, %v429_v1  ;;  %656 = vst [vmem:[#allocation2 + $0x80] sm:$0x1] %v655_v2  ;;  %v445_v7 = vor.u32 %v443_v62, %v442_v59 }
  0x72   : > { %659 = vst [vmem:[#allocation2 + $0x84] sm:$0xf] %v658_v3  ;;  %v447_v41 = vrot.slane %v442_v59, 4  ;;  %v451_v55 = vrot.slane %v449_v63, 7  ;;  %v457_v8 = vshrl.u32 %v249_v57, 16  ;;  %v460_v47 = vshll.u32 %v249_v57, 16 }
  0x73   : > { %v4728_v61 = vld [vmem:[%s4534_s28 + $0x64] sm:$0xf]  ;;  %v466_v9 = vshrl.u32 %v250_v0, 16  ;;  %v1033_v10 = vrot.slane %v1031_v5, 4  ;;  %v1036_v11 = vrot.slane %v1034_v6, 5  ;;  %v446_v12 = vsel %vm4547_vm8, %v438_v56, %v445_v7 }
  0x74   : > { %v662_v13 = vsel %vm4553_vm9, %v447_v41, %v661_v4  ;;  %660 = vst.msk [vmem:[#allocation2 + $0x88] sm:$0xf] %vm170_vm0, %v446_v12  ;;  %v454_v15 = vor.u32 %v452_v60, %v451_v55  ;;  %v455_v14 = vrot.slane %v451_v55, 4  ;;  %v459_v16 = vrot.slane %v457_v8, 7  ;;  %v664_v17 = vld [vmem:[#allocation2 + $0x90] sm:$0xf] }
  0x75   : > { %663 = vst [vmem:[#allocation2 + $0x8c] sm:$0x1] %v662_v13  ;;  %v4735_v18 = vrot.slane %v466_v9, 7  ;;  %v791_v19 = vld [vmem:[#allocation2 + $0x70] sm:$0xf]  ;;  %v1037_v20 = vor.u32 %v1036_v11, %v1033_v10  ;;  %v469_v24 = vshll.u32 %v250_v0, 16 }
  0x76   : > { %v792_v22 = vld [vmem:[#allocation2 + $0x74] sm:$0x1]  ;;  %v474_v25 = vshrl.u32 %v4728_v61, 16  ;;  %v1040_v27 = vshll.u32 %v791_v19, 16  ;;  %v1044_v28 = vshrl.u32 %v791_v19, 16  ;;  %v462_v31 = vor.u32 %v460_v47, %v459_v16 }
  0x77   : > { %v1050_v29 = vshll.u32 %v792_v22, 16  ;;  %v1038_v32 = vrot.slane %v1037_v20, 4  ;;  %v793_v33 = vld [vmem:[#allocation2 + $0x78] sm:$0xf]  ;;  %v665_v34 = vsel %vm4541_vm7, %v454_v15, %v664_v17  ;;  %v464_v36 = vrot.slane %v459_v16, 4 }
  0x78   : > { %v4741_v26 = vor.u32 %v469_v24, %v4735_v18  ;;  %v1042_v37 = vrot.slane %v1040_v27, 5  ;;  %v1046_v38 = vrot.slane %v1044_v28, 4  ;;  %v794_v40 = vld [vmem:[#allocation2 + $0x7c] sm:$0xf]  ;;  %v1055_v42 = vshrl.u32 %v793_v33, 16 }
  0x79   : > { %v1052_v39 = vrot.slane %v1050_v29, 5  ;;  %666 = vst [vmem:[#allocation2 + $0x90] sm:$0xf] %v665_v34  ;;  %v1058_v43 = vshll.u32 %v793_v33, 16  ;;  %v1064_v44 = vshll.u32 %v794_v40, 16  ;;  %v1068_v45 = vshrl.u32 %v794_v40, 16 }
  0x7a   : > { %v795_v46 = vld [vmem:[#allocation2 + $0x80] sm:$0x1]  ;;  %v463_v48 = vsel %vm4547_vm8, %v455_v14, %v462_v31  ;;  %v1043_v49 = vsel %vm4560_vm10, %v1038_v32, %v1042_v37  ;;  %v1047_v50 = vor.u32 %v1046_v38, %v1042_v37  ;;  %v1057_v51 = vrot.slane %v1055_v42, 4  ;;  %v796_v53 = vld [vmem:[#allocation2 + $0x84] sm:$0xf] }
  0x7b   : > { %v1074_v52 = vshll.u32 %v795_v46, 16  ;;  %667 = vst.msk [vmem:[#allocation2 + $0x94] sm:$0xf] %vm170_vm0, %v463_v48  ;;  %v668_v56 = vld [vmem:[#allocation2 + $0x98] sm:$0x1]  ;;  %1234 = vrot.lane.b32.xlu0 %v1043_v49, %s4397_s29  ;;  %v1060_v57 = vrot.slane %v1058_v43, 5 }
  0x7c   : > { %v1066_v58 = vrot.slane %v1064_v44, 5  ;;  %v1070_v59 = vrot.slane %v1068_v45, 4  ;;  %v797_v62 = vld [vmem:[#allocation2 + $0x88] sm:$0xf]  ;;  %v1079_v63 = vshrl.u32 %v796_v53, 16  ;;  %v1048_v0 = vrot.slane %v1047_v50, 4 }
  0x7d   : > { %v1076_v54 = vrot.slane %v1074_v52, 5  ;;  %v1082_v1 = vshll.u32 %v796_v53, 16  ;;  %v1088_v2 = vshll.u32 %v797_v62, 16  ;;  %v798_v3 = vld [vmem:[#allocation2 + $0x8c] sm:$0x1]  ;;  %v1061_v4 = vor.u32 %v1060_v57, %v1057_v51 }
  0x7e   : > { %v1071_v60 = vor.u32 %v1070_v59, %v1066_v58  ;;  %v1081_v5 = vrot.slane %v1079_v63, 4  ;;  %v1092_v6 = vshrl.u32 %v797_v62, 16  ;;  %v1053_v7 = vsel %vm4560_vm10, %v1048_v0, %v1052_v39  ;;  %v671_v27 = vld [vmem:[#allocation2 + $0x9c] sm:$0xf]  ;;  %v252_v33 = vld [vmem:[%s4534_s28 + $0x68] sm:$0xf] }
  0x7f   : > { %v1084_v41 = vrot.slane %v1082_v1, 5  ;;  %v1090_v55 = vrot.slane %v1088_v2, 5  ;;  %v1098_v8 = vshll.u32 %v798_v3, 16  ;;  %1236 = vrot.lane.b32.xlu1 %v1053_v7, %s4397_s29  ;;  %v1062_v47 = vrot.slane %v1061_v4, 4  ;;  %v253_v39 = vld [vmem:[%s4534_s28 + $0x6c] sm:$0xf] }
  0x80   : > { %v1072_v9 = vrot.slane %v1071_v60, 4  ;;  %v1094_v10 = vrot.slane %v1092_v6, 4  ;;  %v799_v11 = vld [vmem:[#allocation2 + $0x90] sm:$0xf]  ;;  %v669_v12 = vsel %vm4553_vm9, %v464_v36, %v668_v56  ;;  %v472_v24 = vrot.slane %v4735_v18, 4 }
  0x81   : > { %v1085_v13 = vor.u32 %v1084_v41, %v1081_v5  ;;  %v1100_v15 = vrot.slane %v1098_v8, 5  ;;  %v1103_v14 = vshrl.u32 %v799_v11, 16  ;;  %v1106_v16 = vshll.u32 %v799_v11, 16  ;;  %670 = vst [vmem:[#allocation2 + $0x98] sm:$0x1] %v669_v12 }
  0x82   : > { %v1067_v17 = vsel %vm4560_vm10, %v1062_v47, %v1066_v58  ;;  %v1077_v19 = vsel %vm4560_vm10, %v1072_v9, %v1076_v54  ;;  %v1095_v20 = vor.u32 %v1094_v10, %v1090_v55  ;;  %v800_v22 = vld [vmem:[#allocation2 + $0x94] sm:$0xf]  ;;  %v476_v37 = vrot.slane %v474_v25, 7  ;;  %v675_v44 = vld [vmem:[#allocation2 + $0xa4] sm:$0x1] }
  0x83   : > { %1238 = vrot.lane.b32.xlu0 %v1067_v17, %s4397_s29  ;;  %v1086_v28 = vrot.slane %v1085_v13, 4  ;;  %v1105_v29 = vrot.slane %v1103_v14, 4  ;;  %v1108_v31 = vrot.slane %v1106_v16, 5  ;;  %v1112_v32 = vshll.u32 %v800_v22, 16  ;;  %1240 = vrot.lane.b32.xlu1 %v1077_v19, %s4397_s29  ;;  %v255_v53 = vld [vmem:[%s4534_s28 + $0x74] sm:$0xf] }
  0x84   : > { %v1096_v34 = vrot.slane %v1095_v20, 4  ;;  %v1116_v36 = vshrl.u32 %v800_v22, 16  ;;  %v477_v38 = vshll.u32 %v4728_v61, 16  ;;  %v672_v43 = vsel %vm4541_vm7, %v4741_v26, %v671_v27  ;;  %v254_v61 = vld [vmem:[%s4534_s28 + $0x70] sm:$0xf] }
  0x85   : > { %v1091_v18 = vsel %vm4560_vm10, %v1086_v28, %v1090_v55  ;;  %v1109_v40 = vor.u32 %v1108_v31, %v1105_v29  ;;  %v1114_v42 = vrot.slane %v1112_v32, 5  ;;  %673 = vst [vmem:[#allocation2 + $0x9c] sm:$0xf] %v672_v43  ;;  %v481_v25 = vrot.slane %v476_v37, 4  ;;  %v678_v2 = vld [vmem:[#allocation2 + $0xa8] sm:$0xf] }
  0x86   : > { %v1101_v45 = vsel %vm4560_vm10, %v1096_v34, %v1100_v15  ;;  %v1118_v46 = vrot.slane %v1116_v36, 4  ;;  %v479_v48 = vor.u32 %v477_v38, %v476_v37  ;;  %v483_v50 = vshrl.u32 %v252_v33, 16  ;;  %v682_v55 = vld [vmem:[#allocation2 + $0xb0] sm:$0x1]  ;;  %v685_v14 = vld [vmem:[#allocation2 + $0xb4] sm:$0xf] }
  0x87   : > { %1242 = vrot.lane.b32.xlu0 %v1091_v18, %s4397_s29  ;;  %v1110_v49 = vrot.slane %v1109_v40, 4  ;;  %v486_v51 = vshll.u32 %v252_v33, 16  ;;  %v491_v52 = vshrl.u32 %v253_v39, 16  ;;  %1244 = vrot.lane.b32.xlu1 %v1101_v45, %s4397_s29  ;;  %v676_v58 = vsel %vm4553_vm9, %v481_v25, %v675_v44  ;;  %v699_v16 = vld [vmem:[#allocation2] sm:$0xf] }
  0x88   : > { %v801_v56 = vld [vmem:[#allocation2 + $0x98] sm:$0x1]  ;;  %v1119_v26 = vor.u32 %v1118_v46, %v1114_v42  ;;  %v480_v57 = vsel %vm4547_vm8, %v472_v24, %v479_v48  ;;  %v494_v59 = vshll.u32 %v253_v39, 16  ;;  %677 = vst [vmem:[#allocation2 + $0xa4] sm:$0x1] %v676_v58  ;;  %v485_v0 = vrot.slane %v483_v50, 7 }
  0x89   : > { %v1115_v62 = vsel %vm4560_vm10, %v1110_v49, %v1114_v42  ;;  %v1122_v63 = vshll.u32 %v801_v56, 16  ;;  %674 = vst.msk [vmem:[#allocation2 + $0xa0] sm:$0xf] %vm170_vm0, %v480_v57  ;;  %v493_v54 = vrot.slane %v491_v52, 7  ;;  %v500_v3 = vshrl.u32 %v254_v61, 16 }
  0x8a   : > { %v1120_v1 = vrot.slane %v1119_v26, 4  ;;  %v503_v4 = vshll.u32 %v254_v61, 16  ;;  %v508_v60 = vshrl.u32 %v255_v53, 16  ;;  %v488_v6 = vor.u32 %v486_v51, %v485_v0  ;;  %731 = vst.msk [vmem:[#allocation3] sm:$0xf] %vm170_vm0, %v699_v16 }
  0x8b   : > { %1246 = vrot.lane.b32.xlu0 %v1115_v62, %s4397_s29  ;;  %v1124_v5 = vrot.slane %v1122_v63, 5  ;;  %v489_v7 = vrot.slane %v485_v0, 4  ;;  %v496_v41 = vor.u32 %v494_v59, %v493_v54  ;;  %v498_v8 = vrot.slane %v493_v54, 4  ;;  %v701_v24 = vld [vmem:[#allocation2 + $0xc] sm:$0xf] }
  0x8c   : > { %v502_v47 = vrot.slane %v500_v3, 7  ;;  %v510_v9 = vrot.slane %v508_v60, 7  ;;  %v511_v10 = vshll.u32 %v255_v53, 16  ;;  %v802_v12 = vld [vmem:[#allocation2 + $0x9c] sm:$0xf]  ;;  %v679_v15 = vsel %vm4541_vm7, %v488_v6, %v678_v2 }
  0x8d   : > { %v1125_v11 = vsel %vm4560_vm10, %v1120_v1, %v1124_v5  ;;  %v497_v13 = vsel %vm4547_vm8, %v489_v7, %v496_v41  ;;  %v1127_v17 = vshrl.u32 %v802_v12, 16  ;;  %v1130_v19 = vshll.u32 %v802_v12, 16  ;;  %680 = vst [vmem:[#allocation2 + $0xa8] sm:$0xf] %v679_v15  ;;  %v689_v31 = vld [vmem:[#allocation2 + $0xbc] sm:$0x1] }
  0x8e   : > { %1248 = vrot.lane.b32.xlu1 %v1125_v11, %s4397_s29  ;;  %681 = vst.msk [vmem:[#allocation2 + $0xac] sm:$0xf] %vm170_vm0, %v497_v13  ;;  %v683_v20 = vsel %vm4553_vm9, %v498_v8, %v682_v55  ;;  %v505_v22 = vor.u32 %v503_v4, %v502_v47  ;;  %v506_v27 = vrot.slane %v502_v47, 4  ;;  %v513_v28 = vor.u32 %v511_v10, %v510_v9  ;;  %v700_v32 = vld [vmem:[#allocation2 + $0x4] sm:$0xf] }
  0x8f   : > { %684 = vst [vmem:[#allocation2 + $0xb0] sm:$0x1] %v683_v20  ;;  %v515_v29 = vrot.slane %v510_v9, 4  ;;  %733 = vst.msk [vmem:[#allocation3 + $0x8] sm:$0xf] %vm170_vm0, %v701_v24  ;;  %v1129_v34 = vrot.slane %v1127_v17, 4 }
  0x90   : > { %v803_v33 = vld [vmem:[#allocation2 + $0xa0] sm:$0xf]  ;;  %v1132_v36 = vrot.slane %v1130_v19, 5  ;;  %v804_v37 = vld [vmem:[#allocation2 + $0xa4] sm:$0x1]  ;;  %v686_v38 = vsel %vm4541_vm7, %v505_v22, %v685_v14  ;;  %v514_v42 = vsel %vm4547_vm8, %v506_v27, %v513_v28  ;;  %vm1424_vm12 = vcmask 1046532  }
  0x91   : > { %732 = vst.msk [vmem:[#allocation3 + $0x4] sm:$0xf] %vm170_vm0, %v700_v32  ;;  %v1136_v39 = vshll.u32 %v803_v33, 16  ;;  %v1140_v18 = vshrl.u32 %v803_v33, 16  ;;  %v1146_v40 = vshll.u32 %v804_v37, 16  ;;  %v690_v44 = vsel %vm4553_vm9, %v515_v29, %v689_v31  ;;  %vm4824_vm13 = vmor %vm1423_vm11, %vm1424_vm12 }
  0x92   : > { %687 = vst [vmem:[#allocation2 + $0xb4] sm:$0xf] %v686_v38  ;;  %v1133_v43 = vor.u32 %v1132_v36, %v1129_v34  ;;  %688 = vst.msk [vmem:[#allocation2 + $0xb8] sm:$0xf] %vm170_vm0, %v514_v42  ;;  %v702_v45 = vld [vmem:[#allocation2 + $0x10] sm:$0xf] }
  0x93   : > { %v1138_v46 = vrot.slane %v1136_v39, 5  ;;  %v1142_v48 = vrot.slane %v1140_v18, 4  ;;  %691 = vst [vmem:[#allocation2 + $0xbc] sm:$0x1] %v690_v44  ;;  %734 = vst.msk [vmem:[#allocation3 + $0xc] sm:$0xf] %vm170_vm0, %v702_v45 }
  0x94   : > { %v703_v25 = vld [vmem:[#allocation2 + $0x18] sm:$0xf]  ;;  %v1134_v61 = vrot.slane %v1133_v43, 4  ;;  %v704_v49 = vld [vmem:[#allocation2 + $0x1c] sm:$0xf]  ;;  %v1148_v51 = vrot.slane %v1146_v40, 5 }
  0x95   : > { %735 = vst.msk [vmem:[#allocation3 + $0x10] sm:$0xf] %vm170_vm0, %v703_v25  ;;  %v1143_v50 = vor.u32 %v1142_v48, %v1138_v46  ;;  %v805_v52 = vld [vmem:[#allocation2 + $0xa8] sm:$0xf]  ;;  %v806_v53 = vld [vmem:[#allocation2 + $0xac] sm:$0xf] }
  0x96   : > { %736 = vst.msk [vmem:[#allocation3 + $0x14] sm:$0xf] %vm170_vm0, %v704_v49  ;;  %v1139_v56 = vsel %vm4560_vm10, %v1134_v61, %v1138_v46  ;;  %v1151_v26 = vshrl.u32 %v805_v52, 16  ;;  %v1154_v57 = vshll.u32 %v805_v52, 16  ;;  %v1160_v58 = vshll.u32 %v806_v53, 16 }
  0x97   : > { %v807_v59 = vld [vmem:[#allocation2 + $0xb0] sm:$0x1]  ;;  %1250 = vrot.lane.b32.xlu0 %v1139_v56, %s4397_s29  ;;  %v1144_v62 = vrot.slane %v1143_v50, 4  ;;  %v1164_v63 = vshrl.u32 %v806_v53, 16  ;;  %v1328_v7 = vld [vmem:[#allocation2 + $0x4] sm:$0xf] }
  0x98   : > { %v1170_v0 = vshll.u32 %v807_v59, 16  ;;  %v1153_v54 = vrot.slane %v1151_v26, 4  ;;  %v1156_v1 = vrot.slane %v1154_v57, 5  ;;  %v1162_v2 = vrot.slane %v1160_v58, 5  ;;  %v1327_v20 = vld [vmem:[#allocation2] sm:$0xe] }
  0x99   : > { %v808_v3 = vld [vmem:[#allocation2 + $0xb4] sm:$0xf]  ;;  %v1149_v4 = vsel %vm4560_vm10, %v1144_v62, %v1148_v51  ;;  %v1166_v60 = vrot.slane %v1164_v63, 4  ;;  %v809_v5 = vld [vmem:[#allocation2 + $0xb8] sm:$0xf]  ;;  %v1428_v22 = vrot.slane %v1328_v7, 5 }
  0x9a   : > { %v1175_v6 = vshrl.u32 %v808_v3, 16  ;;  %1252 = vrot.lane.b32.xlu1 %v1149_v4, %s4397_s29  ;;  %v1157_v41 = vor.u32 %v1156_v1, %v1153_v54  ;;  %v1178_v55 = vshll.u32 %v808_v3, 16  ;;  %v1184_v8 = vshll.u32 %v809_v5, 16  ;;  %v810_v9 = vld [vmem:[#allocation2 + $0xbc] sm:$0x1] }
  0x9b   : > { %v1188_v47 = vshrl.u32 %v809_v5, 16  ;;  %v1167_v10 = vor.u32 %v1166_v60, %v1162_v2  ;;  %v1172_v11 = vrot.slane %v1170_v0, 5  ;;  %v1194_v13 = vshll.u32 %v810_v9, 16  ;;  %v1329_v24 = vld [vmem:[#allocation2 + $0x8] sm:$0x1] }
  0x9c   : > { %v1177_v12 = vrot.slane %v1175_v6, 4  ;;  %v1158_v15 = vrot.slane %v1157_v41, 4  ;;  %v1180_v14 = vrot.slane %v1178_v55, 5  ;;  %v1186_v16 = vrot.slane %v1184_v8, 5  ;;  %v1331_v32 = vld [vmem:[#allocation2 + $0x10] sm:$0xf] }
  0x9d   : > { %v1190_v17 = vrot.slane %v1188_v47, 4  ;;  %v1168_v19 = vrot.slane %v1167_v10, 4  ;;  %v1196_v31 = vrot.slane %v1194_v13, 5  ;;  %v705_v33 = vld [vmem:[#allocation2 + $0x24] sm:$0xf]  ;;  %v4167_v39 = vrot.slane %v1327_v20, 9 }
  0x9e   : > { %v1163_v27 = vsel %vm4560_vm10, %v1158_v15, %v1162_v2  ;;  %v1181_v28 = vor.u32 %v1180_v14, %v1177_v12  ;;  %737 = vst.msk [vmem:[#allocation3 + $0x18] sm:$0xf] %vm170_vm0, %v705_v33  ;;  %v706_v36 = vld [vmem:[#allocation2 + $0x28] sm:$0xf]  ;;  %v1330_v18 = vld [vmem:[#allocation2 + $0xc] sm:$0xe] }
  0x9f   : > { %v1191_v29 = vor.u32 %v1190_v17, %v1186_v16  ;;  %1254 = vrot.lane.b32.xlu0 %v1163_v27, %s4397_s29  ;;  %v1173_v34 = vsel %vm4560_vm10, %v1168_v19, %v1172_v11  ;;  %738 = vst.msk [vmem:[#allocation3 + $0x1c] sm:$0xf] %vm170_vm0, %v706_v36  ;;  %v1430_v42 = vrot.slane %v1428_v22, 4  ;;  %v1431_v43 = vrot.slane %v1329_v24, 5  ;;  %v1332_v45 = vld [vmem:[#allocation2 + $0x14] sm:$0x1] }
  0xa0   : > { %1256 = vrot.lane.b32.xlu1 %v1173_v34, %s4397_s29  ;;  %v1182_v37 = vrot.slane %v1181_v28, 4  ;;  %v1435_v44 = vrot.slane %v1331_v32, 5  ;;  %v1334_v25 = vld [vmem:[#allocation2 + $0x1c] sm:$0xf]  ;;  %v707_v61 = vld [vmem:[#allocation2 + $0x30] sm:$0xf]  ;;  %v1429_v50 = vsel %vm4824_vm13, %v4167_v39, %v1428_v22 }
  0xa1   : > { %v1192_v38 = vrot.slane %v1191_v29, 4  ;;  %v708_v49 = vld [vmem:[#allocation2 + $0x34] sm:$0xf]  ;;  %739 = vst.msk [vmem:[#allocation3 + $0x20] sm:$0xf] %vm170_vm0, %v707_v61  ;;  %v4168_v51 = vrot.slane %v1330_v18, 9  ;;  %v1432_v56 = vsel %vm4824_vm13, %v1430_v42, %v1431_v43 }
  0xa2   : > { %v1187_v46 = vsel %vm4560_vm10, %v1182_v37, %v1186_v16  ;;  %740 = vst.msk [vmem:[#allocation3 + $0x24] sm:$0xf] %vm170_vm0, %v708_v49  ;;  %v1333_v52 = vld [vmem:[#allocation2 + $0x18] sm:$0xe]  ;;  %v709_v53 = vld [vmem:[#allocation2 + $0x3c] sm:$0xf] }
  0xa3   : > { %v1197_v48 = vsel %vm4560_vm10, %v1192_v38, %v1196_v31  ;;  %1258 = vrot.lane.b32.xlu0 %v1187_v46, %s4397_s29  ;;  %v1437_v26 = vrot.slane %v1435_v44, 4  ;;  %v1438_v57 = vrot.slane %v1332_v45, 5  ;;  %v1442_v58 = vrot.slane %v1334_v25, 5  ;;  %741 = vst.msk [vmem:[#allocation3 + $0x28] sm:$0xf] %vm170_vm0, %v709_v53 }
  0xa4   : > { %1260 = vrot.lane.b32.xlu1 %v1197_v48, %s4397_s29  ;;  %v710_v59 = vld [vmem:[#allocation2 + $0x40] sm:$0xf]  ;;  %v1337_v63 = vld [vmem:[#allocation2 + $0x28] sm:$0xf]  ;;  %v1436_v1 = vsel %vm4824_vm13, %v4168_v51, %v1435_v44  ;;  %v4169_v2 = vrot.slane %v1333_v52, 9  ;;  %vm1294_vm14 = vcmask 126016  }
  0xa5   : > { %v1335_v62 = vld [vmem:[#allocation2 + $0x20] sm:$0x1]  ;;  %742 = vst.msk [vmem:[#allocation3 + $0x2c] sm:$0xf] %vm170_vm0, %v710_v59  ;;  %v711_v54 = vld [vmem:[#allocation2 + $0x48] sm:$0xf]  ;;  %v1439_v4 = vsel %vm4824_vm13, %v1437_v26, %v1438_v57 }
  0xa6   : > { %v1199_v0 = vpop.permute.xlu0 %1198  ;;  %743 = vst.msk [vmem:[#allocation3 + $0x30] sm:$0xf] %vm170_vm0, %v711_v54  ;;  %v712_v3 = vld [vmem:[#allocation2 + $0x4c] sm:$0xf]  ;;  %v1444_v60 = vrot.slane %v1442_v58, 4  ;;  %v1445_v5 = vrot.slane %v1335_v62, 5  ;;  %v1443_v9 = vsel %vm4824_vm13, %v4169_v2, %v1442_v58 }
  0xa7   : > { %1538 = vrot.lane.b32.xlu0 %v1429_v50, %s4398_s30  ;;  %v1336_v6 = vld [vmem:[#allocation2 + $0x24] sm:$0xe]  ;;  %v1449_v7 = vrot.slane %v1337_v63, 5  ;;  %744 = vst.msk [vmem:[#allocation3 + $0x34] sm:$0xf] %vm170_vm0, %v712_v3  ;;  %vm1634_vm15 = vcmask 191616  }
  0xa8   : > { %1540 = vrot.lane.b32.xlu1 %v1432_v56, %s4398_s30  ;;  %v1338_v41 = vld [vmem:[#allocation2 + $0x2c] sm:$0x1]  ;;  %v1340_v55 = vld [vmem:[#allocation2 + $0x34] sm:$0xf]  ;;  %v714_v47 = vld [vmem:[#allocation2 + $0x58] sm:$0xf]  ;;  %v1446_v15 = vsel %vm4824_vm13, %v1444_v60, %v1445_v5 }
  0xa9   : > { %v713_v8 = vld [vmem:[#allocation2 + $0x54] sm:$0xf]  ;;  %v4170_v10 = vrot.slane %v1336_v6, 9  ;;  %v1339_v11 = vld [vmem:[#allocation2 + $0x30] sm:$0xe]  ;;  %v1451_v14 = vrot.slane %v1449_v7, 4 }
  0xaa   : > { %745 = vst.msk [vmem:[#allocation3 + $0x38] sm:$0xf] %vm170_vm0, %v713_v8  ;;  %v1341_v12 = vld [vmem:[#allocation2 + $0x38] sm:$0x1]  ;;  %v1201_v13 = vpop.permute.xlu0 %1200  ;;  %746 = vst.msk [vmem:[#allocation3 + $0x3c] sm:$0xf] %vm170_vm0, %v714_v47 }
  0xab   : > { %1542 = vrot.lane.b32.xlu0 %v1436_v1, %s4398_s30  ;;  %v1452_v16 = vrot.slane %v1338_v41, 5  ;;  %v1456_v17 = vrot.slane %v1340_v55, 5  ;;  %v715_v19 = vld [vmem:[#allocation2 + $0x60] sm:$0xf]  ;;  %v716_v22 = vld [vmem:[#allocation2 + $0x64] sm:$0xf]  ;;  %v1450_v24 = vsel %vm4824_vm13, %v4170_v10, %v1449_v7 }
  0xac   : > { %1544 = vrot.lane.b32.xlu1 %v1439_v4, %s4398_s30  ;;  %v1343_v20 = vld [vmem:[#allocation2 + $0x40] sm:$0xf]  ;;  %747 = vst.msk [vmem:[#allocation3 + $0x40] sm:$0xf] %vm170_vm0, %v715_v19  ;;  %748 = vst.msk [vmem:[#allocation3 + $0x44] sm:$0xf] %vm170_vm0, %v716_v22 }
  0xad   : > { %1295 = vst.msk [vmem:[#allocation3] sm:$0xf] %vm1294_vm14, %v1199_v0  ;;  %1296 = vst.msk [vmem:[#allocation3 + $0x4] sm:$0xf] %vm1294_vm14, %v1201_v13  ;;  %v4171_v27 = vrot.slane %v1339_v11, 9  ;;  %v1453_v31 = vsel %vm4824_vm13, %v1451_v14, %v1452_v16  ;;  %v1458_v32 = vrot.slane %v1456_v17, 4 }
  0xae   : > { %v1342_v28 = vld [vmem:[#allocation2 + $0x3c] sm:$0xe]  ;;  %v717_v29 = vld [vmem:[#allocation2 + $0x6c] sm:$0xf]  ;;  %v1459_v33 = vrot.slane %v1341_v12, 5  ;;  %v1463_v34 = vrot.slane %v1343_v20, 5 }
  0xaf   : > { %1546 = vrot.lane.b32.xlu0 %v1443_v9, %s4398_s30  ;;  %749 = vst.msk [vmem:[#allocation3 + $0x48] sm:$0xf] %vm170_vm0, %v717_v29  ;;  %v718_v36 = vld [vmem:[#allocation2 + $0x70] sm:$0xf]  ;;  %v1344_v37 = vld [vmem:[#allocation2 + $0x44] sm:$0x1]  ;;  %v1457_v43 = vsel %vm4824_vm13, %v4171_v27, %v1456_v17 }
  0xb0   : > { %1548 = vrot.lane.b32.xlu1 %v1446_v15, %s4398_s30  ;;  %v1346_v38 = vld [vmem:[#allocation2 + $0x4c] sm:$0xf]  ;;  %750 = vst.msk [vmem:[#allocation3 + $0x4c] sm:$0xf] %vm170_vm0, %v718_v36  ;;  %v1345_v39 = vld [vmem:[#allocation2 + $0x48] sm:$0xe]  ;;  %v1460_v25 = vsel %vm4824_vm13, %v1458_v32, %v1459_v33 }
  0xb1   : > { %v719_v18 = vld [vmem:[#allocation2 + $0x78] sm:$0xf]  ;;  %v720_v42 = vld [vmem:[#allocation2 + $0x7c] sm:$0xf]  ;;  %v4172_v44 = vrot.slane %v1342_v28, 9  ;;  %v1465_v61 = vrot.slane %v1463_v34, 4 }
  0xb2   : > { %v4874_v45 = vld [vmem:[#allocation2 + $0x58] sm:$0xf]  ;;  %751 = vst.msk [vmem:[#allocation3 + $0x50] sm:$0xf] %vm170_vm0, %v719_v18  ;;  %752 = vst.msk [vmem:[#allocation3 + $0x54] sm:$0xf] %vm170_vm0, %v720_v42 }
  0xb3   : > { %1550 = vrot.lane.b32.xlu0 %v1450_v24, %s4398_s30  ;;  %v721_v48 = vld [vmem:[#allocation2 + $0x84] sm:$0xf]  ;;  %v1466_v49 = vrot.slane %v1344_v37, 5  ;;  %v1470_v50 = vrot.slane %v1346_v38, 5  ;;  %v722_v51 = vld [vmem:[#allocation2 + $0x88] sm:$0xf]  ;;  %v1464_v59 = vsel %vm4824_vm13, %v4172_v44, %v1463_v34 }
  0xb4   : > { %1552 = vrot.lane.b32.xlu1 %v1453_v31, %s4398_s30  ;;  %v1203_v46 = vpop.permute.xlu1 %1202  ;;  %753 = vst.msk [vmem:[#allocation3 + $0x58] sm:$0xf] %vm170_vm0, %v721_v48  ;;  %v1347_v52 = vld [vmem:[#allocation2 + $0x50] sm:$0x1]  ;;  %754 = vst.msk [vmem:[#allocation3 + $0x5c] sm:$0xf] %vm170_vm0, %v722_v51 }
  0xb5   : > { %1297 = vst.msk [vmem:[#allocation3 + $0x8] sm:$0xf] %vm1294_vm14, %v1203_v46  ;;  %v723_v53 = vld [vmem:[#allocation2 + $0x90] sm:$0xf]  ;;  %v724_v56 = vld [vmem:[#allocation2 + $0x94] sm:$0xf]  ;;  %v1467_v2 = vsel %vm4824_vm13, %v1465_v61, %v1466_v49 }
  0xb6   : > { %v4173_v26 = vrot.slane %v1345_v39, 9  ;;  %755 = vst.msk [vmem:[#allocation3 + $0x60] sm:$0xf] %vm170_vm0, %v723_v53  ;;  %756 = vst.msk [vmem:[#allocation3 + $0x64] sm:$0xf] %vm170_vm0, %v724_v56  ;;  %v1477_v63 = vrot.slane %v4874_v45, 5 }
  0xb7   : > { %1554 = vrot.lane.b32.xlu0 %v1457_v43, %s4398_s30  ;;  %v725_v57 = vld [vmem:[#allocation2 + $0x9c] sm:$0xf]  ;;  %v726_v58 = vld [vmem:[#allocation2 + $0xa0] sm:$0xf]  ;;  %v1348_v62 = vld [vmem:[#allocation2 + $0x54] sm:$0xe]  ;;  %v1207_v54 = vpop.permute.xlu0 %1206 }
  0xb8   : > { %1556 = vrot.lane.b32.xlu1 %v1460_v25, %s4398_s30  ;;  %v1205_v0 = vpop.permute.xlu1 %1204  ;;  %757 = vst.msk [vmem:[#allocation3 + $0x68] sm:$0xf] %vm170_vm0, %v725_v57  ;;  %758 = vst.msk [vmem:[#allocation3 + $0x6c] sm:$0xf] %vm170_vm0, %v726_v58  ;;  %v727_v1 = vld [vmem:[#allocation2 + $0xa8] sm:$0xf]  ;;  %v1471_v8 = vsel %vm4824_vm13, %v4173_v26, %v1470_v50 }
  0xb9   : > { %v1472_v3 = vrot.slane %v1470_v50, 4  ;;  %v1473_v4 = vrot.slane %v1347_v52, 5  ;;  %v1350_v60 = vld [vmem:[#allocation2 + $0x5c] sm:$0x1]  ;;  %1298 = vst.msk [vmem:[#allocation3 + $0xc] sm:$0xf] %vm1294_vm14, %v1205_v0 }
  0xba   : > { %1299 = vst.msk [vmem:[#allocation3 + $0x10] sm:$0xf] %vm1294_vm14, %v1207_v54  ;;  %v728_v5 = vld [vmem:[#allocation2 + $0xac] sm:$0xf]  ;;  %v1351_v6 = vld [vmem:[#allocation2 + $0x60] sm:$0xe] }
  0xbb   : > { %759 = vst.msk [vmem:[#allocation3 + $0x70] sm:$0xf] %vm170_vm0, %v727_v1  ;;  %v1352_v7 = vld [vmem:[#allocation2 + $0x64] sm:$0xf]  ;;  %760 = vst.msk [vmem:[#allocation3 + $0x74] sm:$0xf] %vm170_vm0, %v728_v5  ;;  %1558 = vrot.lane.b32.xlu0 %v1464_v59, %s4398_s30  ;;  %v1474_v17 = vsel %vm4824_vm13, %v1472_v3, %v1473_v4 }
  0xbc   : > { %v729_v41 = vld [vmem:[#allocation2 + $0xb4] sm:$0xf]  ;;  %v730_v55 = vld [vmem:[#allocation2 + $0xb8] sm:$0xf]  ;;  %v4174_v47 = vrot.slane %v1348_v62, 9  ;;  %1560 = vrot.lane.b32.xlu1 %v1467_v2, %s4398_s30  ;;  %v1479_v11 = vrot.slane %v1477_v63, 4  ;;  %v1209_v13 = vpop.permute.xlu1 %1208  ;;  %v1211_v22 = vpop.permute.xlu0 %1210 }
  0xbd   : > { %v1353_v9 = vld [vmem:[#allocation2 + $0x68] sm:$0x1]  ;;  %761 = vst.msk [vmem:[#allocation3 + $0x78] sm:$0xf] %vm170_vm0, %v729_v41  ;;  %762 = vst.msk [vmem:[#allocation3 + $0x7c] sm:$0xf] %vm170_vm0, %v730_v55 }
  0xbe   : > { %v256_v10 = vld [vmem:[%s4534_s28 + $0x78] sm:$0xf]  ;;  %v1480_v12 = vrot.slane %v1350_v60, 5  ;;  %v257_v16 = vld [vmem:[%s4534_s28 + $0x7c] sm:$0xf]  ;;  %v1484_v19 = vrot.slane %v1352_v7, 5  ;;  %v1478_v29 = vsel %vm4824_vm13, %v4174_v47, %v1477_v63 }
  0xbf   : > { %v517_v15 = vshrl.u32 %v256_v10, 16  ;;  %v520_v14 = vshll.u32 %v256_v10, 16  ;;  %v1355_v20 = vld [vmem:[#allocation2 + $0x70] sm:$0xf]  ;;  %1300 = vst.msk [vmem:[#allocation3 + $0x14] sm:$0xf] %vm1294_vm14, %v1209_v13  ;;  %1562 = vrot.lane.b32.xlu0 %v1471_v8, %s4398_s30 }
  0xc0   : > { %v525_v24 = vshrl.u32 %v257_v16, 16  ;;  %v528_v27 = vshll.u32 %v257_v16, 16  ;;  %1301 = vst.msk [vmem:[#allocation3 + $0x18] sm:$0xf] %vm1294_vm14, %v1211_v22  ;;  %v4175_v31 = vrot.slane %v1351_v6, 9  ;;  %1564 = vrot.lane.b32.xlu1 %v1474_v17, %s4398_s30  ;;  %v1487_v34 = vrot.slane %v1353_v9, 5  ;;  %v1213_v37 = vpop.permute.xlu1 %1212  ;;  %v1215_v45 = vpop.permute.xlu0 %1214 }
  0xc1   : > { %v519_v28 = vrot.slane %v517_v15, 7  ;;  %v692_v32 = vld [vmem:[#allocation2 + $0xc0] sm:$0xf]  ;;  %v1491_v36 = vrot.slane %v1355_v20, 5  ;;  %v696_v18 = vld [vmem:[#allocation2 + $0xc8] sm:$0x1]  ;;  %v1481_v42 = vsel %vm4824_vm13, %v1479_v11, %v1480_v12 }
  0xc2   : > { %v527_v33 = vrot.slane %v525_v24, 7  ;;  %v1486_v43 = vrot.slane %v1484_v19, 4  ;;  %v1354_v44 = vld [vmem:[#allocation2 + $0x6c] sm:$0xe]  ;;  %1302 = vst.msk [vmem:[#allocation3 + $0x1c] sm:$0xf] %vm1294_vm14, %v1213_v37  ;;  %v1485_v52 = vsel %vm4824_vm13, %v4175_v31, %v1484_v19 }
  0xc3   : > { %v522_v38 = vor.u32 %v520_v14, %v519_v28  ;;  %v523_v39 = vrot.slane %v519_v28, 4  ;;  %v1356_v25 = vld [vmem:[#allocation2 + $0x74] sm:$0x1]  ;;  %v1358_v61 = vld [vmem:[#allocation2 + $0x7c] sm:$0xf]  ;;  %1566 = vrot.lane.b32.xlu0 %v1478_v29, %s4398_s30  ;;  %v4176_v53 = vrot.slane %v1354_v44, 9 }
  0xc4   : > { %v530_v46 = vor.u32 %v528_v27, %v527_v33  ;;  %v532_v48 = vrot.slane %v527_v33, 4  ;;  %1303 = vst.msk [vmem:[#allocation3 + $0x20] sm:$0xf] %vm1294_vm14, %v1215_v45  ;;  %1568 = vrot.lane.b32.xlu1 %v1481_v42, %s4398_s30  ;;  %v1217_v56 = vpop.permute.xlu1 %1216  ;;  %v1488_v21 = vsel %vm4824_vm13, %v1486_v43, %v1487_v34  ;;  %v1493_v26 = vrot.slane %v1491_v36, 4  ;;  %v1357_v23 = vld [vmem:[#allocation2 + $0x78] sm:$0xe] }
  0xc5   : > { %v693_v49 = vsel %vm4541_vm7, %v522_v38, %v692_v32  ;;  %v1494_v57 = vrot.slane %v1356_v25, 5  ;;  %v1498_v58 = vrot.slane %v1358_v61, 5  ;;  %1304 = vst.msk [vmem:[#allocation3 + $0x24] sm:$0xf] %vm1294_vm14, %v1217_v56  ;;  %v1359_v30 = vld [vmem:[#allocation2 + $0x80] sm:$0x1]  ;;  %v1492_v62 = vsel %vm4824_vm13, %v4176_v53, %v1491_v36 }
  0xc6   : > { %694 = vst [vmem:[#allocation2 + $0xc0] sm:$0xf] %v693_v49  ;;  %v531_v50 = vsel %vm4547_vm8, %v523_v39, %v530_v46  ;;  %v697_v51 = vsel %vm4553_vm9, %v532_v48, %v696_v18  ;;  %v1361_v59 = vld [vmem:[#allocation2 + $0x88] sm:$0xf]  ;;  %v4177_v63 = vrot.slane %v1357_v23, 9  ;;  %v1501_v1 = vrot.slane %v1359_v30, 5 }
  0xc7   : > { %695 = vst.msk [vmem:[#allocation2 + $0xc4] sm:$0xf] %vm170_vm0, %v531_v50  ;;  %698 = vst [vmem:[#allocation2 + $0xc8] sm:$0x1] %v697_v51  ;;  %1570 = vrot.lane.b32.xlu0 %v1485_v52, %s4398_s30  ;;  %v1495_v0 = vsel %vm4824_vm13, %v1493_v26, %v1494_v57  ;;  %v1500_v54 = vrot.slane %v1498_v58, 4  ;;  %v1505_v3 = vrot.slane %v1361_v59, 5 }
  0xc8   : > { %1572 = vrot.lane.b32.xlu1 %v1488_v21, %s4398_s30  ;;  %v1360_v2 = vld [vmem:[#allocation2 + $0x84] sm:$0xe]  ;;  %v1362_v4 = vld [vmem:[#allocation2 + $0x8c] sm:$0x1]  ;;  %v1364_v60 = vld [vmem:[#allocation2 + $0x94] sm:$0xf]  ;;  %v1499_v5 = vsel %vm4824_vm13, %v4177_v63, %v1498_v58 }
  0xc9   : > { %v4178_v6 = vrot.slane %v1360_v2, 9  ;;  %v1502_v7 = vsel %vm4824_vm13, %v1500_v54, %v1501_v1  ;;  %v1507_v41 = vrot.slane %v1505_v3, 4  ;;  %v1508_v55 = vrot.slane %v1362_v4, 5  ;;  %v1363_v8 = vld [vmem:[#allocation2 + $0x90] sm:$0xe]  ;;  %s4098_s28 = sshll.u32 %s163_s27, 4  ;;  %s5743_s28 = int_to_ptr.vmem [resolvable:$true] %s4098_s28 }
  0xca   : > { %v1512_v47 = vrot.slane %v1364_v60, 5  ;;  %v1365_v9 = vld [vmem:[#allocation2 + $0x98] sm:$0x1]  ;;  %v1367_v10 = vld [vmem:[#allocation2 + $0xa0] sm:$0xf]  ;;  %v4179_v12 = vrot.slane %v1363_v8, 9 }
  0xcb   : > { %1574 = vrot.lane.b32.xlu0 %v1492_v62, %s4398_s30  ;;  %v1506_v11 = vsel %vm4824_vm13, %v4178_v6, %v1505_v3  ;;  %v1509_v13 = vsel %vm4824_vm13, %v1507_v41, %v1508_v55  ;;  %v1515_v14 = vrot.slane %v1365_v9, 5  ;;  %v1366_v16 = vld [vmem:[#allocation2 + $0x9c] sm:$0xe]  ;;  %v1519_v17 = vrot.slane %v1367_v10, 5  ;;  %v1368_v19 = vld [vmem:[#allocation2 + $0xa4] sm:$0x1] }
  0xcc   : > { %1576 = vrot.lane.b32.xlu1 %v1495_v0, %s4398_s30  ;;  %v1514_v15 = vrot.slane %v1512_v47, 4  ;;  %v1370_v20 = vld [vmem:[#allocation2 + $0xac] sm:$0xf]  ;;  %v1513_v27 = vsel %vm4824_vm13, %v4179_v12, %v1512_v47  ;;  %v4180_v28 = vrot.slane %v1366_v16, 9  ;;  %v1522_v32 = vrot.slane %v1368_v19, 5  ;;  %s4239_s29 = sshll.u32 %s4448_s16, 9 }
  0xcd   : > { %v1521_v31 = vrot.slane %v1519_v17, 4  ;;  %v1369_v33 = vld [vmem:[#allocation2 + $0xa8] sm:$0xe]  ;;  %v1526_v34 = vrot.slane %v1370_v20, 5  ;;  %v1371_v36 = vld [vmem:[#allocation2 + $0xb0] sm:$0x1] }
  0xce   : > { %v1516_v29 = vsel %vm4824_vm13, %v1514_v15, %v1515_v14  ;;  %v1373_v37 = vld [vmem:[#allocation2 + $0xb8] sm:$0xf]  ;;  %v1520_v39 = vsel %vm4824_vm13, %v4180_v28, %v1519_v17  ;;  %v4181_v18 = vrot.slane %v1369_v33, 9  ;;  %v1529_v44 = vrot.slane %v1371_v36, 5  ;;  %v1372_v45 = vld [vmem:[#allocation2 + $0xb4] sm:$0xe] }
  0xcf   : > { %1578 = vrot.lane.b32.xlu0 %v1499_v5, %s4398_s30  ;;  %v1523_v42 = vsel %vm4824_vm13, %v1521_v31, %v1522_v32  ;;  %v1528_v43 = vrot.slane %v1526_v34, 4  ;;  %v1533_v46 = vrot.slane %v1373_v37, 5  ;;  %v1374_v25 = vld [vmem:[#allocation2 + $0xbc] sm:$0x1]  ;;  %v4182_v50 = vrot.slane %v1372_v45, 9  ;;  %s4405_s16 = smov [#allocation4]  }
  0xd0   : > { %1580 = vrot.lane.b32.xlu1 %v1502_v7, %s4398_s30  ;;  %v1527_v49 = vsel %vm4824_vm13, %v4181_v18, %v1526_v34  ;;  %v1536_v53 = vrot.slane %v1374_v25, 5  ;;  %v1667_v58 = vld [vmem:[#allocation2 + $0xc] sm:$0xf]  ;;  %v1668_v30 = vld [vmem:[#allocation2 + $0x10] sm:$0xf]  ;;  %vm1827_vm0 = vcmask 257216  }
  0xd1   : > { %v1219_v22 = vpop.permute.xlu0 %1218  ;;  %v1530_v51 = vsel %vm4824_vm13, %v1528_v43, %v1529_v44  ;;  %v1535_v52 = vrot.slane %v1533_v46, 4  ;;  %v1534_v26 = vsel %vm4824_vm13, %v4182_v50, %v1533_v46  ;;  %v1669_v59 = vld [vmem:[#allocation2 + $0x18] sm:$0xf]  ;;  %v1670_v62 = vld [vmem:[#allocation2 + $0x1c] sm:$0xf]  ;;  %vm2388_vm1 = vcmask 322816  }
  0xd2   : > { %1305 = vst.msk [vmem:[#allocation3 + $0x28] sm:$0xf] %vm1294_vm14, %v1219_v22  ;;  %v1221_v24 = vpop.permute.xlu1 %1220  ;;  %v1671_v63 = vld [vmem:[#allocation2 + $0x24] sm:$0xf]  ;;  %v1672_v0 = vld [vmem:[#allocation2 + $0x28] sm:$0xf] }
  0xd3   : > { %1582 = vrot.lane.b32.xlu0 %v1506_v11, %s4398_s30  ;;  %1306 = vst.msk [vmem:[#allocation3 + $0x2c] sm:$0xf] %vm1294_vm14, %v1221_v24  ;;  %v1537_v57 = vsel %vm4824_vm13, %v1535_v52, %v1536_v53  ;;  %v1673_v1 = vld [vmem:[#allocation2 + $0x30] sm:$0xf]  ;;  %v1674_v2 = vld [vmem:[#allocation2 + $0x34] sm:$0xf] }
  0xd4   : > { %1584 = vrot.lane.b32.xlu1 %v1509_v13, %s4398_s30  ;;  %v1675_v4 = vld [vmem:[#allocation2 + $0x3c] sm:$0xf]  ;;  %v1676_v60 = vld [vmem:[#allocation2 + $0x40] sm:$0xf]  ;;  %v1677_v7 = vld [vmem:[#allocation2 + $0x48] sm:$0xf] }
  0xd5   : > { %v1223_v38 = vpop.permute.xlu0 %1222  ;;  %v1678_v41 = vld [vmem:[#allocation2 + $0x4c] sm:$0xf]  ;;  %v1679_v47 = vld [vmem:[#allocation2 + $0x54] sm:$0xf]  ;;  %v1680_v9 = vld [vmem:[#allocation2 + $0x58] sm:$0xf] }
  0xd6   : > { %1307 = vst.msk [vmem:[#allocation3 + $0x30] sm:$0xf] %vm1294_vm14, %v1223_v38  ;;  %v1681_v11 = vld [vmem:[#allocation2 + $0x60] sm:$0xf]  ;;  %v1682_v13 = vld [vmem:[#allocation2 + $0x64] sm:$0xf] }
  0xd7   : > { %1586 = vrot.lane.b32.xlu0 %v1513_v27, %s4398_s30  ;;  %v1683_v15 = vld [vmem:[#allocation2 + $0x6c] sm:$0xf]  ;;  %v1684_v14 = vld [vmem:[#allocation2 + $0x70] sm:$0xf]  ;;  %v1685_v16 = vld [vmem:[#allocation2 + $0x78] sm:$0xf] }
  0xd8   : > { %1588 = vrot.lane.b32.xlu1 %v1516_v29, %s4398_s30  ;;  %v1225_v48 = vpop.permute.xlu1 %1224  ;;  %v1686_v17 = vld [vmem:[#allocation2 + $0x7c] sm:$0xf]  ;;  %v1881_v20 = vld [vmem:[#allocation2 + $0x60] sm:$0xf]  ;;  %v1882_v22 = vld [vmem:[#allocation2 + $0x64] sm:$0xf] }
  0xd9   : > { %1308 = vst.msk [vmem:[#allocation3 + $0x34] sm:$0xf] %vm1294_vm14, %v1225_v48  ;;  %v1687_v27 = vld [vmem:[#allocation2 + $0x84] sm:$0xf]  ;;  %v2077_v28 = vshrl.u32 %v1881_v20, 16  ;;  %v2080_v29 = vshll.u32 %v1881_v20, 16 }
  0xda   : > { %v1227_v61 = vpop.permute.xlu0 %1226  ;;  %v1688_v31 = vld [vmem:[#allocation2 + $0x88] sm:$0xf]  ;;  %v2086_v32 = vshll.u32 %v1882_v22, 16  ;;  %v2090_v33 = vshrl.u32 %v1882_v22, 16  ;;  %v1905_v34 = vld [vmem:[#allocation2 + $0xc0] sm:$0xf] }
  0xdb   : > { %1590 = vrot.lane.b32.xlu0 %v1520_v39, %s4398_s30  ;;  %1309 = vst.msk [vmem:[#allocation3 + $0x38] sm:$0xf] %vm1294_vm14, %v1227_v61  ;;  %v1906_v36 = vld [vmem:[#allocation2 + $0xc4] sm:$0xf]  ;;  %v1689_v37 = vld [vmem:[#allocation2 + $0x90] sm:$0xf] }
  0xdc   : > { %1592 = vrot.lane.b32.xlu1 %v1523_v42, %s4398_s30  ;;  %v1229_v56 = vpop.permute.xlu1 %1228  ;;  %v2079_v38 = vrot.slane %v2077_v28, 4  ;;  %v2082_v39 = vrot.slane %v2080_v29, 5  ;;  %v2269_v18 = vshrl.u32 %v1905_v34, 16  ;;  %v2272_v42 = vshll.u32 %v1905_v34, 16  ;;  %v1690_v44 = vld [vmem:[#allocation2 + $0x94] sm:$0xf] }
  0xdd   : > { %1310 = vst.msk [vmem:[#allocation3 + $0x3c] sm:$0xf] %vm1294_vm14, %v1229_v56  ;;  %v2088_v45 = vrot.slane %v2086_v32, 5  ;;  %v2092_v46 = vrot.slane %v2090_v33, 4  ;;  %v2278_v48 = vshll.u32 %v1906_v36, 16  ;;  %v2282_v25 = vshrl.u32 %v1906_v36, 16 }
  0xde   : > { %v1231_v21 = vpop.permute.xlu0 %1230  ;;  %v1691_v50 = vld [vmem:[#allocation2 + $0x9c] sm:$0xf]  ;;  %v2271_v52 = vrot.slane %v2269_v18, 4  ;;  %v2274_v53 = vrot.slane %v2272_v42, 5  ;;  %v2974_v29 = vld [vmem:[#allocation2 + $0x70] sm:$0xf] }
  0xdf   : > { %1594 = vrot.lane.b32.xlu0 %v1527_v49, %s4398_s30  ;;  %1311 = vst.msk [vmem:[#allocation3 + $0x40] sm:$0xf] %vm1294_vm14, %v1231_v21  ;;  %v1883_v49 = vld [vmem:[#allocation2 + $0x68] sm:$0x1]  ;;  %v1692_v21 = vld [vmem:[#allocation2 + $0xa0] sm:$0xf] }
  0xe0   : > { %1596 = vrot.lane.b32.xlu1 %v1530_v51, %s4398_s30  ;;  %v1233_v23 = vpop.permute.xlu1 %1232  ;;  %v2083_v51 = vor.u32 %v2082_v39, %v2079_v38  ;;  %v2468_v32 = vld [vmem:[#allocation2 + $0xc8] sm:$0x1]  ;;  %v3178_v38 = vshll.u32 %v2974_v29, 16  ;;  %vm2725_vm2 = vcmask 388416   ;;  %vm2919_vm3 = vcmask 454016  }
  0xe1   : > { %1312 = vst.msk [vmem:[#allocation3 + $0x44] sm:$0xf] %vm1294_vm14, %v1233_v23  ;;  %v2280_v23 = vrot.slane %v2278_v48, 5  ;;  %v2998_v48 = vld [vmem:[#allocation2 + $0xd0] sm:$0xf]  ;;  %vm3480_vm4 = vcmask 519616  }
  0xe2   : > { %vm3817_vm5 = vcmask 585216   ;;  %vm3981_vm6 = vcmask 588800  }
  0xe3   : > { %1598 = vrot.lane.b32.xlu0 %v1534_v26, %s4398_s30  ;;  %v2093_v26 = vor.u32 %v2092_v46, %v2088_v45 }
  0xe4   : > { %1600 = vrot.lane.b32.xlu1 %v1537_v57, %s4398_s30  ;;  %v2096_v57 = vshll.u32 %v1883_v49, 16 }
  0xe7   : > { %1731 = vrot.lane.b32.xlu0 %v1667_v58, %s4399_s4  ;;  %v2284_v58 = vrot.slane %v2282_v25, 4 }
  0xe8   : > { %1733 = vrot.lane.b32.xlu1 %v1668_v30, %s4399_s4 }
  0xeb   : > { %1735 = vrot.lane.b32.xlu0 %v1669_v59, %s4399_s4  ;;  %v1907_v59 = vld [vmem:[#allocation2 + $0xc8] sm:$0x1] }
  0xec   : > { %1737 = vrot.lane.b32.xlu1 %v1670_v62, %s4399_s4  ;;  %v1697_v62 = vld [vmem:[#allocation2 + $0xc0] sm:$0xf] }
  0xed   : > { %v1235_v54 = vpop.permute.xlu0 %1234 }
  0xee   : > { %1313 = vst.msk [vmem:[#allocation3 + $0x48] sm:$0xf] %vm1294_vm14, %v1235_v54 }
  0xef   : > { %1739 = vrot.lane.b32.xlu0 %v1671_v63, %s4399_s4  ;;  %v2084_v63 = vrot.slane %v2083_v51, 4 }
  0xf0   : > { %1741 = vrot.lane.b32.xlu1 %v1672_v0, %s4399_s4  ;;  %v2275_v0 = vor.u32 %v2274_v53, %v2271_v52 }
  0xf1   : > { %v1237_v3 = vpop.permute.xlu1 %1236 }
  0xf2   : > { %1314 = vst.msk [vmem:[#allocation3 + $0x4c] sm:$0xf] %vm1294_vm14, %v1237_v3  ;;  %v2098_v3 = vrot.slane %v2096_v57, 5  ;;  %v3374_v57 = vshrl.u32 %v2998_v48, 16 }
  0xf3   : > { %1743 = vrot.lane.b32.xlu0 %v1673_v1, %s4399_s4  ;;  %v1698_v1 = vld [vmem:[#allocation2 + $0xc4] sm:$0xf] }
  0xf4   : > { %1745 = vrot.lane.b32.xlu1 %v1674_v2, %s4399_s4  ;;  %v2094_v2 = vrot.slane %v2093_v26, 4  ;;  %v3370_v26 = vshll.u32 %v2998_v48, 16 }
  0xf5   : > { %v1239_v5 = vpop.permute.xlu0 %1238  ;;  %v1241_v6 = vpop.permute.xlu1 %1240 }
  0xf6   : > { %1315 = vst.msk [vmem:[#allocation3 + $0x50] sm:$0xf] %vm1294_vm14, %v1239_v5  ;;  %1316 = vst.msk [vmem:[#allocation3 + $0x54] sm:$0xf] %vm1294_vm14, %v1241_v6  ;;  %v2443_v6 = vld [vmem:[#allocation2 + $0x64] sm:$0xf] }
  0xf7   : > { %1747 = vrot.lane.b32.xlu0 %v1675_v4, %s4399_s4  ;;  %v2285_v4 = vor.u32 %v2284_v58, %v2280_v23  ;;  %v2975_v58 = vld [vmem:[#allocation2 + $0x74] sm:$0x1] }
  0xf8   : > { %1749 = vrot.lane.b32.xlu1 %v1676_v60, %s4399_s4  ;;  %v2288_v60 = vshll.u32 %v1907_v59, 16 }
  0xf9   : > { %v1243_v55 = vpop.permute.xlu0 %1242  ;;  %v1245_v8 = vpop.permute.xlu1 %1244 }
  0xfa   : > { %1317 = vst.msk [vmem:[#allocation3 + $0x58] sm:$0xf] %vm1294_vm14, %v1243_v55  ;;  %1318 = vst.msk [vmem:[#allocation3 + $0x5c] sm:$0xf] %vm1294_vm14, %v1245_v8  ;;  %v2442_v55 = vld [vmem:[#allocation2 + $0x60] sm:$0xe] }
  0xfb   : > { %1751 = vrot.lane.b32.xlu0 %v1677_v7, %s4399_s4  ;;  %v2089_v7 = vsel %vm4560_vm10, %v2084_v63, %v2088_v45  ;;  %v2997_v45 = vld [vmem:[#allocation2 + $0xcc] sm:$0xf] }
  0xfc   : > { %1753 = vrot.lane.b32.xlu1 %v1678_v41, %s4399_s4  ;;  %v2276_v41 = vrot.slane %v2275_v0, 4  ;;  %v3361_v51 = vshrl.u32 %v2997_v45, 16  ;;  %v3364_v52 = vshll.u32 %v2997_v45, 16 }
  0xfd   : > { %v1247_v10 = vpop.permute.xlu0 %1246 }
  0xfe   : > { %1319 = vst.msk [vmem:[#allocation3 + $0x60] sm:$0xf] %vm1294_vm14, %v1247_v10  ;;  %v2290_v10 = vrot.slane %v2288_v60, 5  ;;  %v3366_v63 = vrot.slane %v3364_v52, 5 }
  0xff   : > { %1755 = vrot.lane.b32.xlu0 %v1679_v47, %s4399_s4  ;;  %v2099_v47 = vsel %vm4560_vm10, %v2094_v2, %v2098_v3  ;;  %v3188_v2 = vshll.u32 %v2975_v58, 16  ;;  %v3372_v3 = vrot.slane %v3370_v26, 5 }
 0x100   : > { %1757 = vrot.lane.b32.xlu1 %v1680_v9, %s4399_s4  ;;  %v1249_v12 = vpop.permute.xlu1 %1248  ;;  %v2286_v9 = vrot.slane %v2285_v4, 4  ;;  %v3376_v4 = vrot.slane %v3374_v57, 4 }
 0x101   : > { %1320 = vst.msk [vmem:[#allocation3 + $0x64] sm:$0xf] %vm1294_vm14, %v1249_v12  ;;  %v2444_v12 = vld [vmem:[#allocation2 + $0x68] sm:$0x1] }
 0x102   : > { %v2291_v22 = vsel %vm4560_vm10, %v2286_v9, %v2290_v10  ;;  %v3190_v10 = vrot.slane %v3188_v2, 5 }
 0x103   : > { %1759 = vrot.lane.b32.xlu0 %v1681_v11, %s4399_s4  ;;  %v2568_v11 = vrot.slane %v2443_v6, 5  ;;  %v2789_v6 = vld [vmem:[#allocation2 + $0xcc] sm:$0xf] }
 0x104   : > { %1761 = vrot.lane.b32.xlu1 %v1682_v13, %s4399_s4 }
 0x107   : > { %1763 = vrot.lane.b32.xlu0 %v1683_v15, %s4399_s4  ;;  %v2467_v15 = vld [vmem:[#allocation2 + $0xc4] sm:$0xf] }
 0x108   : > { %1765 = vrot.lane.b32.xlu1 %v1684_v14, %s4399_s4  ;;  %v2281_v14 = vsel %vm4560_vm10, %v2276_v41, %v2280_v23  ;;  %v2624_v28 = vrot.slane %v2467_v15, 5  ;;  %v3534_v15 = vld [vmem:[#allocation2 + $0x6c] sm:$0xe] }
 0x109   : > { %v1251_v19 = vpop.permute.xlu0 %1250 }
 0x10a   : > { %1321 = vst.msk [vmem:[#allocation3 + $0x68] sm:$0xf] %vm1294_vm14, %v1251_v19  ;;  %v2973_v19 = vld [vmem:[#allocation2 + $0x6c] sm:$0xf]  ;;  %v2626_v42 = vrot.slane %v2624_v28, 4 }
 0x10b   : > { %1767 = vrot.lane.b32.xlu0 %v1685_v16, %s4399_s4  ;;  %v4190_v16 = vrot.slane %v2442_v55, 9  ;;  %v3169_v33 = vshrl.u32 %v2973_v19, 16  ;;  %v3172_v34 = vshll.u32 %v2973_v19, 16  ;;  %v3535_v55 = vld [vmem:[#allocation2 + $0x70] sm:$0xf] }
 0x10c   : > { %1769 = vrot.lane.b32.xlu1 %v1686_v17, %s4399_s4  ;;  %v1253_v24 = vpop.permute.xlu1 %1252  ;;  %v2571_v17 = vrot.slane %v2444_v12, 5  ;;  %v3536_v19 = vld [vmem:[#allocation2 + $0x74] sm:$0x1] }
 0x10d   : > { %1322 = vst.msk [vmem:[#allocation3 + $0x6c] sm:$0xf] %vm1294_vm14, %v1253_v24  ;;  %v2570_v24 = vrot.slane %v2568_v11, 4  ;;  %v2569_v36 = vsel %vm4824_vm13, %v4190_v16, %v2568_v11  ;;  %v3171_v25 = vrot.slane %v3169_v33, 4  ;;  %v3377_v11 = vor.u32 %v3376_v4, %v3372_v3  ;;  %v1879_v33 = vld [vmem:[#allocation2 + $0x58] sm:$0xf] }
 0x10e   : > { %v2066_v48 = vshrl.u32 %v1879_v33, 16 }
 0x10f   : > { %1771 = vrot.lane.b32.xlu0 %v1687_v27, %s4399_s4  ;;  %v2466_v27 = vld [vmem:[#allocation2 + $0xc0] sm:$0xe]  ;;  %v2572_v18 = vsel %vm4824_vm13, %v2570_v24, %v2571_v17 }
 0x110   : > { %1773 = vrot.lane.b32.xlu1 %v1688_v31, %s4399_s4 }
 0x111   : > { %v1255_v43 = vpop.permute.xlu0 %1254 }
 0x112   : > { %1323 = vst.msk [vmem:[#allocation3 + $0x70] sm:$0xf] %vm1294_vm14, %v1255_v43  ;;  %v1257_v61 = vpop.permute.xlu1 %1256  ;;  %v2627_v43 = vrot.slane %v2468_v32, 5  ;;  %v4206_v32 = vrot.slane %v3534_v15, 9 }
 0x113   : > { %1324 = vst.msk [vmem:[#allocation3 + $0x74] sm:$0xf] %vm1294_vm14, %v1257_v61  ;;  %1775 = vrot.lane.b32.xlu0 %v1689_v37, %s4399_s4  ;;  %v4198_v37 = vrot.slane %v2466_v27, 9  ;;  %v3174_v61 = vrot.slane %v3172_v34, 5  ;;  %v3378_v27 = vrot.slane %v3377_v11, 4 }
 0x114   : > { %1777 = vrot.lane.b32.xlu1 %v1690_v44, %s4399_s4  ;;  %v3182_v44 = vshrl.u32 %v2974_v29, 16  ;;  %v1878_v29 = vld [vmem:[#allocation2 + $0x54] sm:$0xf] }
 0x115   : > { %v1259_v56 = vpop.permute.xlu0 %1258  ;;  %v2625_v49 = vsel %vm4824_vm13, %v4198_v37, %v2624_v28  ;;  %v3175_v59 = vor.u32 %v3174_v61, %v3171_v25  ;;  %v1902_v25 = vld [vmem:[#allocation2 + $0xb4] sm:$0xf] }
 0x116   : > { %1325 = vst.msk [vmem:[#allocation3 + $0x78] sm:$0xf] %vm1294_vm14, %v1259_v56  ;;  %v1261_v30 = vpop.permute.xlu1 %1260  ;;  %v2628_v56 = vsel %vm4824_vm13, %v2626_v42, %v2627_v43  ;;  %v2053_v42 = vshrl.u32 %v1878_v29, 16  ;;  %v2056_v43 = vshll.u32 %v1878_v29, 16  ;;  %v2245_v57 = vshrl.u32 %v1902_v25, 16 }
 0x117   : > { %1326 = vst.msk [vmem:[#allocation3 + $0x7c] sm:$0xf] %vm1294_vm14, %v1261_v30  ;;  %1779 = vrot.lane.b32.xlu0 %v1691_v50, %s4399_s4  ;;  %v5054_v50 = vrot.slane %v3178_v38, 5  ;;  %v2773_v30 = vld [vmem:[#allocation2 + $0x6c] sm:$0xf] }
 0x118   : > { %1781 = vrot.lane.b32.xlu1 %v1692_v21, %s4399_s4  ;;  %v3184_v21 = vrot.slane %v3182_v44, 4  ;;  %v2058_v26 = vrot.slane %v2056_v43, 5  ;;  %v2247_v4 = vrot.slane %v2245_v57, 4  ;;  %v2465_v43 = vld [vmem:[#allocation2 + $0xbc] sm:$0x1] }
 0x119   : > { %v1539_v54 = vpop.permute.xlu0 %1538 }
 0x11a   : > { %1635 = vst.msk [vmem:[#allocation3] sm:$0xf] %vm1634_vm15, %v1539_v54  ;;  %v1541_v5 = vpop.permute.xlu1 %1540  ;;  %v2774_v54 = vld [vmem:[#allocation2 + $0x70] sm:$0xf] }
 0x11b   : > { %1636 = vst.msk [vmem:[#allocation3 + $0x4] sm:$0xf] %vm1634_vm15, %v1541_v5  ;;  %1791 = vrot.lane.b32.xlu0 %v1697_v62, %s4399_s4  ;;  %v3363_v62 = vrot.slane %v3361_v51, 4  ;;  %v2999_v5 = vld [vmem:[#allocation2 + $0xd4] sm:$0x1] }
 0x11c   : > { %1793 = vrot.lane.b32.xlu1 %v1698_v1, %s4399_s4  ;;  %v3185_v1 = vor.u32 %v3184_v21, %v5054_v50  ;;  %v3380_v12 = vshll.u32 %v2999_v5, 16  ;;  %v2055_v21 = vrot.slane %v2053_v42, 4  ;;  %v2463_v42 = vld [vmem:[#allocation2 + $0xb4] sm:$0xe] }
 0x11d   : > { %v1543_v8 = vpop.permute.xlu0 %1542  ;;  %v3367_v41 = vor.u32 %v3366_v63, %v3363_v62 }
 0x11e   : > { %1637 = vst.msk [vmem:[#allocation3 + $0x8] sm:$0xf] %vm1634_vm15, %v1543_v8  ;;  %v1545_v13 = vpop.permute.xlu1 %1544  ;;  %v3186_v9 = vrot.slane %v3185_v1, 4  ;;  %v3382_v28 = vrot.slane %v3380_v12, 5 }
 0x11f   : > { %1638 = vst.msk [vmem:[#allocation3 + $0xc] sm:$0xf] %vm1634_vm15, %v1545_v13  ;;  %2320 = vrot.lane.b32.xlu0 %v2089_v7, %s4400_s5  ;;  %v3176_v7 = vrot.slane %v3175_v59, 4  ;;  %v3368_v17 = vrot.slane %v3367_v41, 4  ;;  %v2068_v59 = vrot.slane %v2066_v48, 4 }
 0x120   : > { %2322 = vrot.lane.b32.xlu1 %v2099_v47, %s4400_s5  ;;  %v2790_v47 = vld [vmem:[#allocation2 + $0xd0] sm:$0xf]  ;;  %v3191_v24 = vsel %vm4560_vm10, %v3186_v9, %v3190_v10  ;;  %v3383_v45 = vsel %vm4560_vm10, %v3378_v27, %v3382_v28  ;;  %v1695_v9 = vld [vmem:[#allocation2 + $0xb4] sm:$0xf]  ;;  %v2464_v27 = vld [vmem:[#allocation2 + $0xb8] sm:$0xf] }
 0x121   : > { %v1547_v20 = vpop.permute.xlu0 %1546  ;;  %v3181_v16 = vsel %vm4560_vm10, %v3176_v7, %v5054_v50  ;;  %v3373_v38 = vsel %vm4560_vm10, %v3368_v17, %v3372_v3  ;;  %v1903_v50 = vld [vmem:[#allocation2 + $0xb8] sm:$0xf]  ;;  %v2059_v3 = vor.u32 %v2058_v26, %v2055_v21 }
 0x122   : > { %1639 = vst.msk [vmem:[#allocation3 + $0x10] sm:$0xf] %vm1634_vm15, %v1547_v20  ;;  %v1549_v31 = vpop.permute.xlu1 %1548  ;;  %v3559_v20 = vld [vmem:[#allocation2 + $0xd0] sm:$0xf]  ;;  %v2254_v62 = vshll.u32 %v1903_v50, 16  ;;  %v2258_v63 = vshrl.u32 %v1903_v50, 16 }
 0x123   : > { %1640 = vst.msk [vmem:[#allocation3 + $0x14] sm:$0xf] %vm1634_vm15, %v1549_v31  ;;  %2352 = vrot.lane.b32.xlu0 %v2281_v14, %s4400_s5  ;;  %v3660_v14 = vrot.slane %v3535_v55, 5  ;;  %v3716_v37 = vrot.slane %v3559_v20, 5  ;;  %v2060_v10 = vrot.slane %v2059_v3, 4  ;;  %v4197_v50 = vrot.slane %v2463_v42, 9 }
 0x124   : > { %2354 = vrot.lane.b32.xlu1 %v2291_v22, %s4400_s5  ;;  %v2256_v41 = vrot.slane %v2254_v62, 5  ;;  %v2260_v55 = vrot.slane %v2258_v63, 4  ;;  %v2440_v20 = vld [vmem:[#allocation2 + $0x58] sm:$0xf]  ;;  %v2995_v62 = vld [vmem:[#allocation2 + $0xc4] sm:$0xf] }
 0x125   : > { %v1551_v39 = vpop.permute.xlu0 %1550  ;;  %v3662_v34 = vrot.slane %v3660_v14, 4  ;;  %v3533_v42 = vld [vmem:[#allocation2 + $0x68] sm:$0x1] }
 0x126   : > { %1641 = vst.msk [vmem:[#allocation3 + $0x18] sm:$0xf] %vm1634_vm15, %v1551_v39  ;;  %v1553_v46 = vpop.permute.xlu1 %1552  ;;  %v3558_v39 = vld [vmem:[#allocation2 + $0xcc] sm:$0xe] }
 0x127   : > { %1642 = vst.msk [vmem:[#allocation3 + $0x1c] sm:$0xf] %vm1634_vm15, %v1553_v46  ;;  %2657 = vrot.lane.b32.xlu0 %v2569_v36, %s4401_s6  ;;  %v3663_v36 = vrot.slane %v3536_v19, 5  ;;  %v2062_v46 = vshll.u32 %v1879_v33, 16  ;;  %v4214_v52 = vrot.slane %v3558_v39, 9 }
 0x128   : > { %2659 = vrot.lane.b32.xlu1 %v2572_v18, %s4401_s6  ;;  %v3560_v18 = vld [vmem:[#allocation2 + $0xd4] sm:$0x1]  ;;  %v2439_v33 = vld [vmem:[#allocation2 + $0x54] sm:$0xe] }
 0x129   : > { %v1555_v53 = vpop.permute.xlu0 %1554  ;;  %v3664_v51 = vsel %vm4824_vm13, %v3662_v34, %v3663_v36  ;;  %v3717_v1 = vsel %vm4824_vm13, %v4214_v52, %v3716_v37  ;;  %v2561_v34 = vrot.slane %v2440_v20, 5  ;;  %v2620_v52 = vrot.slane %v2465_v43, 5  ;;  %v2787_v20 = vld [vmem:[#allocation2 + $0xc0] sm:$0xf]  ;;  %v3556_v43 = vld [vmem:[#allocation2 + $0xc4] sm:$0xf] }
 0x12a   : > { %1643 = vst.msk [vmem:[#allocation3 + $0x20] sm:$0xf] %vm1634_vm15, %v1555_v53  ;;  %v1557_v23 = vpop.permute.xlu1 %1556  ;;  %v3718_v53 = vrot.slane %v3716_v37, 4  ;;  %v2441_v37 = vld [vmem:[#allocation2 + $0x5c] sm:$0x1] }
 0x12b   : > { %1644 = vst.msk [vmem:[#allocation3 + $0x24] sm:$0xf] %vm1634_vm15, %v1557_v23  ;;  %2689 = vrot.lane.b32.xlu0 %v2625_v49, %s4401_s6  ;;  %v3661_v49 = vsel %vm4824_vm13, %v4206_v32, %v3660_v14  ;;  %v2248_v23 = vshll.u32 %v1902_v25, 16  ;;  %v2564_v48 = vrot.slane %v2441_v37, 5  ;;  %v2970_v25 = vld [vmem:[#allocation2 + $0x60] sm:$0xf] }
 0x12c   : > { %2691 = vrot.lane.b32.xlu1 %v2628_v56, %s4401_s6  ;;  %v3719_v56 = vrot.slane %v3560_v18, 5  ;;  %v4189_v18 = vrot.slane %v2439_v33, 9  ;;  %v3148_v21 = vshll.u32 %v2970_v25, 16  ;;  %v3531_v37 = vld [vmem:[#allocation2 + $0x60] sm:$0xe] }
 0x12d   : > { %v1559_v0 = vpop.permute.xlu0 %1558 }
 0x12e   : > { %1645 = vst.msk [vmem:[#allocation3 + $0x28] sm:$0xf] %vm1634_vm15, %v1559_v0  ;;  %v1561_v60 = vpop.permute.xlu1 %1560  ;;  %v3720_v2 = vsel %vm4824_vm13, %v3718_v53, %v3719_v56  ;;  %v2562_v53 = vsel %vm4824_vm13, %v4189_v18, %v2561_v34  ;;  %v3145_v56 = vshrl.u32 %v2970_v25, 16  ;;  %v1875_v25 = vld [vmem:[#allocation2 + $0x48] sm:$0xf] }
 0x12f   : > { %1646 = vst.msk [vmem:[#allocation3 + $0x2c] sm:$0xf] %vm1634_vm15, %v1561_v60  ;;  %2851 = vrot.lane.b32.xlu0 %v2773_v30, %s4402_s7  ;;  %v2064_v30 = vrot.slane %v2062_v46, 5  ;;  %v2250_v60 = vrot.slane %v2248_v23, 5  ;;  %v2563_v46 = vrot.slane %v2561_v34, 4 }
 0x130   : > { %2853 = vrot.lane.b32.xlu1 %v2774_v54, %s4402_s7  ;;  %v1880_v54 = vld [vmem:[#allocation2 + $0x5c] sm:$0x1] }
 0x131   : > { %v1563_v8 = vpop.permute.xlu0 %1562  ;;  %v2072_v7 = vshll.u32 %v1880_v54, 16  ;;  %v2251_v11 = vor.u32 %v2250_v60, %v2247_v4  ;;  %v2565_v57 = vsel %vm4824_vm13, %v2563_v46, %v2564_v48  ;;  %v3147_v54 = vrot.slane %v3145_v56, 4 }
 0x132   : > { %1647 = vst.msk [vmem:[#allocation3 + $0x30] sm:$0xf] %vm1634_vm15, %v1563_v8  ;;  %v1565_v13 = vpop.permute.xlu1 %1564 }
 0x133   : > { %1648 = vst.msk [vmem:[#allocation3 + $0x34] sm:$0xf] %vm1634_vm15, %v1565_v13  ;;  %2883 = vrot.lane.b32.xlu0 %v2789_v6, %s4402_s7  ;;  %v2069_v6 = vor.u32 %v2068_v59, %v2064_v30  ;;  %v1696_v13 = vld [vmem:[#allocation2 + $0xb8] sm:$0xf]  ;;  %v2074_v14 = vrot.slane %v2072_v7, 5  ;;  %v3350_v7 = vshrl.u32 %v2995_v62, 16 }
 0x134   : > { %2885 = vrot.lane.b32.xlu1 %v2790_v47, %s4402_s7  ;;  %v1904_v47 = vld [vmem:[#allocation2 + $0xbc] sm:$0x1] }
 0x135   : > { %v1567_v22 = vpop.permute.xlu0 %1566  ;;  %v2070_v15 = vrot.slane %v2069_v6, 4  ;;  %v2264_v17 = vshll.u32 %v1904_v47, 16  ;;  %v3346_v6 = vshll.u32 %v2995_v62, 16 }
 0x136   : > { %1649 = vst.msk [vmem:[#allocation3 + $0x38] sm:$0xf] %vm1634_vm15, %v1567_v22  ;;  %v1569_v31 = vpop.permute.xlu1 %1568  ;;  %v2065_v22 = vsel %vm4560_vm10, %v2060_v10, %v2064_v30  ;;  %v2994_v30 = vld [vmem:[#allocation2 + $0xc0] sm:$0xf] }
 0x137   : > { %1650 = vst.msk [vmem:[#allocation3 + $0x3c] sm:$0xf] %vm1634_vm15, %v1569_v31  ;;  %3412 = vrot.lane.b32.xlu0 %v3181_v16, %s4403_s8  ;;  %v2261_v16 = vor.u32 %v2260_v55, %v2256_v41  ;;  %v2075_v29 = vsel %vm4560_vm10, %v2070_v15, %v2074_v14  ;;  %v2266_v32 = vrot.slane %v2264_v17, 5  ;;  %v3340_v3 = vshll.u32 %v2994_v30, 16  ;;  %v2972_v55 = vld [vmem:[#allocation2 + $0x68] sm:$0x1] }
 0x138   : > { %3414 = vrot.lane.b32.xlu1 %v3191_v24, %s4403_s8  ;;  %v2252_v24 = vrot.slane %v2251_v11, 4  ;;  %v3164_v15 = vshll.u32 %v2972_v55, 16  ;;  %v3348_v14 = vrot.slane %v3346_v6, 5 }
 0x139   : > { %v1571_v44 = vpop.permute.xlu0 %1570  ;;  %v2262_v31 = vrot.slane %v2261_v16, 4  ;;  %v3342_v10 = vrot.slane %v3340_v3, 5  ;;  %v3352_v16 = vrot.slane %v3350_v7, 4 }
 0x13a   : > { %1651 = vst.msk [vmem:[#allocation3 + $0x40] sm:$0xf] %vm1634_vm15, %v1571_v44  ;;  %v1573_v61 = vpop.permute.xlu1 %1572  ;;  %v2257_v39 = vsel %vm4560_vm10, %v2252_v24, %v2256_v41 }
 0x13b   : > { %1652 = vst.msk [vmem:[#allocation3 + $0x44] sm:$0xf] %vm1634_vm15, %v1573_v61  ;;  %3444 = vrot.lane.b32.xlu0 %v3373_v38, %s4403_s8  ;;  %v2617_v38 = vrot.slane %v2464_v27, 5  ;;  %v3532_v27 = vld [vmem:[#allocation2 + $0x64] sm:$0xf]  ;;  %v3353_v33 = vor.u32 %v3352_v16, %v3348_v14 }
 0x13c   : > { %3446 = vrot.lane.b32.xlu1 %v3383_v45, %s4403_s8  ;;  %v2267_v45 = vsel %vm4560_vm10, %v2262_v31, %v2266_v32  ;;  %v3166_v32 = vrot.slane %v3164_v15, 5 }
 0x13d   : > { %v1575_v58 = vpop.permute.xlu0 %1574  ;;  %v2618_v63 = vsel %vm4824_vm13, %v4197_v50, %v2617_v38  ;;  %v3354_v46 = vrot.slane %v3353_v33, 4  ;;  %v1876_v50 = vld [vmem:[#allocation2 + $0x4c] sm:$0xf] }
 0x13e   : > { %1653 = vst.msk [vmem:[#allocation3 + $0x48] sm:$0xf] %vm1634_vm15, %v1575_v58  ;;  %v1577_v0 = vpop.permute.xlu1 %1576  ;;  %v2042_v62 = vshrl.u32 %v1876_v50, 16 }
 0x13f   : > { %1654 = vst.msk [vmem:[#allocation3 + $0x4c] sm:$0xf] %vm1634_vm15, %v1577_v0  ;;  %3749 = vrot.lane.b32.xlu0 %v3661_v49, %s4404_s9  ;;  %v2971_v49 = vld [vmem:[#allocation2 + $0x64] sm:$0xf] }
 0x140   : > { %3751 = vrot.lane.b32.xlu1 %v3664_v51, %s4404_s9  ;;  %v2619_v51 = vrot.slane %v2617_v38, 4  ;;  %v3154_v23 = vshll.u32 %v2971_v49, 16  ;;  %v3158_v58 = vshrl.u32 %v2971_v49, 16  ;;  %v3653_v38 = vrot.slane %v3532_v27, 5 }
 0x141   : > { %v1579_v5 = vpop.permute.xlu0 %1578  ;;  %v4205_v49 = vrot.slane %v3531_v37, 9 }
 0x142   : > { %1655 = vst.msk [vmem:[#allocation3 + $0x50] sm:$0xf] %vm1634_vm15, %v1579_v5  ;;  %v1581_v8 = vpop.permute.xlu1 %1580  ;;  %v2621_v0 = vsel %vm4824_vm13, %v2619_v51, %v2620_v52  ;;  %v3156_v60 = vrot.slane %v3154_v23, 5  ;;  %v3160_v5 = vrot.slane %v3158_v58, 4  ;;  %v3655_v51 = vrot.slane %v3653_v38, 4 }
 0x143   : > { %1656 = vst.msk [vmem:[#allocation3 + $0x54] sm:$0xf] %vm1634_vm15, %v1581_v8  ;;  %3781 = vrot.lane.b32.xlu0 %v3717_v1, %s4404_s9  ;;  %v3150_v1 = vrot.slane %v3148_v21, 5  ;;  %v2771_v8 = vld [vmem:[#allocation2 + $0x60] sm:$0xf]  ;;  %v3656_v52 = vrot.slane %v3533_v42, 5 }
 0x144   : > { %3783 = vrot.lane.b32.xlu1 %v3720_v2, %s4404_s9  ;;  %v3337_v2 = vshrl.u32 %v2994_v30, 16  ;;  %v3555_v21 = vld [vmem:[#allocation2 + $0xc0] sm:$0xe]  ;;  %v2032_v23 = vshll.u32 %v1875_v25, 16  ;;  %v2437_v42 = vld [vmem:[#allocation2 + $0x4c] sm:$0xf] }
 0x145   : > { %v1583_v12 = vpop.permute.xlu0 %1582  ;;  %v3151_v47 = vor.u32 %v3150_v1, %v3147_v54  ;;  %v3654_v54 = vsel %vm4824_vm13, %v4205_v49, %v3653_v38  ;;  %v1900_v1 = vld [vmem:[#allocation2 + $0xac] sm:$0xf]  ;;  %v4213_v3 = vrot.slane %v3555_v21, 9 }
 0x146   : > { %1657 = vst.msk [vmem:[#allocation3 + $0x58] sm:$0xf] %vm1634_vm15, %v1583_v12  ;;  %v1585_v19 = vpop.permute.xlu1 %1584  ;;  %v2772_v12 = vld [vmem:[#allocation2 + $0x64] sm:$0xf]  ;;  %v2034_v6 = vrot.slane %v2032_v23, 5 }
 0x147   : > { %1658 = vst.msk [vmem:[#allocation3 + $0x5c] sm:$0xf] %vm1634_vm15, %v1585_v19  ;;  %1787 = vrot.lane.b32.xlu0 %v1695_v9, %s4399_s4  ;;  %v3339_v9 = vrot.slane %v3337_v2, 4  ;;  %v2996_v19 = vld [vmem:[#allocation2 + $0xc8] sm:$0x1]  ;;  %v3657_v2 = vsel %vm4824_vm13, %v3655_v51, %v3656_v52 }
 0x148   : > { %1789 = vrot.lane.b32.xlu1 %v1696_v13, %s4399_s4  ;;  %v3161_v13 = vor.u32 %v3160_v5, %v3156_v60  ;;  %v3356_v34 = vshll.u32 %v2996_v19, 16  ;;  %v2438_v51 = vld [vmem:[#allocation2 + $0x50] sm:$0x1] }
 0x149   : > { %v1587_v28 = vpop.permute.xlu0 %1586  ;;  %v3343_v24 = vor.u32 %v3342_v10, %v3339_v9  ;;  %v2230_v9 = vshll.u32 %v1900_v1, 16  ;;  %v2234_v10 = vshrl.u32 %v1900_v1, 16 }
 0x14a   : > { %1659 = vst.msk [vmem:[#allocation3 + $0x60] sm:$0xf] %vm1634_vm15, %v1587_v28  ;;  %v1589_v36 = vpop.permute.xlu1 %1588  ;;  %v3162_v31 = vrot.slane %v3161_v13, 4  ;;  %v3358_v48 = vrot.slane %v3356_v34, 5 }
 0x14b   : > { %1660 = vst.msk [vmem:[#allocation3 + $0x64] sm:$0xf] %vm1634_vm15, %v1589_v36  ;;  %2316 = vrot.lane.b32.xlu0 %v2065_v22, %s4400_s5  ;;  %v3152_v22 = vrot.slane %v3151_v47, 4  ;;  %v3344_v18 = vrot.slane %v3343_v24, 4  ;;  %v2044_v47 = vrot.slane %v2042_v62, 4  ;;  %v2232_v24 = vrot.slane %v2230_v9, 5 }
 0x14c   : > { %2318 = vrot.lane.b32.xlu1 %v2075_v29, %s4400_s5  ;;  %v2788_v29 = vld [vmem:[#allocation2 + $0xc4] sm:$0xf]  ;;  %v3359_v30 = vsel %vm4560_vm10, %v3354_v46, %v3358_v48  ;;  %v2236_v27 = vrot.slane %v2234_v10, 4  ;;  %v2436_v46 = vld [vmem:[#allocation2 + $0x48] sm:$0xe]  ;;  %v2554_v48 = vrot.slane %v2437_v42, 5 }
 0x14d   : > { %v1591_v44 = vpop.permute.xlu0 %1590  ;;  %v3349_v56 = vsel %vm4560_vm10, %v3344_v18, %v3348_v14  ;;  %v2967_v62 = vld [vmem:[#allocation2 + $0x54] sm:$0xf] }
 0x14e   : > { %1661 = vst.msk [vmem:[#allocation3 + $0x68] sm:$0xf] %vm1634_vm15, %v1591_v44  ;;  %v1593_v61 = vpop.permute.xlu1 %1592 }
 0x14f   : > { %1662 = vst.msk [vmem:[#allocation3 + $0x6c] sm:$0xf] %vm1634_vm15, %v1593_v61  ;;  %2348 = vrot.lane.b32.xlu0 %v2257_v39, %s4400_s5  ;;  %v3157_v39 = vsel %vm4560_vm10, %v3152_v22, %v3156_v60 }
 0x150   : > { %2350 = vrot.lane.b32.xlu1 %v2267_v45, %s4400_s5  ;;  %v3167_v45 = vsel %vm4560_vm10, %v3162_v31, %v3166_v32  ;;  %v1693_v31 = vld [vmem:[#allocation2 + $0xa8] sm:$0xf]  ;;  %v1694_v32 = vld [vmem:[#allocation2 + $0xac] sm:$0xf] }
 0x151   : > { %v1595_v26 = vpop.permute.xlu0 %1594 }
 0x152   : > { %1663 = vst.msk [vmem:[#allocation3 + $0x70] sm:$0xf] %vm1634_vm15, %v1595_v26  ;;  %v1597_v59 = vpop.permute.xlu1 %1596  ;;  %v3557_v26 = vld [vmem:[#allocation2 + $0xc8] sm:$0x1] }
 0x153   : > { %1664 = vst.msk [vmem:[#allocation3 + $0x74] sm:$0xf] %vm1634_vm15, %v1597_v59  ;;  %2653 = vrot.lane.b32.xlu0 %v2562_v53, %s4401_s6  ;;  %v3709_v53 = vrot.slane %v3556_v43, 5  ;;  %v2038_v59 = vshll.u32 %v1876_v50, 16  ;;  %v3712_v60 = vrot.slane %v3557_v26, 5  ;;  %v2556_v26 = vrot.slane %v2554_v48, 4 }
 0x154   : > { %2655 = vrot.lane.b32.xlu1 %v2565_v57, %s4401_s6  ;;  %v2029_v57 = vshrl.u32 %v1875_v25, 16 }
 0x155   : > { %v1599_v4 = vpop.permute.xlu0 %1598  ;;  %v3710_v13 = vsel %vm4824_vm13, %v4213_v3, %v3709_v53 }
 0x156   : > { %1665 = vst.msk [vmem:[#allocation3 + $0x78] sm:$0xf] %vm1634_vm15, %v1599_v4  ;;  %v1601_v41 = vpop.permute.xlu1 %1600  ;;  %v3711_v4 = vrot.slane %v3709_v53, 4  ;;  %v2031_v5 = vrot.slane %v2029_v57, 4  ;;  %v2461_v53 = vld [vmem:[#allocation2 + $0xac] sm:$0xf] }
 0x157   : > { %1666 = vst.msk [vmem:[#allocation3 + $0x7c] sm:$0xf] %vm1634_vm15, %v1601_v41  ;;  %2685 = vrot.lane.b32.xlu0 %v2618_v63, %s4401_s6  ;;  %v1899_v63 = vld [vmem:[#allocation2 + $0xa8] sm:$0xf]  ;;  %v2557_v57 = vrot.slane %v2438_v51, 5 }
 0x158   : > { %2687 = vrot.lane.b32.xlu1 %v2621_v0, %s4401_s6  ;;  %v2221_v7 = vshrl.u32 %v1899_v63, 16  ;;  %v2224_v41 = vshll.u32 %v1899_v63, 16  ;;  %v3713_v15 = vsel %vm4824_vm13, %v3711_v4, %v3712_v60  ;;  %v2035_v14 = vor.u32 %v2034_v6, %v2031_v5  ;;  %v2992_v6 = vld [vmem:[#allocation2 + $0xb8] sm:$0xf] }
 0x159   : > { %v1732_v11 = vpop.permute.xlu0 %1731  ;;  %v2558_v3 = vsel %vm4824_vm13, %v2556_v26, %v2557_v57  ;;  %v3121_v60 = vshrl.u32 %v2967_v62, 16  ;;  %v3124_v5 = vshll.u32 %v2967_v62, 16  ;;  %v3553_v62 = vld [vmem:[#allocation2 + $0xb8] sm:$0xf] }
 0x15a   : > { %1828 = vst.msk [vmem:[#allocation3] sm:$0xf] %vm1827_vm0, %v1732_v11  ;;  %v1734_v17 = vpop.permute.xlu1 %1733  ;;  %v2223_v16 = vrot.slane %v2221_v7, 4  ;;  %v2036_v33 = vrot.slane %v2035_v14, 4 }
 0x15b   : > { %1829 = vst.msk [vmem:[#allocation3 + $0x4] sm:$0xf] %vm1827_vm0, %v1734_v17  ;;  %2847 = vrot.lane.b32.xlu0 %v2771_v8, %s4402_s7  ;;  %v2040_v8 = vrot.slane %v2038_v59, 5  ;;  %v2226_v17 = vrot.slane %v2224_v41, 5  ;;  %v2610_v59 = vrot.slane %v2461_v53, 5  ;;  %v3123_v14 = vrot.slane %v3121_v60, 4 }
 0x15c   : > { %2849 = vrot.lane.b32.xlu1 %v2772_v12, %s4402_s7  ;;  %v1877_v12 = vld [vmem:[#allocation2 + $0x50] sm:$0x1] }
 0x15d   : > { %v1736_v28 = vpop.permute.xlu0 %1735  ;;  %v2048_v22 = vshll.u32 %v1877_v12, 16  ;;  %v2227_v34 = vor.u32 %v2226_v17, %v2223_v16  ;;  %v2612_v41 = vrot.slane %v2610_v59, 4  ;;  %v3322_v12 = vshll.u32 %v2992_v6, 16 }
 0x15e   : > { %1830 = vst.msk [vmem:[#allocation3 + $0x8] sm:$0xf] %vm1827_vm0, %v1736_v28  ;;  %v1738_v36 = vpop.permute.xlu1 %1737  ;;  %v3126_v16 = vrot.slane %v3124_v5, 5 }
 0x15f   : > { %1831 = vst.msk [vmem:[#allocation3 + $0xc] sm:$0xf] %vm1827_vm0, %v1738_v36  ;;  %2879 = vrot.lane.b32.xlu0 %v2787_v20, %s4402_s7  ;;  %v2045_v20 = vor.u32 %v2044_v47, %v2040_v8  ;;  %v2050_v38 = vrot.slane %v2048_v22, 5 }
 0x160   : > { %2881 = vrot.lane.b32.xlu1 %v2788_v29, %s4402_s7  ;;  %v1901_v29 = vld [vmem:[#allocation2 + $0xb0] sm:$0x1] }
 0x161   : > { %v1740_v44 = vpop.permute.xlu0 %1739  ;;  %v2046_v37 = vrot.slane %v2045_v20, 4  ;;  %v2240_v18 = vshll.u32 %v1901_v29, 16 }
 0x162   : > { %1832 = vst.msk [vmem:[#allocation3 + $0x10] sm:$0xf] %vm1827_vm0, %v1740_v44  ;;  %v1742_v61 = vpop.permute.xlu1 %1741  ;;  %v2041_v44 = vsel %vm4560_vm10, %v2036_v33, %v2040_v8  ;;  %v2769_v33 = vld [vmem:[#allocation2 + $0x54] sm:$0xf] }
 0x163   : > { %1833 = vst.msk [vmem:[#allocation3 + $0x14] sm:$0xf] %vm1827_vm0, %v1742_v61  ;;  %3408 = vrot.lane.b32.xlu0 %v3157_v39, %s4403_s8  ;;  %v2237_v39 = vor.u32 %v2236_v27, %v2232_v24  ;;  %v2051_v61 = vsel %vm4560_vm10, %v2046_v37, %v2050_v38  ;;  %v2242_v50 = vrot.slane %v2240_v18, 5  ;;  %v2969_v27 = vld [vmem:[#allocation2 + $0x5c] sm:$0x1] }
 0x164   : > { %3410 = vrot.lane.b32.xlu1 %v3167_v45, %s4403_s8  ;;  %v2228_v45 = vrot.slane %v2227_v34, 4  ;;  %v3127_v34 = vor.u32 %v3126_v16, %v3123_v14  ;;  %v2770_v38 = vld [vmem:[#allocation2 + $0x58] sm:$0xf]  ;;  %v3140_v18 = vshll.u32 %v2969_v27, 16  ;;  %v3554_v14 = vld [vmem:[#allocation2 + $0xbc] sm:$0x1] }
 0x165   : > { %v1744_v58 = vpop.permute.xlu0 %1743  ;;  %v2238_v49 = vrot.slane %v2237_v39, 4 }
 0x166   : > { %1834 = vst.msk [vmem:[#allocation3 + $0x18] sm:$0xf] %vm1827_vm0, %v1744_v58  ;;  %v1746_v0 = vpop.permute.xlu1 %1745  ;;  %v2233_v21 = vsel %vm4560_vm10, %v2228_v45, %v2232_v24  ;;  %v3142_v51 = vrot.slane %v3140_v18, 5 }
 0x167   : > { %1835 = vst.msk [vmem:[#allocation3 + $0x1c] sm:$0xf] %vm1827_vm0, %v1746_v0  ;;  %3440 = vrot.lane.b32.xlu0 %v3349_v56, %s4403_s8  ;;  %v4188_v56 = vrot.slane %v2436_v46, 9  ;;  %v2243_v58 = vsel %vm4560_vm10, %v2238_v49, %v2242_v50  ;;  %v2462_v0 = vld [vmem:[#allocation2 + $0xb0] sm:$0x1] }
 0x168   : > { %3442 = vrot.lane.b32.xlu1 %v3359_v30, %s4403_s8  ;;  %v2460_v30 = vld [vmem:[#allocation2 + $0xa8] sm:$0xe]  ;;  %v2785_v46 = vld [vmem:[#allocation2 + $0xb4] sm:$0xf]  ;;  %v2786_v49 = vld [vmem:[#allocation2 + $0xb8] sm:$0xf] }
 0x169   : > { %v1748_v55 = vpop.permute.xlu0 %1747  ;;  %v2555_v1 = vsel %vm4824_vm13, %v4188_v56, %v2554_v48  ;;  %v4196_v4 = vrot.slane %v2460_v30, 9  ;;  %v3128_v48 = vrot.slane %v3127_v34, 4 }
 0x16a   : > { %1836 = vst.msk [vmem:[#allocation3 + $0x20] sm:$0xf] %vm1827_vm0, %v1748_v55  ;;  %v1750_v11 = vpop.permute.xlu1 %1749  ;;  %v2613_v55 = vrot.slane %v2462_v0, 5 }
 0x16b   : > { %1837 = vst.msk [vmem:[#allocation3 + $0x24] sm:$0xf] %vm1827_vm0, %v1750_v11  ;;  %3745 = vrot.lane.b32.xlu0 %v3654_v54, %s4404_s9  ;;  %v2968_v54 = vld [vmem:[#allocation2 + $0x58] sm:$0xf] }
 0x16c   : > { %3747 = vrot.lane.b32.xlu1 %v3657_v2, %s4404_s9  ;;  %v2991_v2 = vld [vmem:[#allocation2 + $0xb4] sm:$0xf]  ;;  %v3130_v8 = vshll.u32 %v2968_v54, 16  ;;  %v3134_v47 = vshrl.u32 %v2968_v54, 16 }
 0x16d   : > { %v1752_v19 = vpop.permute.xlu0 %1751  ;;  %v3313_v10 = vshrl.u32 %v2991_v2, 16  ;;  %v3316_v11 = vshll.u32 %v2991_v2, 16 }
 0x16e   : > { %1838 = vst.msk [vmem:[#allocation3 + $0x28] sm:$0xf] %vm1827_vm0, %v1752_v19  ;;  %v1754_v28 = vpop.permute.xlu1 %1753  ;;  %v2614_v19 = vsel %vm4824_vm13, %v2612_v41, %v2613_v55  ;;  %v5212_v20 = vrot.slane %v3130_v8, 5  ;;  %v3136_v22 = vrot.slane %v3134_v47, 4  ;;  %v3702_v47 = vrot.slane %v3553_v62, 5 }
 0x16f   : > { %1839 = vst.msk [vmem:[#allocation3 + $0x2c] sm:$0xf] %vm1827_vm0, %v1754_v28  ;;  %3777 = vrot.lane.b32.xlu0 %v3710_v13, %s4404_s9  ;;  %v3326_v13 = vshrl.u32 %v2992_v6, 16  ;;  %v3315_v28 = vrot.slane %v3313_v10, 4  ;;  %v3318_v29 = vrot.slane %v3316_v11, 5 }
 0x170   : > { %3779 = vrot.lane.b32.xlu1 %v3713_v15, %s4404_s9  ;;  %v2611_v15 = vsel %vm4824_vm13, %v4196_v4, %v2610_v59  ;;  %v3137_v39 = vor.u32 %v3136_v22, %v5212_v20  ;;  %v3133_v30 = vsel %vm4560_vm10, %v3128_v48, %v5212_v20  ;;  %v3530_v59 = vld [vmem:[#allocation2 + $0x5c] sm:$0x1] }
 0x171   : > { %v1756_v36 = vpop.permute.xlu0 %1755  ;;  %v1896_v4 = vld [vmem:[#allocation2 + $0x9c] sm:$0xf]  ;;  %v3649_v8 = vrot.slane %v3530_v59, 5 }
 0x172   : > { %1840 = vst.msk [vmem:[#allocation3 + $0x30] sm:$0xf] %vm1827_vm0, %v1756_v36  ;;  %v1758_v43 = vpop.permute.xlu1 %1757  ;;  %v2993_v36 = vld [vmem:[#allocation2 + $0xbc] sm:$0x1]  ;;  %v3138_v50 = vrot.slane %v3137_v39, 4 }
 0x173   : > { %1841 = vst.msk [vmem:[#allocation3 + $0x34] sm:$0xf] %vm1827_vm0, %v1758_v43  ;;  %1783 = vrot.lane.b32.xlu0 %v1693_v31, %s4399_s4  ;;  %v5217_v31 = vrot.slane %v3322_v12, 5  ;;  %v3319_v43 = vor.u32 %v3318_v29, %v3315_v28  ;;  %v3332_v45 = vshll.u32 %v2993_v36, 16  ;;  %v2197_v12 = vshrl.u32 %v1896_v4, 16 }
 0x174   : > { %1785 = vrot.lane.b32.xlu1 %v1694_v32, %s4399_s4  ;;  %v3328_v32 = vrot.slane %v3326_v13, 4  ;;  %v2200_v13 = vshll.u32 %v1896_v4, 16 }
 0x175   : > { %v1760_v25 = vpop.permute.xlu0 %1759  ;;  %v3320_v56 = vrot.slane %v3319_v43, 4  ;;  %v3334_v57 = vrot.slane %v3332_v45, 5  ;;  %v2199_v34 = vrot.slane %v2197_v12, 4 }
 0x176   : > { %1842 = vst.msk [vmem:[#allocation3 + $0x38] sm:$0xf] %vm1827_vm0, %v1760_v25  ;;  %v1762_v52 = vpop.permute.xlu1 %1761  ;;  %v3529_v25 = vld [vmem:[#allocation2 + $0x58] sm:$0xf]  ;;  %v2202_v36 = vrot.slane %v2200_v13, 5 }
 0x177   : > { %1843 = vst.msk [vmem:[#allocation3 + $0x3c] sm:$0xf] %vm1827_vm0, %v1762_v52  ;;  %2312 = vrot.lane.b32.xlu0 %v2041_v44, %s4400_s5  ;;  %v3329_v44 = vor.u32 %v3328_v32, %v5217_v31  ;;  %v1872_v52 = vld [vmem:[#allocation2 + $0x3c] sm:$0xf]  ;;  %v3325_v5 = vsel %vm4560_vm10, %v3320_v56, %v5217_v31  ;;  %v3704_v31 = vrot.slane %v3702_v47, 4  ;;  %v3705_v32 = vrot.slane %v3554_v14, 5 }
 0x178   : > { %2314 = vrot.lane.b32.xlu1 %v2051_v61, %s4400_s5  ;;  %v2008_v0 = vshll.u32 %v1872_v52, 16  ;;  %v2989_v14 = vld [vmem:[#allocation2 + $0xac] sm:$0xf] }
 0x179   : > { %v1764_v23 = vpop.permute.xlu0 %1763  ;;  %v3330_v26 = vrot.slane %v3329_v44, 4  ;;  %v1898_v44 = vld [vmem:[#allocation2 + $0xa4] sm:$0x1] }
 0x17a   : > { %1844 = vst.msk [vmem:[#allocation3 + $0x40] sm:$0xf] %vm1827_vm0, %v1764_v23  ;;  %v1766_v63 = vpop.permute.xlu1 %1765  ;;  %v3528_v23 = vld [vmem:[#allocation2 + $0x54] sm:$0xe]  ;;  %v2010_v11 = vrot.slane %v2008_v0, 5 }
 0x17b   : > { %1845 = vst.msk [vmem:[#allocation3 + $0x44] sm:$0xf] %vm1827_vm0, %v1766_v63  ;;  %2344 = vrot.lane.b32.xlu0 %v2233_v21, %s4400_s5  ;;  %v1873_v21 = vld [vmem:[#allocation2 + $0x40] sm:$0xf]  ;;  %v2005_v63 = vshrl.u32 %v1872_v52, 16  ;;  %v4204_v6 = vrot.slane %v3528_v23, 9  ;;  %v3335_v41 = vsel %vm4560_vm10, %v3330_v26, %v3334_v57 }
 0x17c   : > { %2346 = vrot.lane.b32.xlu1 %v2243_v58, %s4400_s5  ;;  %v3646_v58 = vrot.slane %v3529_v25, 5  ;;  %v2014_v2 = vshll.u32 %v1873_v21, 16  ;;  %v2203_v25 = vor.u32 %v2202_v36, %v2199_v34  ;;  %v2216_v52 = vshll.u32 %v1898_v44, 16  ;;  %v2433_v57 = vld [vmem:[#allocation2 + $0x3c] sm:$0xe] }
 0x17d   : > { %v1768_v7 = vpop.permute.xlu0 %1767  ;;  %v2007_v10 = vrot.slane %v2005_v63, 4  ;;  %v2435_v63 = vld [vmem:[#allocation2 + $0x44] sm:$0x1] }
 0x17e   : > { %1846 = vst.msk [vmem:[#allocation3 + $0x48] sm:$0xf] %vm1827_vm0, %v1768_v7  ;;  %v1770_v9 = vpop.permute.xlu1 %1769  ;;  %v1897_v7 = vld [vmem:[#allocation2 + $0xa0] sm:$0xf]  ;;  %v3648_v55 = vrot.slane %v3646_v58, 4  ;;  %v2016_v16 = vrot.slane %v2014_v2, 5  ;;  %v3647_v27 = vsel %vm4824_vm13, %v4204_v6, %v3646_v58 }
 0x17f   : > { %1847 = vst.msk [vmem:[#allocation3 + $0x4c] sm:$0xf] %vm1827_vm0, %v1770_v9  ;;  %2649 = vrot.lane.b32.xlu0 %v2555_v1, %s4401_s6  ;;  %v3143_v1 = vsel %vm4560_vm10, %v3138_v50, %v3142_v51  ;;  %v3552_v9 = vld [vmem:[#allocation2 + $0xb4] sm:$0xe]  ;;  %v2210_v20 = vshrl.u32 %v1897_v7, 16  ;;  %v2204_v26 = vrot.slane %v2203_v25, 4 }
 0x180   : > { %2651 = vrot.lane.b32.xlu1 %v2558_v3, %s4401_s6  ;;  %v2018_v3 = vshrl.u32 %v1873_v21, 16  ;;  %v3650_v28 = vsel %vm4824_vm13, %v3648_v55, %v3649_v8  ;;  %v4212_v29 = vrot.slane %v3552_v9, 9  ;;  %v2218_v62 = vrot.slane %v2216_v52, 5  ;;  %v2457_v6 = vld [vmem:[#allocation2 + $0x9c] sm:$0xe] }
 0x181   : > { %v1772_v17 = vpop.permute.xlu0 %1771  ;;  %v2550_v4 = vrot.slane %v2435_v63, 5  ;;  %v2459_v8 = vld [vmem:[#allocation2 + $0xa4] sm:$0x1]  ;;  %v4195_v12 = vrot.slane %v2457_v6, 9 }
 0x182   : > { %1848 = vst.msk [vmem:[#allocation3 + $0x50] sm:$0xf] %vm1827_vm0, %v1772_v17  ;;  %v1774_v24 = vpop.permute.xlu1 %1773  ;;  %v2020_v17 = vrot.slane %v2018_v3, 4  ;;  %v3703_v45 = vsel %vm4824_vm13, %v4212_v29, %v3702_v47  ;;  %v2965_v47 = vld [vmem:[#allocation2 + $0x4c] sm:$0xf]  ;;  %v3298_v29 = vshll.u32 %v2989_v14, 16 }
 0x183   : > { %1849 = vst.msk [vmem:[#allocation3 + $0x54] sm:$0xf] %vm1827_vm0, %v1774_v24  ;;  %2681 = vrot.lane.b32.xlu0 %v2611_v15, %s4401_s6  ;;  %v1874_v24 = vld [vmem:[#allocation2 + $0x44] sm:$0x1] }
 0x184   : > { %2683 = vrot.lane.b32.xlu1 %v2614_v19, %s4401_s6  ;;  %v2206_v19 = vshll.u32 %v1897_v7, 16  ;;  %v2024_v39 = vshll.u32 %v1874_v24, 16 }
 0x185   : > { %v1776_v37 = vpop.permute.xlu0 %1775 }
 0x186   : > { %1850 = vst.msk [vmem:[#allocation3 + $0x58] sm:$0xf] %vm1827_vm0, %v1776_v37  ;;  %v1778_v42 = vpop.permute.xlu1 %1777  ;;  %v2208_v18 = vrot.slane %v2206_v19, 5  ;;  %v2026_v50 = vrot.slane %v2024_v39, 5  ;;  %v2606_v19 = vrot.slane %v2459_v8, 5 }
 0x187   : > { %1851 = vst.msk [vmem:[#allocation3 + $0x5c] sm:$0xf] %vm1827_vm0, %v1778_v42  ;;  %2843 = vrot.lane.b32.xlu0 %v2769_v33, %s4402_s7  ;;  %v2011_v33 = vor.u32 %v2010_v11, %v2007_v10  ;;  %v2212_v42 = vrot.slane %v2210_v20, 4  ;;  %v2988_v10 = vld [vmem:[#allocation2 + $0xa8] sm:$0xf]  ;;  %v3106_v20 = vshll.u32 %v2965_v47, 16 }
 0x188   : > { %2845 = vrot.lane.b32.xlu1 %v2770_v38, %s4402_s7  ;;  %v2021_v38 = vor.u32 %v2020_v17, %v2016_v16  ;;  %v2209_v2 = vsel %vm4560_vm10, %v2204_v26, %v2208_v18 }
 0x189   : > { %v1780_v61 = vpop.permute.xlu0 %1779  ;;  %v2012_v48 = vrot.slane %v2011_v33, 4  ;;  %v2213_v51 = vor.u32 %v2212_v42, %v2208_v18  ;;  %v2966_v42 = vld [vmem:[#allocation2 + $0x50] sm:$0x1] }
 0x18a   : > { %1852 = vst.msk [vmem:[#allocation3 + $0x60] sm:$0xf] %vm1827_vm0, %v1780_v61  ;;  %v1782_v53 = vpop.permute.xlu1 %1781  ;;  %v3116_v52 = vshll.u32 %v2966_v42, 16 }
 0x18b   : > { %1853 = vst.msk [vmem:[#allocation3 + $0x64] sm:$0xf] %vm1827_vm0, %v1782_v53  ;;  %2875 = vrot.lane.b32.xlu0 %v2785_v46, %s4402_s7  ;;  %v3706_v46 = vsel %vm4824_vm13, %v3704_v31, %v3705_v32  ;;  %v2434_v53 = vld [vmem:[#allocation2 + $0x40] sm:$0xf]  ;;  %v2017_v21 = vsel %vm4560_vm10, %v2012_v48, %v2016_v16  ;;  %v2214_v59 = vrot.slane %v2213_v51, 4  ;;  %v3302_v31 = vshrl.u32 %v2989_v14, 16 }
 0x18c   : > { %2877 = vrot.lane.b32.xlu1 %v2786_v49, %s4402_s7  ;;  %v2022_v49 = vrot.slane %v2021_v38, 4  ;;  %v2547_v23 = vrot.slane %v2434_v53, 5  ;;  %v5292_v38 = vrot.slane %v3106_v20, 5  ;;  %v2767_v48 = vld [vmem:[#allocation2 + $0x48] sm:$0xf]  ;;  %v3118_v63 = vrot.slane %v3116_v52, 5 }
 0x18d   : > { %v1792_v54 = vpop.permute.xlu0 %1791 }
 0x18e   : > { %1858 = vst.msk [vmem:[#allocation3 + $0x78] sm:$0xf] %vm1827_vm0, %v1792_v54  ;;  %v1794_v60 = vpop.permute.xlu1 %1793  ;;  %v2458_v54 = vld [vmem:[#allocation2 + $0xa0] sm:$0xf]  ;;  %v2549_v3 = vrot.slane %v2547_v23, 4 }
 0x18f   : > { %1859 = vst.msk [vmem:[#allocation3 + $0x7c] sm:$0xf] %vm1827_vm0, %v1794_v60  ;;  %3404 = vrot.lane.b32.xlu0 %v3133_v30, %s4403_s8  ;;  %v2027_v30 = vsel %vm4560_vm10, %v2022_v49, %v2026_v50  ;;  %v2603_v7 = vrot.slane %v2458_v54, 5  ;;  %v2768_v50 = vld [vmem:[#allocation2 + $0x4c] sm:$0xf] }
 0x190   : > { %3406 = vrot.lane.b32.xlu1 %v3143_v1, %s4403_s8  ;;  %v4187_v1 = vrot.slane %v2433_v57, 9  ;;  %v2551_v11 = vsel %vm4824_vm13, %v2549_v3, %v2550_v4  ;;  %v2783_v57 = vld [vmem:[#allocation2 + $0xa8] sm:$0xf] }
 0x191   : > { %v2321_v15 = vpop.permute.xlu0 %2320  ;;  %v2605_v17 = vrot.slane %v2603_v7, 4  ;;  %v2604_v32 = vsel %vm4824_vm13, %v4195_v12, %v2603_v7  ;;  %v3527_v7 = vld [vmem:[#allocation2 + $0x50] sm:$0x1] }
 0x192   : > { %2403 = vst.msk [vmem:[#allocation3 + $0x38] sm:$0xf] %vm2388_vm1, %v2321_v15  ;;  %v2323_v22 = vpop.permute.xlu1 %2322  ;;  %v2548_v9 = vsel %vm4824_vm13, %v4187_v1, %v2547_v23  ;;  %v1893_v12 = vld [vmem:[#allocation2 + $0x90] sm:$0xf]  ;;  %v3642_v20 = vrot.slane %v3527_v7, 5 }
 0x193   : > { %2404 = vst.msk [vmem:[#allocation3 + $0x3c] sm:$0xf] %vm2388_vm1, %v2323_v22  ;;  %3436 = vrot.lane.b32.xlu0 %v3325_v5, %s4403_s8  ;;  %v2219_v5 = vsel %vm4560_vm10, %v2214_v59, %v2218_v62  ;;  %v3110_v22 = vshrl.u32 %v2965_v47, 16  ;;  %v2784_v59 = vld [vmem:[#allocation2 + $0xac] sm:$0xf] }
 0x194   : > { %3438 = vrot.lane.b32.xlu1 %v3335_v41, %s4403_s8  ;;  %v2964_v41 = vld [vmem:[#allocation2 + $0x48] sm:$0xf] }
 0x195   : > { %v2353_v37 = vpop.permute.xlu0 %2352  ;;  %v3097_v13 = vshrl.u32 %v2964_v41, 16  ;;  %v3100_v15 = vshll.u32 %v2964_v41, 16  ;;  %v3112_v39 = vrot.slane %v3110_v22, 4  ;;  %v3550_v41 = vld [vmem:[#allocation2 + $0xac] sm:$0xf] }
 0x196   : > { %2419 = vst.msk [vmem:[#allocation3 + $0x78] sm:$0xf] %vm2388_vm1, %v2353_v37  ;;  %v2355_v43 = vpop.permute.xlu1 %2354  ;;  %v2607_v37 = vsel %vm4824_vm13, %v2605_v17, %v2606_v19  ;;  %v3549_v22 = vld [vmem:[#allocation2 + $0xa8] sm:$0xe] }
 0x197   : > { %2420 = vst.msk [vmem:[#allocation3 + $0x7c] sm:$0xf] %vm2388_vm1, %v2355_v43  ;;  %3741 = vrot.lane.b32.xlu0 %v3647_v27, %s4404_s9  ;;  %v3289_v27 = vshrl.u32 %v2988_v10, 16  ;;  %v3099_v33 = vrot.slane %v3097_v13, 4  ;;  %v3102_v34 = vrot.slane %v3100_v15, 5  ;;  %v3113_v51 = vor.u32 %v3112_v39, %v5292_v38 }
 0x198   : > { %3743 = vrot.lane.b32.xlu1 %v3650_v28, %s4404_s9  ;;  %v3292_v28 = vshll.u32 %v2988_v10, 16 }
 0x199   : > { %v2658_v61 = vpop.permute.xlu0 %2657  ;;  %v3291_v43 = vrot.slane %v3289_v27, 4  ;;  %v3103_v25 = vor.u32 %v3102_v34, %v3099_v33  ;;  %v3114_v62 = vrot.slane %v3113_v51, 4  ;;  %v3551_v27 = vld [vmem:[#allocation2 + $0xb0] sm:$0x1] }
 0x19a   : > { %2740 = vst.msk [vmem:[#allocation3 + $0x38] sm:$0xf] %vm2725_vm2, %v2658_v61  ;;  %v2660_v56 = vpop.permute.xlu1 %2659  ;;  %v3294_v44 = vrot.slane %v3292_v28, 5  ;;  %v2990_v61 = vld [vmem:[#allocation2 + $0xb0] sm:$0x1] }
 0x19b   : > { %2741 = vst.msk [vmem:[#allocation3 + $0x3c] sm:$0xf] %vm2725_vm2, %v2660_v56  ;;  %3773 = vrot.lane.b32.xlu0 %v3703_v45, %s4404_s9  ;;  %v5297_v45 = vrot.slane %v3298_v29, 5  ;;  %v3308_v26 = vshll.u32 %v2990_v61, 16  ;;  %v3104_v23 = vrot.slane %v3103_v25, 4 }
 0x19c   : > { %3775 = vrot.lane.b32.xlu1 %v3706_v46, %s4404_s9  ;;  %v3304_v46 = vrot.slane %v3302_v31, 4  ;;  %v3295_v56 = vor.u32 %v3294_v44, %v3291_v43  ;;  %v2173_v31 = vshrl.u32 %v1893_v12, 16  ;;  %v4211_v44 = vrot.slane %v3549_v22, 9  ;;  %v2961_v22 = vld [vmem:[#allocation2 + $0x3c] sm:$0xf] }
 0x19d   : > { %v2690_v58 = vpop.permute.xlu0 %2689  ;;  %v3310_v4 = vrot.slane %v3308_v26, 5  ;;  %v3109_v6 = vsel %vm4560_vm10, %v3104_v23, %v5292_v38 }
 0x19e   : > { %2756 = vst.msk [vmem:[#allocation3 + $0x78] sm:$0xf] %vm2725_vm2, %v2690_v58  ;;  %v2692_v0 = vpop.permute.xlu1 %2691  ;;  %v3526_v58 = vld [vmem:[#allocation2 + $0x4c] sm:$0xf]  ;;  %v3296_v1 = vrot.slane %v3295_v56, 4  ;;  %v2175_v61 = vrot.slane %v2173_v31, 4 }
 0x19f   : > { %2757 = vst.msk [vmem:[#allocation3 + $0x7c] sm:$0xf] %vm2725_vm2, %v2692_v0  ;;  %2308 = vrot.lane.b32.xlu0 %v2017_v21, %s4400_s5  ;;  %v3305_v21 = vor.u32 %v3304_v46, %v5297_v45  ;;  %v1869_v0 = vld [vmem:[#allocation2 + $0x30] sm:$0xf]  ;;  %v2985_v31 = vld [vmem:[#allocation2 + $0x9c] sm:$0xf] }
 0x1a0   : > { %2310 = vrot.lane.b32.xlu1 %v2027_v30, %s4400_s5  ;;  %v1984_v8 = vshll.u32 %v1869_v0, 16  ;;  %v3301_v15 = vsel %vm4560_vm10, %v3296_v1, %v5297_v45 }
 0x1a1   : > { %v2852_v60 = vpop.permute.xlu0 %2851  ;;  %v3306_v3 = vrot.slane %v3305_v21, 4 }
 0x1a2   : > { %2934 = vst.msk [vmem:[#allocation3 + $0x38] sm:$0xf] %vm2919_vm3, %v2852_v60  ;;  %v2854_v55 = vpop.permute.xlu1 %2853  ;;  %v3525_v60 = vld [vmem:[#allocation2 + $0x48] sm:$0xe]  ;;  %v1986_v29 = vrot.slane %v1984_v8, 5 }
 0x1a3   : > { %2935 = vst.msk [vmem:[#allocation3 + $0x3c] sm:$0xf] %vm2919_vm3, %v2854_v55  ;;  %2340 = vrot.lane.b32.xlu0 %v2209_v2, %s4400_s5  ;;  %v1870_v2 = vld [vmem:[#allocation2 + $0x34] sm:$0xf]  ;;  %v1981_v55 = vshrl.u32 %v1869_v0, 16  ;;  %v4203_v14 = vrot.slane %v3525_v60, 9  ;;  %v3311_v17 = vsel %vm4560_vm10, %v3306_v3, %v3310_v4 }
 0x1a4   : > { %2342 = vrot.lane.b32.xlu1 %v2219_v5, %s4400_s5  ;;  %v3639_v5 = vrot.slane %v3526_v58, 5  ;;  %v1990_v10 = vshll.u32 %v1870_v2, 16  ;;  %v2431_v3 = vld [vmem:[#allocation2 + $0x34] sm:$0xf] }
 0x1a5   : > { %v2884_v16 = vpop.permute.xlu0 %2883  ;;  %v1983_v28 = vrot.slane %v1981_v55, 4  ;;  %v2540_v7 = vrot.slane %v2431_v3, 5 }
 0x1a6   : > { %2950 = vst.msk [vmem:[#allocation3 + $0x78] sm:$0xf] %vm2919_vm3, %v2884_v16  ;;  %v2886_v24 = vpop.permute.xlu1 %2885  ;;  %v1894_v16 = vld [vmem:[#allocation2 + $0x94] sm:$0xf]  ;;  %v3641_v19 = vrot.slane %v3639_v5, 4  ;;  %v5324_v34 = vrot.slane %v1990_v10, 5  ;;  %v3640_v42 = vsel %vm4824_vm13, %v4203_v14, %v3639_v5 }
 0x1a7   : > { %2951 = vst.msk [vmem:[#allocation3 + $0x7c] sm:$0xf] %vm2919_vm3, %v2886_v24  ;;  %2645 = vrot.lane.b32.xlu0 %v2548_v9, %s4401_s6  ;;  %v3119_v9 = vsel %vm4560_vm10, %v3114_v62, %v3118_v63  ;;  %v3695_v24 = vrot.slane %v3550_v41, 5  ;;  %v2186_v38 = vshrl.u32 %v1894_v16, 16  ;;  %v1987_v25 = vor.u32 %v1986_v29, %v1983_v28  ;;  %v2962_v28 = vld [vmem:[#allocation2 + $0x40] sm:$0xf] }
 0x1a8   : > { %2647 = vrot.lane.b32.xlu1 %v2551_v11, %s4401_s6  ;;  %v1994_v11 = vshrl.u32 %v1870_v2, 16  ;;  %v3643_v43 = vsel %vm4824_vm13, %v3641_v19, %v3642_v20  ;;  %v2454_v19 = vld [vmem:[#allocation2 + $0x90] sm:$0xe] }
 0x1a9   : > { %v3413_v36 = vpop.permute.xlu0 %3412  ;;  %v3697_v45 = vrot.slane %v3695_v24, 4  ;;  %v2188_v56 = vrot.slane %v2186_v38, 4  ;;  %v3696_v23 = vsel %vm4824_vm13, %v4211_v44, %v3695_v24 }
 0x1aa   : > { %3495 = vst.msk [vmem:[#allocation3 + $0x38] sm:$0xf] %vm3480_vm4, %v3413_v36  ;;  %v3415_v18 = vpop.permute.xlu1 %3414  ;;  %v1996_v36 = vrot.slane %v1994_v11, 4  ;;  %v2455_v11 = vld [vmem:[#allocation2 + $0x94] sm:$0xf] }
 0x1ab   : > { %3496 = vst.msk [vmem:[#allocation3 + $0x3c] sm:$0xf] %vm3480_vm4, %v3415_v18  ;;  %2677 = vrot.lane.b32.xlu0 %v2604_v32, %s4401_s6  ;;  %v2176_v32 = vshll.u32 %v1893_v12, 16  ;;  %v1871_v18 = vld [vmem:[#allocation2 + $0x38] sm:$0x1]  ;;  %v2596_v20 = vrot.slane %v2455_v11, 5 }
 0x1ac   : > { %2679 = vrot.lane.b32.xlu1 %v2607_v37, %s4401_s6  ;;  %v2182_v37 = vshll.u32 %v1894_v16, 16  ;;  %v1997_v51 = vor.u32 %v1996_v36, %v5324_v34  ;;  %v2000_v52 = vshll.u32 %v1871_v18, 16  ;;  %v3076_v36 = vshll.u32 %v2961_v22, 16 }
 0x1ad   : > { %v3445_v49 = vpop.permute.xlu0 %3444 }
 0x1ae   : > { %3511 = vst.msk [vmem:[#allocation3 + $0x78] sm:$0xf] %vm3480_vm4, %v3445_v49  ;;  %v3447_v53 = vpop.permute.xlu1 %3446  ;;  %v2178_v49 = vrot.slane %v2176_v32, 5  ;;  %v1998_v0 = vrot.slane %v1997_v51, 4 }
 0x1af   : > { %3512 = vst.msk [vmem:[#allocation3 + $0x7c] sm:$0xf] %vm3480_vm4, %v3447_v53  ;;  %2839 = vrot.lane.b32.xlu0 %v2767_v48, %s4402_s7  ;;  %v3698_v48 = vrot.slane %v3551_v27, 5  ;;  %v2184_v53 = vrot.slane %v2182_v37, 5  ;;  %v2456_v27 = vld [vmem:[#allocation2 + $0x98] sm:$0x1] }
 0x1b0   : > { %2841 = vrot.lane.b32.xlu1 %v2768_v50, %s4402_s7  ;;  %v2179_v62 = vor.u32 %v2178_v49, %v2175_v61  ;;  %v2986_v37 = vld [vmem:[#allocation2 + $0xa0] sm:$0xf]  ;;  %v2599_v18 = vrot.slane %v2456_v27, 5 }
 0x1b1   : > { %v3750_v30 = vpop.permute.xlu0 %3749  ;;  %v2189_v1 = vor.u32 %v2188_v56, %v2184_v53 }
 0x1b2   : > { %3832 = vst.msk [vmem:[#allocation3 + $0x38] sm:$0xf] %vm3817_vm5, %v3750_v30  ;;  %v3752_v54 = vpop.permute.xlu1 %3751  ;;  %v3699_v30 = vsel %vm4824_vm13, %v3697_v45, %v3698_v48  ;;  %v2180_v5 = vrot.slane %v2179_v62, 4  ;;  %v3265_v45 = vshrl.u32 %v2985_v31, 16  ;;  %v3274_v48 = vshll.u32 %v2986_v37, 16 }
 0x1b3   : > { %3833 = vst.msk [vmem:[#allocation3 + $0x3c] sm:$0xf] %vm3817_vm5, %v3752_v54  ;;  %2871 = vrot.lane.b32.xlu0 %v2783_v57, %s4402_s7  ;;  %v1895_v57 = vld [vmem:[#allocation2 + $0x98] sm:$0x1]  ;;  %v2002_v54 = vrot.slane %v2000_v52, 5  ;;  %v2190_v8 = vrot.slane %v2189_v1, 4 }
 0x1b4   : > { %2873 = vrot.lane.b32.xlu1 %v2784_v59, %s4402_s7  ;;  %v1988_v59 = vrot.slane %v1987_v25, 4  ;;  %v2192_v2 = vshll.u32 %v1895_v57, 16  ;;  %v3278_v25 = vshrl.u32 %v2986_v37, 16  ;;  %v3267_v57 = vrot.slane %v3265_v45, 4 }
 0x1b5   : > { %v3782_v47 = vpop.permute.xlu0 %3781  ;;  %v2003_v55 = vsel %vm4560_vm10, %v1998_v0, %v2002_v54  ;;  %v2766_v54 = vld [vmem:[#allocation2 + $0x40] sm:$0xf] }
 0x1b6   : > { %3848 = vst.msk [vmem:[#allocation3 + $0x78] sm:$0xf] %vm3817_vm5, %v3782_v47  ;;  %v3784_v13 = vpop.permute.xlu1 %3783  ;;  %v1993_v60 = vsel %vm4560_vm10, %v1988_v59, %v5324_v34  ;;  %v2194_v47 = vrot.slane %v2192_v2, 5  ;;  %v3073_v34 = vshrl.u32 %v2961_v22, 16  ;;  %v2765_v59 = vld [vmem:[#allocation2 + $0x3c] sm:$0xf] }
 0x1b7   : > { %3849 = vst.msk [vmem:[#allocation3 + $0x7c] sm:$0xf] %vm3817_vm5, %v3784_v13  ;;  %3400 = vrot.lane.b32.xlu0 %v3109_v6, %s4403_s8  ;;  %v2430_v6 = vld [vmem:[#allocation2 + $0x30] sm:$0xe]  ;;  %v2185_v13 = vsel %vm4560_vm10, %v2180_v5, %v2184_v53  ;;  %v3547_v22 = vld [vmem:[#allocation2 + $0xa0] sm:$0xf] }
 0x1b8   : > { %3402 = vrot.lane.b32.xlu1 %v3119_v9, %s4403_s8  ;;  %v2432_v9 = vld [vmem:[#allocation2 + $0x38] sm:$0x1]  ;;  %v4186_v12 = vrot.slane %v2430_v6, 9  ;;  %v3075_v49 = vrot.slane %v3073_v34, 4  ;;  %v2781_v6 = vld [vmem:[#allocation2 + $0x9c] sm:$0xf] }
 0x1b9   : > { %v1788_v33 = vpop.permute.xlu0 %1787  ;;  %v2543_v14 = vrot.slane %v2432_v9, 5 }
 0x1ba   : > { %1856 = vst.msk [vmem:[#allocation3 + $0x70] sm:$0xf] %vm1827_vm0, %v1788_v33  ;;  %v1790_v39 = vpop.permute.xlu1 %1789  ;;  %v4318_v46 = vld [vmem:[#allocation3 + $0x38] sm:$0xff]   ;;  %v2541_v29 = vsel %vm4824_vm13, %v4186_v12, %v2540_v7  ;;  %v4194_v33 = vrot.slane %v2454_v19, 9 }
 0x1bb   : > { %1857 = vst.msk [vmem:[#allocation3 + $0x74] sm:$0xf] %vm1827_vm0, %v1790_v39  ;;  %3432 = vrot.lane.b32.xlu0 %v3301_v15, %s4403_s8  ;;  %v4007_v58 = vsel %vm3981_vm6, %v4318_v46, 0  ;;  %v2542_v15 = vrot.slane %v2540_v7, 4  ;;  %v2598_v39 = vrot.slane %v2596_v20, 4  ;;  %v3268_v46 = vshll.u32 %v2985_v31, 16 }
 0x1bc   : > { %3434 = vrot.lane.b32.xlu1 %v3311_v17, %s4403_s8  ;;  %v2195_v17 = vsel %vm4560_vm10, %v2190_v8, %v2194_v47  ;;  %v2597_v61 = vsel %vm4824_vm13, %v4194_v33, %v2596_v20  ;;  %v2782_v8 = vld [vmem:[#allocation2 + $0xa0] sm:$0xf]  ;;  %v3524_v20 = vld [vmem:[#allocation2 + $0x44] sm:$0x1] }
 0x1bd   : > { %v2317_v50 = vpop.permute.xlu0 %2316  ;;  %v2544_v32 = vsel %vm4824_vm13, %v2542_v15, %v2543_v14  ;;  %v2600_v52 = vsel %vm4824_vm13, %v2598_v39, %v2599_v18  ;;  %v1890_v33 = vld [vmem:[#allocation2 + $0x84] sm:$0xf] }
 0x1be   : > { %2401 = vst.msk [vmem:[#allocation3 + $0x30] sm:$0xf] %vm2388_vm1, %v2317_v50  ;;  %v2319_v21 = vpop.permute.xlu1 %2318  ;;  %v4317_v26 = vld [vmem:[#allocation3 + $0x78] sm:$0xff]   ;;  %v3078_v50 = vrot.slane %v3076_v36, 5 }
 0x1bf   : > { %2402 = vst.msk [vmem:[#allocation3 + $0x34] sm:$0xf] %vm2388_vm1, %v2319_v21  ;;  %3737 = vrot.lane.b32.xlu0 %v3640_v42, %s4404_s9  ;;  %4258 = vmatprep.subr.msk.bf16.mxu0 %vm3981_vm6, %v4317_v26  ;;  %v3082_v42 = vshll.u32 %v2962_v28, 16  ;;  %v2963_v26 = vld [vmem:[#allocation2 + $0x44] sm:$0x1] }
 0x1c0   : > { %3739 = vrot.lane.b32.xlu1 %v3643_v43, %s4404_s9  ;;  %4241 = vmatpush3.bf16.xpose.msra.mxu0 %v4007_v58  ;;  %v3086_v43 = vshrl.u32 %v2962_v28, 16  ;;  %v5381_v58 = vrot.slane %v3274_v48, 5  ;;  %v3079_v62 = vor.u32 %v3078_v50, %v3075_v49  ;;  %v3092_v2 = vshll.u32 %v2963_v26, 16  ;;  %v1868_v50 = vld [vmem:[#allocation2 + $0x2c] sm:$0x1] }
 0x1c1   : > { %v2349_v63 = vpop.permute.xlu0 %2348  ;;  %v3084_v53 = vrot.slane %v3082_v42, 5  ;;  %v3635_v42 = vrot.slane %v3524_v20, 5  ;;  %v2149_v48 = vshrl.u32 %v1890_v33, 16 }
 0x1c2   : > { %2417 = vst.msk [vmem:[#allocation3 + $0x70] sm:$0xf] %vm2388_vm1, %v2349_v63  ;;  %v2351_v4 = vpop.permute.xlu1 %2350  ;;  %v3088_v56 = vrot.slane %v3086_v43, 4  ;;  %v2987_v63 = vld [vmem:[#allocation2 + $0xa4] sm:$0x1]  ;;  %v3080_v7 = vrot.slane %v3079_v62, 4 }
 0x1c3   : > { %2418 = vst.msk [vmem:[#allocation3 + $0x74] sm:$0xf] %vm2388_vm1, %v2351_v4  ;;  %3769 = vrot.lane.b32.xlu0 %v3696_v23, %s4404_s9  ;;  %v3270_v23 = vrot.slane %v3268_v46, 5  ;;  %v3284_v5 = vshll.u32 %v2987_v63, 16  ;;  %v3094_v9 = vrot.slane %v3092_v2, 5  ;;  %v3688_v43 = vrot.slane %v3547_v22, 5 }
 0x1c4   : > { %3771 = vrot.lane.b32.xlu1 %v3699_v30, %s4404_s9  ;;  %v3280_v30 = vrot.slane %v3278_v25, 4  ;;  %v3089_v1 = vor.u32 %v3088_v56, %v3084_v53  ;;  %v3085_v19 = vsel %vm4560_vm10, %v3080_v7, %v3084_v53  ;;  %v2152_v25 = vshll.u32 %v1890_v33, 16 }
 0x1c5   : > { %v2654_v41 = vpop.permute.xlu0 %2653  ;;  %v3271_v4 = vor.u32 %v3270_v23, %v3267_v57  ;;  %v3286_v14 = vrot.slane %v3284_v5, 5  ;;  %v2151_v62 = vrot.slane %v2149_v48, 4 }
 0x1c6   : > { %2738 = vst.msk [vmem:[#allocation3 + $0x30] sm:$0xf] %vm2725_vm2, %v2654_v41  ;;  %v2656_v10 = vpop.permute.xlu1 %2655  ;;  %v3523_v41 = vld [vmem:[#allocation2 + $0x40] sm:$0xf]  ;;  %v3090_v47 = vrot.slane %v3089_v1, 4  ;;  %v2154_v63 = vrot.slane %v2152_v25, 5 }
 0x1c7   : > { %2739 = vst.msk [vmem:[#allocation3 + $0x34] sm:$0xf] %vm2725_vm2, %v2656_v10  ;;  %2304 = vrot.lane.b32.xlu0 %v1993_v60, %s4400_s5  ;;  %v3281_v60 = vor.u32 %v3280_v30, %v5381_v58  ;;  %v1866_v10 = vld [vmem:[#allocation2 + $0x24] sm:$0xf]  ;;  %v3272_v12 = vrot.slane %v3271_v4, 4 }
 0x1c8   : > { %2306 = vrot.lane.b32.xlu1 %v2003_v55, %s4400_s5  ;;  %v1960_v27 = vshll.u32 %v1866_v10, 16  ;;  %v2982_v25 = vld [vmem:[#allocation2 + $0x90] sm:$0xf] }
 0x1c9   : > { %v2686_v16 = vpop.permute.xlu0 %2685  ;;  %v3282_v15 = vrot.slane %v3281_v60, 4  ;;  %v3277_v36 = vsel %vm4560_vm10, %v3272_v12, %v5381_v58  ;;  %v3690_v58 = vrot.slane %v3688_v43, 4  ;;  %v1892_v60 = vld [vmem:[#allocation2 + $0x8c] sm:$0x1]  ;;  %v2428_v12 = vld [vmem:[#allocation2 + $0x28] sm:$0xf] }
 0x1ca   : > { %2754 = vst.msk [vmem:[#allocation3 + $0x70] sm:$0xf] %vm2725_vm2, %v2686_v16  ;;  %v2688_v24 = vpop.permute.xlu1 %2687  ;;  %v3522_v16 = vld [vmem:[#allocation2 + $0x3c] sm:$0xe]  ;;  %v1962_v46 = vrot.slane %v1960_v27, 5  ;;  %v2533_v20 = vrot.slane %v2428_v12, 5 }
 0x1cb   : > { %2755 = vst.msk [vmem:[#allocation3 + $0x74] sm:$0xf] %vm2725_vm2, %v2688_v24  ;;  %2336 = vrot.lane.b32.xlu0 %v2185_v13, %s4400_s5  ;;  %v1867_v13 = vld [vmem:[#allocation2 + $0x28] sm:$0xf]  ;;  %v1957_v24 = vshrl.u32 %v1866_v10, 16  ;;  %v4202_v37 = vrot.slane %v3522_v16, 9  ;;  %v3287_v39 = vsel %vm4560_vm10, %v3282_v15, %v3286_v14 }
 0x1cc   : > { %2338 = vrot.lane.b32.xlu1 %v2195_v17, %s4400_s5  ;;  %v3632_v17 = vrot.slane %v3523_v41, 5  ;;  %v1966_v31 = vshll.u32 %v1867_v13, 16 }
 0x1cd   : > { %v2848_v38 = vpop.permute.xlu0 %2847  ;;  %v1959_v45 = vrot.slane %v1957_v24, 4 }
 0x1ce   : > { %2932 = vst.msk [vmem:[#allocation3 + $0x30] sm:$0xf] %vm2919_vm3, %v2848_v38  ;;  %v2850_v44 = vpop.permute.xlu1 %2849  ;;  %v1891_v38 = vld [vmem:[#allocation2 + $0x88] sm:$0xf]  ;;  %v3634_v18 = vrot.slane %v3632_v17, 4  ;;  %v5406_v49 = vrot.slane %v1966_v31, 5  ;;  %v3633_v26 = vsel %vm4824_vm13, %v4202_v37, %v3632_v17 }
 0x1cf   : > { %2933 = vst.msk [vmem:[#allocation3 + $0x34] sm:$0xf] %vm2919_vm3, %v2850_v44  ;;  %2641 = vrot.lane.b32.xlu0 %v2541_v29, %s4401_s6  ;;  %v3095_v29 = vsel %vm4560_vm10, %v3090_v47, %v3094_v9  ;;  %v3546_v44 = vld [vmem:[#allocation2 + $0x9c] sm:$0xe]  ;;  %v2162_v53 = vshrl.u32 %v1891_v38, 16  ;;  %v1963_v30 = vor.u32 %v1962_v46, %v1959_v45 }
 0x1d0   : > { %2643 = vrot.lane.b32.xlu1 %v2544_v32, %s4401_s6  ;;  %v1970_v32 = vshrl.u32 %v1867_v13, 16  ;;  %v3636_v57 = vsel %vm4824_vm13, %v3634_v18, %v3635_v42  ;;  %v4210_v23 = vrot.slane %v3546_v44, 9  ;;  %v2451_v18 = vld [vmem:[#allocation2 + $0x84] sm:$0xe]  ;;  %v2453_v45 = vld [vmem:[#allocation2 + $0x8c] sm:$0x1] }
 0x1d1   : > { %v2880_v51 = vpop.permute.xlu0 %2879  ;;  %v1964_v7 = vrot.slane %v1963_v30, 4  ;;  %v2959_v46 = vld [vmem:[#allocation2 + $0x34] sm:$0xf]  ;;  %v3244_v30 = vshll.u32 %v2982_v25, 16 }
 0x1d2   : > { %2948 = vst.msk [vmem:[#allocation3 + $0x70] sm:$0xf] %vm2919_vm3, %v2880_v51  ;;  %v2882_v21 = vpop.permute.xlu1 %2881  ;;  %v1972_v51 = vrot.slane %v1970_v32, 4  ;;  %v3689_v5 = vsel %vm4824_vm13, %v4210_v23, %v3688_v43  ;;  %v2452_v32 = vld [vmem:[#allocation2 + $0x88] sm:$0xf] }
 0x1d3   : > { %2949 = vst.msk [vmem:[#allocation3 + $0x74] sm:$0xf] %vm2919_vm3, %v2882_v21  ;;  %2673 = vrot.lane.b32.xlu0 %v2597_v61, %s4401_s6  ;;  %v3548_v21 = vld [vmem:[#allocation2 + $0xa4] sm:$0x1]  ;;  %v1969_v16 = vsel %vm4560_vm10, %v1964_v7, %v5406_v49  ;;  %v2589_v42 = vrot.slane %v2452_v32, 5  ;;  %v3246_v7 = vrot.slane %v3244_v30, 5 }
 0x1d4   : > { %2675 = vrot.lane.b32.xlu1 %v2600_v52, %s4401_s6  ;;  %v2158_v52 = vshll.u32 %v1891_v38, 16  ;;  %v1973_v1 = vor.u32 %v1972_v51, %v5406_v49  ;;  %v2958_v43 = vld [vmem:[#allocation2 + $0x30] sm:$0xf]  ;;  %v4193_v49 = vrot.slane %v2451_v18, 9 }
 0x1d5   : > { %v3409_v0 = vpop.permute.xlu0 %3408  ;;  %v3052_v51 = vshll.u32 %v2958_v43, 16 }
 0x1d6   : > { %3493 = vst.msk [vmem:[#allocation3 + $0x30] sm:$0xf] %vm3480_vm4, %v3409_v0  ;;  %v3411_v3 = vpop.permute.xlu1 %3410  ;;  %v2160_v2 = vrot.slane %v2158_v52, 5  ;;  %v1974_v9 = vrot.slane %v1973_v1, 4  ;;  %v2983_v52 = vld [vmem:[#allocation2 + $0x94] sm:$0xf] }
 0x1d7   : > { %3494 = vst.msk [vmem:[#allocation3 + $0x34] sm:$0xf] %vm3480_vm4, %v3411_v3  ;;  %2835 = vrot.lane.b32.xlu0 %v2765_v59, %s4402_s7  ;;  %v1976_v59 = vshll.u32 %v1868_v50, 16  ;;  %v2164_v3 = vrot.slane %v2162_v53, 4  ;;  %v3049_v50 = vshrl.u32 %v2958_v43, 16 }
 0x1d8   : > { %2837 = vrot.lane.b32.xlu1 %v2766_v54, %s4402_s7  ;;  %v3691_v54 = vrot.slane %v3548_v21, 5  ;;  %v2592_v21 = vrot.slane %v2453_v45, 5  ;;  %v3544_v43 = vld [vmem:[#allocation2 + $0x94] sm:$0xf] }
 0x1d9   : > { %v3441_v55 = vpop.permute.xlu0 %3440  ;;  %v1978_v41 = vrot.slane %v1976_v59, 5  ;;  %v2165_v10 = vor.u32 %v2164_v3, %v2160_v2  ;;  %v3250_v59 = vshll.u32 %v2983_v52, 16 }
 0x1da   : > { %3509 = vst.msk [vmem:[#allocation3 + $0x70] sm:$0xf] %vm3480_vm4, %v3441_v55  ;;  %v3443_v11 = vpop.permute.xlu1 %3442  ;;  %v2155_v55 = vor.u32 %v2154_v63, %v2151_v62  ;;  %v3692_v47 = vsel %vm4824_vm13, %v3690_v58, %v3691_v54  ;;  %v3241_v58 = vshrl.u32 %v2982_v25, 16  ;;  %v3254_v62 = vshrl.u32 %v2983_v52, 16 }
 0x1db   : > { %3510 = vst.msk [vmem:[#allocation3 + $0x74] sm:$0xf] %vm3480_vm4, %v3443_v11  ;;  %2867 = vrot.lane.b32.xlu0 %v2781_v6, %s4402_s7  ;;  %v2168_v11 = vshll.u32 %v1892_v60, 16  ;;  %v1979_v24 = vsel %vm4560_vm10, %v1974_v9, %v1978_v41  ;;  %v2166_v27 = vrot.slane %v2165_v10, 4  ;;  %v2590_v63 = vsel %vm4824_vm13, %v4193_v49, %v2589_v42  ;;  %v2984_v9 = vld [vmem:[#allocation2 + $0x98] sm:$0x1] }
 0x1dc   : > { %2869 = vrot.lane.b32.xlu1 %v2782_v8, %s4402_s7  ;;  %v2156_v17 = vrot.slane %v2155_v55, 4  ;;  %v3054_v54 = vrot.slane %v3052_v51, 5  ;;  %v5463_v41 = vrot.slane %v3250_v59, 5  ;;  %v3256_v55 = vrot.slane %v3254_v62, 4  ;;  %v1887_v49 = vld [vmem:[#allocation2 + $0x78] sm:$0xf] }
 0x1dd   : > { %v3746_v28 = vpop.permute.xlu0 %3745  ;;  %v2125_v59 = vshrl.u32 %v1887_v49, 16  ;;  %v2128_v62 = vshll.u32 %v1887_v49, 16 }
 0x1de   : > { %3830 = vst.msk [vmem:[#allocation3 + $0x30] sm:$0xf] %vm3817_vm5, %v3746_v28  ;;  %v3748_v34 = vpop.permute.xlu1 %3747  ;;  %v2170_v28 = vrot.slane %v2168_v11, 5  ;;  %v2764_v11 = vld [vmem:[#allocation2 + $0x34] sm:$0xf] }
 0x1df   : > { %3831 = vst.msk [vmem:[#allocation3 + $0x34] sm:$0xf] %vm3817_vm5, %v3748_v34  ;;  %3396 = vrot.lane.b32.xlu0 %v3085_v19, %s4403_s8  ;;  %v2427_v19 = vld [vmem:[#allocation2 + $0x24] sm:$0xe]  ;;  %v2161_v34 = vsel %vm4560_vm10, %v2156_v17, %v2160_v2  ;;  %v3260_v17 = vshll.u32 %v2984_v9, 16  ;;  %v2130_v9 = vrot.slane %v2128_v62, 5 }
 0x1e0   : > { %3398 = vrot.lane.b32.xlu1 %v3095_v29, %s4403_s8  ;;  %v2429_v29 = vld [vmem:[#allocation2 + $0x2c] sm:$0x1]  ;;  %v4185_v33 = vrot.slane %v2427_v19, 9  ;;  %v2779_v19 = vld [vmem:[#allocation2 + $0x90] sm:$0xf] }
 0x1e1   : > { %v3778_v61 = vpop.permute.xlu0 %3777  ;;  %v2536_v37 = vrot.slane %v2429_v29, 5  ;;  %v2979_v62 = vld [vmem:[#allocation2 + $0x84] sm:$0xf] }
 0x1e2   : > { %3846 = vst.msk [vmem:[#allocation3 + $0x70] sm:$0xf] %vm3817_vm5, %v3778_v61  ;;  %v3780_v56 = vpop.permute.xlu1 %3779  ;;  %v2534_v48 = vsel %vm4824_vm13, %v4185_v33, %v2533_v20 }
 0x1e3   : > { %3847 = vst.msk [vmem:[#allocation3 + $0x74] sm:$0xf] %vm3817_vm5, %v3780_v56  ;;  %3428 = vrot.lane.b32.xlu0 %v3277_v36, %s4403_s8  ;;  %v2535_v36 = vrot.slane %v2533_v20, 4  ;;  %v2591_v56 = vrot.slane %v2589_v42, 4  ;;  %v3521_v42 = vld [vmem:[#allocation2 + $0x38] sm:$0x1] }
 0x1e4   : > { %3430 = vrot.lane.b32.xlu1 %v3287_v39, %s4403_s8  ;;  %v2171_v39 = vsel %vm4560_vm10, %v2166_v27, %v2170_v28  ;;  %v2780_v27 = vld [vmem:[#allocation2 + $0x94] sm:$0xf] }
 0x1e5   : > { %v1784_v0 = vpop.permute.xlu0 %1783  ;;  %v2537_v61 = vsel %vm4824_vm13, %v2535_v36, %v2536_v37  ;;  %v2593_v2 = vsel %vm4824_vm13, %v2591_v56, %v2592_v21  ;;  %v3262_v37 = vrot.slane %v3260_v17, 5 }
 0x1e6   : > { %1854 = vst.msk [vmem:[#allocation3 + $0x68] sm:$0xf] %vm1827_vm0, %v1784_v0  ;;  %v1786_v4 = vpop.permute.xlu1 %1785  ;;  %v4320_v6 = vld [vmem:[#allocation3 + $0x30] sm:$0xff]   ;;  %v3051_v0 = vrot.slane %v3049_v50, 4 }
 0x1e7   : > { %1855 = vst.msk [vmem:[#allocation3 + $0x6c] sm:$0xf] %vm1827_vm0, %v1786_v4  ;;  %3733 = vrot.lane.b32.xlu0 %v3633_v26, %s4404_s9  ;;  %v4004_v14 = vsel %vm3981_vm6, %v4320_v6, 0  ;;  %v3058_v26 = vshll.u32 %v2959_v46, 16  ;;  %v3243_v6 = vrot.slane %v3241_v58, 4 }
 0x1e8   : > { %3735 = vrot.lane.b32.xlu1 %v3636_v57, %s4404_s9  ;;  %v3062_v57 = vshrl.u32 %v2959_v46, 16 }
 0x1e9   : > { %v2313_v8 = vpop.permute.xlu0 %2312  ;;  %v3060_v3 = vrot.slane %v3058_v26, 5  ;;  %v3628_v26 = vrot.slane %v3521_v42, 5 }
 0x1ea   : > { %2399 = vst.msk [vmem:[#allocation3 + $0x28] sm:$0xf] %vm2388_vm1, %v2313_v8  ;;  %v2315_v13 = vpop.permute.xlu1 %2314  ;;  %v4319_v15 = vld [vmem:[#allocation3 + $0x70] sm:$0xff]   ;;  %v3064_v4 = vrot.slane %v3062_v57, 4  ;;  %v2763_v8 = vld [vmem:[#allocation2 + $0x30] sm:$0xf] }
 0x1eb   : > { %2400 = vst.msk [vmem:[#allocation3 + $0x2c] sm:$0xf] %vm2388_vm1, %v2315_v13  ;;  %3765 = vrot.lane.b32.xlu0 %v3689_v5, %s4404_s9  ;;  %4259 = vmatprep.subr.msk.bf16.mxu0 %vm3981_vm6, %v4319_v15  ;;  %v2960_v5 = vld [vmem:[#allocation2 + $0x38] sm:$0x1]  ;;  %v3681_v57 = vrot.slane %v3544_v43, 5 }
 0x1ec   : > { %3767 = vrot.lane.b32.xlu1 %v3692_v47, %s4404_s9  ;;  %4243 = vmatpush3.bf16.xpose.msra.mxu0 %v4004_v14  ;;  %v3055_v47 = vor.u32 %v3054_v54, %v3051_v0  ;;  %v3065_v12 = vor.u32 %v3064_v4, %v3060_v3  ;;  %v3068_v13 = vshll.u32 %v2960_v5, 16  ;;  %v3247_v14 = vor.u32 %v3246_v7, %v3243_v6  ;;  %v1865_v54 = vld [vmem:[#allocation2 + $0x20] sm:$0x1] }
 0x1ed   : > { %v2345_v22 = vpop.permute.xlu0 %2344 }
 0x1ee   : > { %2415 = vst.msk [vmem:[#allocation3 + $0x68] sm:$0xf] %vm2388_vm1, %v2345_v22  ;;  %v2347_v31 = vpop.permute.xlu1 %2346  ;;  %v3056_v20 = vrot.slane %v3055_v47, 4  ;;  %v3520_v22 = vld [vmem:[#allocation2 + $0x34] sm:$0xf]  ;;  %v3066_v28 = vrot.slane %v3065_v12, 4 }
 0x1ef   : > { %2416 = vst.msk [vmem:[#allocation3 + $0x6c] sm:$0xf] %vm2388_vm1, %v2347_v31  ;;  %2300 = vrot.lane.b32.xlu0 %v1969_v16, %s4400_s5  ;;  %v3257_v16 = vor.u32 %v3256_v55, %v5463_v41  ;;  %v3070_v29 = vrot.slane %v3068_v13, 5  ;;  %v1863_v31 = vld [vmem:[#allocation2 + $0x18] sm:$0xf]  ;;  %v3248_v33 = vrot.slane %v3247_v14, 4 }
 0x1f0   : > { %2302 = vrot.lane.b32.xlu1 %v1979_v24, %s4400_s5  ;;  %v3061_v18 = vsel %vm4560_vm10, %v3056_v20, %v3060_v3  ;;  %v1936_v45 = vshll.u32 %v1863_v31, 16  ;;  %v2127_v47 = vrot.slane %v2125_v59, 4 }
 0x1f1   : > { %v2650_v38 = vpop.permute.xlu0 %2649  ;;  %v3258_v36 = vrot.slane %v3257_v16, 4  ;;  %v3253_v51 = vsel %vm4560_vm10, %v3248_v33, %v5463_v41  ;;  %v3683_v41 = vrot.slane %v3681_v57, 4  ;;  %v1889_v16 = vld [vmem:[#allocation2 + $0x80] sm:$0x1] }
 0x1f2   : > { %2736 = vst.msk [vmem:[#allocation3 + $0x28] sm:$0xf] %vm2725_vm2, %v2650_v38  ;;  %v2652_v44 = vpop.permute.xlu1 %2651  ;;  %v3519_v38 = vld [vmem:[#allocation2 + $0x30] sm:$0xe]  ;;  %v1938_v30 = vrot.slane %v1936_v45, 5 }
 0x1f3   : > { %2737 = vst.msk [vmem:[#allocation3 + $0x2c] sm:$0xf] %vm2725_vm2, %v2652_v44  ;;  %2332 = vrot.lane.b32.xlu0 %v2161_v34, %s4400_s5  ;;  %v1864_v34 = vld [vmem:[#allocation2 + $0x1c] sm:$0xf]  ;;  %v1933_v44 = vshrl.u32 %v1863_v31, 16  ;;  %v4201_v52 = vrot.slane %v3519_v38, 9  ;;  %v3263_v56 = vsel %vm4560_vm10, %v3258_v36, %v3262_v37 }
 0x1f4   : > { %2334 = vrot.lane.b32.xlu1 %v2171_v39, %s4400_s5  ;;  %v3625_v39 = vrot.slane %v3520_v22, 5  ;;  %v1942_v25 = vshll.u32 %v1864_v34, 16  ;;  %v2131_v22 = vor.u32 %v2130_v9, %v2127_v47  ;;  %v2144_v31 = vshll.u32 %v1889_v16, 16  ;;  %v2424_v38 = vld [vmem:[#allocation2 + $0x18] sm:$0xe] }
 0x1f5   : > { %v2682_v53 = vpop.permute.xlu0 %2681  ;;  %v1935_v58 = vrot.slane %v1933_v44, 4  ;;  %v2426_v45 = vld [vmem:[#allocation2 + $0x20] sm:$0x1] }
 0x1f6   : > { %2752 = vst.msk [vmem:[#allocation3 + $0x68] sm:$0xf] %vm2725_vm2, %v2682_v53  ;;  %v2684_v23 = vpop.permute.xlu1 %2683  ;;  %v1888_v53 = vld [vmem:[#allocation2 + $0x7c] sm:$0xf]  ;;  %v3627_v21 = vrot.slane %v3625_v39, 4  ;;  %v1944_v0 = vrot.slane %v1942_v25, 5  ;;  %v3626_v5 = vsel %vm4824_vm13, %v4201_v52, %v3625_v39 }
 0x1f7   : > { %2753 = vst.msk [vmem:[#allocation3 + $0x6c] sm:$0xf] %vm2725_vm2, %v2684_v23  ;;  %2637 = vrot.lane.b32.xlu0 %v2534_v48, %s4401_s6  ;;  %v3071_v48 = vsel %vm4560_vm10, %v3066_v28, %v3070_v29  ;;  %v3543_v23 = vld [vmem:[#allocation2 + $0x90] sm:$0xe]  ;;  %v2138_v3 = vshrl.u32 %v1888_v53, 16  ;;  %v1939_v55 = vor.u32 %v1938_v30, %v1935_v58  ;;  %v2132_v37 = vrot.slane %v2131_v22, 4 }
 0x1f8   : > { %2639 = vrot.lane.b32.xlu1 %v2537_v61, %s4401_s6  ;;  %v1946_v61 = vshrl.u32 %v1864_v34, 16  ;;  %v3629_v6 = vsel %vm4824_vm13, %v3627_v21, %v3628_v26  ;;  %v4209_v7 = vrot.slane %v3543_v23, 9  ;;  %v2146_v44 = vrot.slane %v2144_v31, 5  ;;  %v2449_v25 = vld [vmem:[#allocation2 + $0x7c] sm:$0xf] }
 0x1f9   : > { %v2844_v1 = vpop.permute.xlu0 %2843  ;;  %v2529_v52 = vrot.slane %v2426_v45, 5  ;;  %v2448_v21 = vld [vmem:[#allocation2 + $0x78] sm:$0xe]  ;;  %v2582_v26 = vrot.slane %v2449_v25, 5  ;;  %v2450_v58 = vld [vmem:[#allocation2 + $0x80] sm:$0x1] }
 0x1fa   : > { %2930 = vst.msk [vmem:[#allocation3 + $0x28] sm:$0xf] %vm2919_vm3, %v2844_v1  ;;  %v2846_v60 = vpop.permute.xlu1 %2845  ;;  %v1948_v1 = vrot.slane %v1946_v61, 4  ;;  %v3682_v17 = vsel %vm4824_vm13, %v4209_v7, %v3681_v57  ;;  %v4184_v61 = vrot.slane %v2424_v38, 9  ;;  %v2955_v57 = vld [vmem:[#allocation2 + $0x24] sm:$0xf] }
 0x1fb   : > { %2931 = vst.msk [vmem:[#allocation3 + $0x2c] sm:$0xf] %vm2919_vm3, %v2846_v60  ;;  %2669 = vrot.lane.b32.xlu0 %v2590_v63, %s4401_s6  ;;  %v3545_v60 = vld [vmem:[#allocation2 + $0x98] sm:$0x1]  ;;  %v2956_v30 = vld [vmem:[#allocation2 + $0x28] sm:$0xf] }
 0x1fc   : > { %2671 = vrot.lane.b32.xlu1 %v2593_v2, %s4401_s6  ;;  %v2134_v2 = vshll.u32 %v1888_v53, 16  ;;  %v1949_v12 = vor.u32 %v1948_v1, %v1944_v0  ;;  %v3028_v1 = vshll.u32 %v2955_v57, 16  ;;  %v2778_v45 = vld [vmem:[#allocation2 + $0x88] sm:$0xf]  ;;  %v1860_v25 = vld [vmem:[#allocation2 + $0xc] sm:$0xf] }
 0x1fd   : > { %v2876_v10 = vpop.permute.xlu0 %2875 }
 0x1fe   : > { %2946 = vst.msk [vmem:[#allocation3 + $0x68] sm:$0xf] %vm2919_vm3, %v2876_v10  ;;  %v2878_v15 = vpop.permute.xlu1 %2877  ;;  %v2136_v13 = vrot.slane %v2134_v2, 5  ;;  %v1950_v28 = vrot.slane %v1949_v12, 4  ;;  %v2980_v2 = vld [vmem:[#allocation2 + $0x88] sm:$0xf] }
 0x1ff   : > { %2947 = vst.msk [vmem:[#allocation3 + $0x6c] sm:$0xf] %vm2919_vm3, %v2878_v15  ;;  %2831 = vrot.lane.b32.xlu0 %v2763_v8, %s4402_s7  ;;  %v1952_v8 = vshll.u32 %v1865_v54, 16  ;;  %v2140_v15 = vrot.slane %v2138_v3, 4  ;;  %v3025_v54 = vshrl.u32 %v2955_v57, 16  ;;  %v3230_v47 = vshrl.u32 %v2980_v2, 16 }
 0x200   : > { %2833 = vrot.lane.b32.xlu1 %v2764_v11, %s4402_s7  ;;  %v3684_v11 = vrot.slane %v3545_v60, 5  ;;  %v2585_v60 = vrot.slane %v2450_v58, 5  ;;  %v3541_v57 = vld [vmem:[#allocation2 + $0x88] sm:$0xf]  ;;  %v1912_v58 = vshll.u32 %v1860_v25, 16 }
 0x201   : > { %v3405_v24 = vpop.permute.xlu0 %3404  ;;  %v1954_v20 = vrot.slane %v1952_v8, 5  ;;  %v2141_v29 = vor.u32 %v2140_v15, %v2136_v13  ;;  %v3226_v8 = vshll.u32 %v2980_v2, 16 }
 0x202   : > { %3491 = vst.msk [vmem:[#allocation3 + $0x28] sm:$0xf] %vm3480_vm4, %v3405_v24  ;;  %v3407_v32 = vpop.permute.xlu1 %3406 }
 0x203   : > { %3492 = vst.msk [vmem:[#allocation3 + $0x2c] sm:$0xf] %vm3480_vm4, %v3407_v32  ;;  %2863 = vrot.lane.b32.xlu0 %v2779_v19, %s4402_s7  ;;  %v1940_v19 = vrot.slane %v1939_v55, 4  ;;  %v2425_v32 = vld [vmem:[#allocation2 + $0x1c] sm:$0xf]  ;;  %v1955_v42 = vsel %vm4560_vm10, %v1950_v28, %v1954_v20  ;;  %v2142_v43 = vrot.slane %v2141_v29, 4 }
 0x204   : > { %2865 = vrot.lane.b32.xlu1 %v2780_v27, %s4402_s7  ;;  %v3685_v27 = vsel %vm4824_vm13, %v3683_v41, %v3684_v11  ;;  %v2526_v39 = vrot.slane %v2425_v32, 5  ;;  %v3217_v41 = vshrl.u32 %v2979_v62, 16  ;;  %v3220_v55 = vshll.u32 %v2979_v62, 16  ;;  %v2981_v29 = vld [vmem:[#allocation2 + $0x8c] sm:$0x1] }
 0x205   : > { %v3437_v46 = vpop.permute.xlu0 %3436  ;;  %v1945_v34 = vsel %vm4560_vm10, %v1940_v19, %v1944_v0  ;;  %v4192_v0 = vrot.slane %v2448_v21, 9  ;;  %v3030_v11 = vrot.slane %v3028_v1, 5  ;;  %v5541_v22 = vrot.slane %v3226_v8, 5  ;;  %v2762_v32 = vld [vmem:[#allocation2 + $0x28] sm:$0xf] }
 0x206   : > { %3507 = vst.msk [vmem:[#allocation3 + $0x68] sm:$0xf] %vm3480_vm4, %v3437_v46  ;;  %v3439_v50 = vpop.permute.xlu1 %3438  ;;  %v2527_v59 = vsel %vm4824_vm13, %v4184_v61, %v2526_v39  ;;  %v3219_v19 = vrot.slane %v3217_v41, 4  ;;  %v3222_v20 = vrot.slane %v3220_v55, 5  ;;  %v1914_v55 = vrot.slane %v1912_v58, 5 }
 0x207   : > { %3508 = vst.msk [vmem:[#allocation3 + $0x6c] sm:$0xf] %vm3480_vm4, %v3439_v50  ;;  %3392 = vrot.lane.b32.xlu0 %v3061_v18, %s4403_s8  ;;  %v2137_v50 = vsel %vm4560_vm10, %v2132_v37, %v2136_v13  ;;  %v2583_v9 = vsel %vm4824_vm13, %v4192_v0, %v2582_v26  ;;  %v1884_v0 = vld [vmem:[#allocation2 + $0x6c] sm:$0xf] }
 0x208   : > { %3394 = vrot.lane.b32.xlu1 %v3071_v48, %s4403_s8  ;;  %v3223_v37 = vor.u32 %v3222_v20, %v3219_v19  ;;  %v2101_v8 = vshrl.u32 %v1884_v0, 16 }
 0x209   : > { %v3742_v63 = vpop.permute.xlu0 %3741 }
 0x20a   : > { %3828 = vst.msk [vmem:[#allocation3 + $0x28] sm:$0xf] %vm3817_vm5, %v3742_v63  ;;  %v3744_v4 = vpop.permute.xlu1 %3743 }
 0x20b   : > { %3829 = vst.msk [vmem:[#allocation3 + $0x2c] sm:$0xf] %vm3817_vm5, %v3744_v4  ;;  %3424 = vrot.lane.b32.xlu0 %v3253_v51, %s4403_s8  ;;  %v2528_v51 = vrot.slane %v2526_v39, 4  ;;  %v2584_v4 = vrot.slane %v2582_v26, 4  ;;  %v3236_v39 = vshll.u32 %v2981_v29, 16 }
 0x20c   : > { %3426 = vrot.lane.b32.xlu1 %v3263_v56, %s4403_s8  ;;  %v2147_v56 = vsel %vm4560_vm10, %v2142_v43, %v2146_v44  ;;  %v3517_v43 = vld [vmem:[#allocation2 + $0x28] sm:$0xf]  ;;  %v3518_v26 = vld [vmem:[#allocation2 + $0x2c] sm:$0x1] }
 0x20d   : > { %v3774_v10 = vpop.permute.xlu0 %3773  ;;  %v2530_v63 = vsel %vm4824_vm13, %v2528_v51, %v2529_v52  ;;  %v2586_v13 = vsel %vm4824_vm13, %v2584_v4, %v2585_v60  ;;  %v3238_v52 = vrot.slane %v3236_v39, 5 }
 0x20e   : > { %3844 = vst.msk [vmem:[#allocation3 + $0x68] sm:$0xf] %vm3817_vm5, %v3774_v10  ;;  %v3776_v14 = vpop.permute.xlu1 %3775  ;;  %v3027_v10 = vrot.slane %v3025_v54, 4 }
 0x20f   : > { %3845 = vst.msk [vmem:[#allocation3 + $0x6c] sm:$0xf] %vm3817_vm5, %v3776_v14  ;;  %3729 = vrot.lane.b32.xlu0 %v3626_v5, %s4404_s9  ;;  %v3034_v5 = vshll.u32 %v2956_v30, 16 }
 0x210   : > { %3731 = vrot.lane.b32.xlu1 %v3629_v6, %s4404_s9  ;;  %v3038_v6 = vshrl.u32 %v2956_v30, 16  ;;  %v3031_v28 = vor.u32 %v3030_v11, %v3027_v10  ;;  %v3542_v10 = vld [vmem:[#allocation2 + $0x8c] sm:$0x1] }
 0x211   : > { %v2309_v24 = vpop.permute.xlu0 %2308  ;;  %v3036_v15 = vrot.slane %v3034_v5, 5  ;;  %v3621_v5 = vrot.slane %v3518_v26, 5 }
 0x212   : > { %2397 = vst.msk [vmem:[#allocation3 + $0x20] sm:$0xf] %vm2388_vm1, %v2309_v24  ;;  %v2311_v33 = vpop.permute.xlu1 %2310  ;;  %v4322_v36 = vld [vmem:[#allocation3 + $0x28] sm:$0xff]   ;;  %v3040_v14 = vrot.slane %v3038_v6, 4  ;;  %v3232_v24 = vrot.slane %v3230_v47, 4  ;;  %v3674_v6 = vrot.slane %v3541_v57, 5 }
 0x213   : > { %2398 = vst.msk [vmem:[#allocation3 + $0x24] sm:$0xf] %vm2388_vm1, %v2311_v33  ;;  %3761 = vrot.lane.b32.xlu0 %v3682_v17, %s4404_s9  ;;  %v4001_v49 = vsel %vm3981_vm6, %v4322_v36, 0  ;;  %v2957_v17 = vld [vmem:[#allocation2 + $0x2c] sm:$0x1]  ;;  %v2104_v47 = vshll.u32 %v1884_v0, 16 }
 0x214   : > { %3763 = vrot.lane.b32.xlu1 %v3685_v27, %s4404_s9  ;;  %v2761_v27 = vld [vmem:[#allocation2 + $0x24] sm:$0xf]  ;;  %v3041_v33 = vor.u32 %v3040_v14, %v3036_v15  ;;  %v3233_v38 = vor.u32 %v3232_v24, %v5541_v22  ;;  %v3677_v24 = vrot.slane %v3542_v10, 5 }
 0x215   : > { %v2341_v18 = vpop.permute.xlu0 %2340  ;;  %v2106_v29 = vrot.slane %v2104_v47, 5 }
 0x216   : > { %2413 = vst.msk [vmem:[#allocation3 + $0x60] sm:$0xf] %vm2388_vm1, %v2341_v18  ;;  %v2343_v46 = vpop.permute.xlu1 %2342  ;;  %v4321_v48 = vld [vmem:[#allocation3 + $0x68] sm:$0xff]   ;;  %v3234_v51 = vrot.slane %v3233_v38, 4 }
 0x217   : > { %2414 = vst.msk [vmem:[#allocation3 + $0x64] sm:$0xf] %vm2388_vm1, %v2343_v46  ;;  %2296 = vrot.lane.b32.xlu0 %v1945_v34, %s4400_s5  ;;  %4260 = vmatprep.subr.msk.bf16.mxu0 %vm3981_vm6, %v4321_v48  ;;  %v3044_v34 = vshll.u32 %v2957_v17, 16  ;;  %v2777_v18 = vld [vmem:[#allocation2 + $0x84] sm:$0xf]  ;;  %v3042_v46 = vrot.slane %v3041_v33, 4 }
 0x218   : > { %2298 = vrot.lane.b32.xlu1 %v1955_v42, %s4400_s5  ;;  %4245 = vmatpush3.bf16.xpose.msra.mxu0 %v4001_v49  ;;  %v3032_v42 = vrot.slane %v3031_v28, 4  ;;  %v3224_v49 = vrot.slane %v3223_v37, 4  ;;  %v3239_v4 = vsel %vm4560_vm10, %v3234_v51, %v3238_v52  ;;  %v2103_v28 = vrot.slane %v2101_v8, 4 }
 0x219   : > { %v2646_v53 = vpop.permute.xlu0 %2645  ;;  %v3046_v48 = vrot.slane %v3044_v34, 5 }
 0x21a   : > { %2734 = vst.msk [vmem:[#allocation3 + $0x20] sm:$0xf] %vm2725_vm2, %v2646_v53  ;;  %v2648_v23 = vpop.permute.xlu1 %2647  ;;  %v3516_v53 = vld [vmem:[#allocation2 + $0x24] sm:$0xe]  ;;  %v3037_v21 = vsel %vm4560_vm10, %v3032_v42, %v3036_v15  ;;  %v3229_v1 = vsel %vm4560_vm10, %v3224_v49, %v5541_v22  ;;  %v3676_v22 = vrot.slane %v3674_v6, 4  ;;  %v2107_v42 = vor.u32 %v2106_v29, %v2103_v28 }
 0x21b   : > { %2735 = vst.msk [vmem:[#allocation3 + $0x24] sm:$0xf] %vm2725_vm2, %v2648_v23  ;;  %2328 = vrot.lane.b32.xlu0 %v2137_v50, %s4400_s5  ;;  %v1861_v50 = vld [vmem:[#allocation2 + $0x10] sm:$0xf]  ;;  %v1909_v23 = vshrl.u32 %v1860_v25, 16  ;;  %v4200_v2 = vrot.slane %v3516_v53, 9 }
 0x21c   : > { %2330 = vrot.lane.b32.xlu1 %v2147_v56, %s4400_s5  ;;  %v3618_v56 = vrot.slane %v3517_v43, 5  ;;  %v1918_v62 = vshll.u32 %v1861_v50, 16  ;;  %v2422_v49 = vld [vmem:[#allocation2 + $0x10] sm:$0xf]  ;;  %v2108_v52 = vrot.slane %v2107_v42, 4 }
 0x21d   : > { %v2678_v3 = vpop.permute.xlu0 %2677  ;;  %v1911_v41 = vrot.slane %v1909_v23, 4  ;;  %v2421_v23 = vld [vmem:[#allocation2 + $0xc] sm:$0xe]  ;;  %v2519_v58 = vrot.slane %v2422_v49, 5 }
 0x21e   : > { %2750 = vst.msk [vmem:[#allocation3 + $0x60] sm:$0xf] %vm2725_vm2, %v2678_v3  ;;  %v2680_v7 = vpop.permute.xlu1 %2679  ;;  %v1885_v3 = vld [vmem:[#allocation2 + $0x70] sm:$0xf]  ;;  %v3620_v60 = vrot.slane %v3618_v56, 4  ;;  %v1920_v11 = vrot.slane %v1918_v62, 5  ;;  %v3619_v17 = vsel %vm4824_vm13, %v4200_v2, %v3618_v56 }
 0x21f   : > { %2751 = vst.msk [vmem:[#allocation3 + $0x64] sm:$0xf] %vm2725_vm2, %v2680_v7  ;;  %2633 = vrot.lane.b32.xlu0 %v2527_v59, %s4401_s6  ;;  %v3047_v59 = vsel %vm4560_vm10, %v3042_v46, %v3046_v48  ;;  %v3540_v7 = vld [vmem:[#allocation2 + $0x84] sm:$0xe]  ;;  %v2114_v15 = vshrl.u32 %v1885_v3, 16 }
 0x220   : > { %2635 = vrot.lane.b32.xlu1 %v2530_v63, %s4401_s6  ;;  %v1922_v63 = vshrl.u32 %v1861_v50, 16  ;;  %v3622_v19 = vsel %vm4824_vm13, %v3620_v60, %v3621_v5  ;;  %v4208_v20 = vrot.slane %v3540_v7, 9  ;;  %v2446_v56 = vld [vmem:[#allocation2 + $0x70] sm:$0xf]  ;;  %v2423_v62 = vld [vmem:[#allocation2 + $0x14] sm:$0x1] }
 0x221   : > { %v2840_v12 = vpop.permute.xlu0 %2839  ;;  %v2116_v37 = vrot.slane %v2114_v15, 4  ;;  %v2445_v2 = vld [vmem:[#allocation2 + $0x6c] sm:$0xe]  ;;  %v2521_v5 = vrot.slane %v2519_v58, 4  ;;  %v2952_v7 = vld [vmem:[#allocation2 + $0x18] sm:$0xf] }
 0x222   : > { %2928 = vst.msk [vmem:[#allocation3 + $0x20] sm:$0xf] %vm2919_vm3, %v2840_v12  ;;  %v2842_v16 = vpop.permute.xlu1 %2841  ;;  %v1924_v12 = vrot.slane %v1922_v63, 4  ;;  %v3675_v39 = vsel %vm4824_vm13, %v4208_v20, %v3674_v6  ;;  %v2575_v63 = vrot.slane %v2446_v56, 5  ;;  %v2522_v6 = vrot.slane %v2423_v62, 5 }
 0x223   : > { %2929 = vst.msk [vmem:[#allocation3 + $0x24] sm:$0xf] %vm2919_vm3, %v2842_v16  ;;  %2665 = vrot.lane.b32.xlu0 %v2583_v9, %s4401_s6  ;;  %v1862_v16 = vld [vmem:[#allocation2 + $0x14] sm:$0x1]  ;;  %v4191_v8 = vrot.slane %v2445_v2, 9 }
 0x224   : > { %2667 = vrot.lane.b32.xlu1 %v2586_v13, %s4401_s6  ;;  %v2110_v13 = vshll.u32 %v1885_v3, 16  ;;  %v1928_v33 = vshll.u32 %v1862_v16, 16  ;;  %v2447_v3 = vld [vmem:[#allocation2 + $0x74] sm:$0x1]  ;;  %v2577_v47 = vrot.slane %v2575_v63, 4  ;;  %v2523_v15 = vsel %vm4824_vm13, %v2521_v5, %v2522_v6 }
 0x225   : > { %v2872_v31 = vpop.permute.xlu0 %2871  ;;  %v2977_v20 = vld [vmem:[#allocation2 + $0x7c] sm:$0xf]  ;;  %v3515_v6 = vld [vmem:[#allocation2 + $0x20] sm:$0x1] }
 0x226   : > { %2944 = vst.msk [vmem:[#allocation3 + $0x60] sm:$0xf] %vm2919_vm3, %v2872_v31  ;;  %v2874_v36 = vpop.permute.xlu1 %2873  ;;  %v2112_v34 = vrot.slane %v2110_v13, 5  ;;  %v1930_v48 = vrot.slane %v1928_v33, 5  ;;  %v3514_v62 = vld [vmem:[#allocation2 + $0x1c] sm:$0xf] }
 0x227   : > { %2945 = vst.msk [vmem:[#allocation3 + $0x64] sm:$0xf] %vm2919_vm3, %v2874_v36  ;;  %2827 = vrot.lane.b32.xlu0 %v2761_v27, %s4402_s7  ;;  %v1915_v27 = vor.u32 %v1914_v55, %v1911_v41  ;;  %v1886_v36 = vld [vmem:[#allocation2 + $0x74] sm:$0x1]  ;;  %v2953_v55 = vld [vmem:[#allocation2 + $0x1c] sm:$0xf] }
 0x228   : > { %2829 = vrot.lane.b32.xlu1 %v2762_v32, %s4402_s7  ;;  %v1925_v32 = vor.u32 %v1924_v12, %v1920_v11  ;;  %v2120_v43 = vshll.u32 %v1886_v36, 16  ;;  %v2117_v25 = vor.u32 %v2116_v37, %v2112_v34  ;;  %v3004_v12 = vshll.u32 %v2952_v7, 16 }
 0x229   : > { %v3401_v44 = vpop.permute.xlu0 %3400  ;;  %v3014_v16 = vshrl.u32 %v2953_v55, 16  ;;  %v3202_v36 = vshll.u32 %v2977_v20, 16  ;;  %v3206_v37 = vshrl.u32 %v2977_v20, 16 }
 0x22a   : > { %3489 = vst.msk [vmem:[#allocation3 + $0x20] sm:$0xf] %vm3480_vm4, %v3401_v44  ;;  %v3403_v61 = vpop.permute.xlu1 %3402  ;;  %v1926_v46 = vrot.slane %v1925_v32, 4  ;;  %v2122_v53 = vrot.slane %v2120_v43, 5  ;;  %v2118_v57 = vrot.slane %v2117_v25, 4  ;;  %v3006_v28 = vrot.slane %v3004_v12, 5 }
 0x22b   : > { %3490 = vst.msk [vmem:[#allocation3 + $0x24] sm:$0xf] %vm3480_vm4, %v3403_v61  ;;  %2859 = vrot.lane.b32.xlu0 %v2777_v18, %s4402_s7  ;;  %v1916_v18 = vrot.slane %v1915_v27, 4  ;;  %v3208_v49 = vrot.slane %v3206_v37, 4  ;;  %v3884_v37 = vld [vmem:[%s5793_s2] sm:$0xff] }
 0x22c   : > { %2861 = vrot.lane.b32.xlu1 %v2778_v45, %s4402_s7  ;;  %v3678_v45 = vsel %vm4824_vm13, %v3676_v22, %v3677_v24  ;;  %v1931_v26 = vsel %vm4560_vm10, %v1926_v46, %v1930_v48  ;;  %v2123_v60 = vsel %vm4560_vm10, %v2118_v57, %v2122_v53  ;;  %v2576_v22 = vsel %vm4824_vm13, %v4191_v8, %v2575_v63  ;;  %v2760_v46 = vld [vmem:[#allocation2 + $0x1c] sm:$0xf] }
 0x22d   : > { %v3433_v30 = vpop.permute.xlu0 %3432  ;;  %v1921_v50 = vsel %vm4560_vm10, %v1916_v18, %v1920_v11  ;;  %v3001_v11 = vshrl.u32 %v2952_v7, 16  ;;  %v2759_v18 = vld [vmem:[#allocation2 + $0x18] sm:$0xf]  ;;  %v3538_v7 = vld [vmem:[#allocation2 + $0x7c] sm:$0xf] }
 0x22e   : > { %3505 = vst.msk [vmem:[#allocation3 + $0x60] sm:$0xf] %vm3480_vm4, %v3433_v30  ;;  %v3435_v54 = vpop.permute.xlu1 %3434  ;;  %v3667_v12 = vrot.slane %v3538_v7, 5 }
 0x22f   : > { %3506 = vst.msk [vmem:[#allocation3 + $0x64] sm:$0xf] %vm3480_vm4, %v3435_v54  ;;  %3388 = vrot.lane.b32.xlu0 %v3037_v21, %s4403_s8  ;;  %v2113_v54 = vsel %vm4560_vm10, %v2108_v52, %v2112_v34  ;;  %v3003_v27 = vrot.slane %v3001_v11, 4  ;;  %v3016_v34 = vrot.slane %v3014_v16, 4  ;;  %v2775_v52 = vld [vmem:[#allocation2 + $0x78] sm:$0xf] }
 0x230   : > { %3390 = vrot.lane.b32.xlu1 %v3047_v59, %s4403_s8  ;;  %v3537_v11 = vld [vmem:[#allocation2 + $0x78] sm:$0xe] }
 0x231   : > { %v3738_v9 = vpop.permute.xlu0 %3737  ;;  %v3007_v42 = vor.u32 %v3006_v28, %v3003_v27  ;;  %v4207_v16 = vrot.slane %v3537_v11, 9 }
 0x232   : > { %3826 = vst.msk [vmem:[#allocation3 + $0x20] sm:$0xf] %vm3817_vm5, %v3738_v9  ;;  %v3740_v14 = vpop.permute.xlu1 %3739  ;;  %v2578_v9 = vrot.slane %v2447_v3, 5 }
 0x233   : > { %3827 = vst.msk [vmem:[#allocation3 + $0x24] sm:$0xf] %vm3817_vm5, %v3740_v14  ;;  %3420 = vrot.lane.b32.xlu0 %v3229_v1, %s4403_s8  ;;  %v4183_v1 = vrot.slane %v2421_v23, 9  ;;  %v3010_v14 = vshll.u32 %v2953_v55, 16  ;;  %v3008_v53 = vrot.slane %v3007_v42, 4 }
 0x234   : > { %3422 = vrot.lane.b32.xlu1 %v3239_v4, %s4403_s8  ;;  %v2579_v24 = vsel %vm4824_vm13, %v2577_v47, %v2578_v9 }
 0x235   : > { %v3770_v31 = vpop.permute.xlu0 %3769  ;;  %v2520_v10 = vsel %vm4824_vm13, %v4183_v1, %v2519_v58  ;;  %v3012_v33 = vrot.slane %v3010_v14, 5 }
 0x236   : > { %3842 = vst.msk [vmem:[#allocation3 + $0x60] sm:$0xf] %vm3817_vm5, %v3770_v31  ;;  %v3772_v38 = vpop.permute.xlu1 %3771 }
 0x237   : > { %3843 = vst.msk [vmem:[#allocation3 + $0x64] sm:$0xf] %vm3817_vm5, %v3772_v38  ;;  %3725 = vrot.lane.b32.xlu0 %v3619_v17, %s4404_s9  ;;  %v2976_v17 = vld [vmem:[#allocation2 + $0x78] sm:$0xf]  ;;  %v3017_v48 = vor.u32 %v3016_v34, %v3012_v33  ;;  %v3013_v63 = vsel %vm4560_vm10, %v3008_v53, %v3012_v33 }
 0x238   : > { %3727 = vrot.lane.b32.xlu1 %v3622_v19, %s4404_s9  ;;  %v3193_v29 = vshrl.u32 %v2976_v17, 16  ;;  %v3196_v31 = vshll.u32 %v2976_v17, 16 }
 0x239   : > { %v2305_v44 = vpop.permute.xlu0 %2304  ;;  %v3018_v57 = vrot.slane %v3017_v48, 4 }
 0x23a   : > { %2395 = vst.msk [vmem:[#allocation3 + $0x18] sm:$0xf] %vm2388_vm1, %v2305_v44  ;;  %v2307_v61 = vpop.permute.xlu1 %2306  ;;  %v4324_v51 = vld [vmem:[#allocation3 + $0x20] sm:$0xff]   ;;  %v3195_v43 = vrot.slane %v3193_v29, 4  ;;  %v3198_v44 = vrot.slane %v3196_v31, 5  ;;  %v5659_v29 = vld [vmem:[%s5792_s1] sm:$0xff]  }
 0x23b   : > { %2396 = vst.msk [vmem:[#allocation3 + $0x1c] sm:$0xf] %vm2388_vm1, %v2307_v61  ;;  %3757 = vrot.lane.b32.xlu0 %v3675_v39, %s4404_s9  ;;  %v3998_v0 = vsel %vm3981_vm6, %v4324_v51, 0  ;;  %v2954_v39 = vld [vmem:[#allocation2 + $0x20] sm:$0x1]  ;;  %v3204_v61 = vrot.slane %v3202_v36, 5  ;;  %4256 = vmatprep.mubr.msk.bf16.mxu0 %vm3981_vm6, %v5659_v29 }
 0x23c   : > { %3759 = vrot.lane.b32.xlu1 %v3678_v45, %s4404_s9  ;;  %v3020_v25 = vshll.u32 %v2954_v39, 16  ;;  %v2978_v51 = vld [vmem:[#allocation2 + $0x80] sm:$0x1]  ;;  %v3199_v56 = vor.u32 %v3198_v44, %v3195_v43 }
 0x23d   : > { %v2337_v21 = vpop.permute.xlu0 %2336  ;;  %v3209_v58 = vor.u32 %v3208_v49, %v3204_v61 }
 0x23e   : > { %2411 = vst.msk [vmem:[#allocation3 + $0x58] sm:$0xf] %vm2388_vm1, %v2337_v21  ;;  %v2339_v30 = vpop.permute.xlu1 %2338  ;;  %v4323_v59 = vld [vmem:[#allocation3 + $0x60] sm:$0xff]   ;;  %v3022_v23 = vrot.slane %v3020_v25, 5 }
 0x23f   : > { %2412 = vst.msk [vmem:[#allocation3 + $0x5c] sm:$0xf] %vm2388_vm1, %v2339_v30  ;;  %2292 = vrot.lane.b32.xlu0 %v1921_v50, %s4400_s5  ;;  %4261 = vmatprep.subr.msk.bf16.mxu0 %vm3981_vm6, %v4323_v59  ;;  %v3212_v30 = vshll.u32 %v2978_v51, 16  ;;  %v3210_v2 = vrot.slane %v3209_v58, 4 }
 0x240   : > { %2294 = vrot.lane.b32.xlu1 %v1931_v26, %s4400_s5  ;;  %4247 = vmatpush3.bf16.xpose.msra.mxu0 %v3998_v0  ;;  %v2776_v26 = vld [vmem:[#allocation2 + $0x7c] sm:$0xf]  ;;  %v3200_v0 = vrot.slane %v3199_v56, 4  ;;  %v3023_v1 = vsel %vm4560_vm10, %v3018_v57, %v3022_v23 }
 0x241   : > { %v2642_v4 = vpop.permute.xlu0 %2641  ;;  %v3214_v3 = vrot.slane %v3212_v30, 5 }
 0x242   : > { %2732 = vst.msk [vmem:[#allocation3 + $0x18] sm:$0xf] %vm2725_vm2, %v2642_v4  ;;  %v2644_v41 = vpop.permute.xlu1 %2643  ;;  %v3513_v4 = vld [vmem:[#allocation2 + $0x18] sm:$0xe] }
 0x243   : > { %2733 = vst.msk [vmem:[#allocation3 + $0x1c] sm:$0xf] %vm2725_vm2, %v2644_v41  ;;  %2324 = vrot.lane.b32.xlu0 %v2113_v54, %s4400_s5  ;;  %v3205_v41 = vsel %vm4560_vm10, %v3200_v0, %v3204_v61  ;;  %v4199_v55 = vrot.slane %v3513_v4, 9  ;;  %v3215_v47 = vsel %vm4560_vm10, %v3210_v2, %v3214_v3 }
 0x244   : > { %2326 = vrot.lane.b32.xlu1 %v2123_v60, %s4400_s5  ;;  %v3611_v60 = vrot.slane %v3514_v62, 5 }
 0x245   : > { %v2674_v13 = vpop.permute.xlu0 %2673 }
 0x246   : > { %2748 = vst.msk [vmem:[#allocation3 + $0x58] sm:$0xf] %vm2725_vm2, %v2674_v13  ;;  %v2676_v19 = vpop.permute.xlu1 %2675  ;;  %v3613_v9 = vrot.slane %v3611_v60, 4  ;;  %v3612_v14 = vsel %vm4824_vm13, %v4199_v55, %v3611_v60 }
 0x247   : > { %2749 = vst.msk [vmem:[#allocation3 + $0x5c] sm:$0xf] %vm2725_vm2, %v2676_v19  ;;  %2629 = vrot.lane.b32.xlu0 %v2520_v10, %s4401_s6  ;;  %v3614_v10 = vrot.slane %v3515_v6, 5  ;;  %v3669_v19 = vrot.slane %v3667_v12, 4 }
 0x248   : > { %2631 = vrot.lane.b32.xlu1 %v2523_v15, %s4401_s6  ;;  %v3539_v15 = vld [vmem:[#allocation2 + $0x80] sm:$0x1] }
 0x249   : > { %v2836_v32 = vpop.permute.xlu0 %2835  ;;  %v3615_v17 = vsel %vm4824_vm13, %v3613_v9, %v3614_v10  ;;  %v3670_v20 = vrot.slane %v3539_v15, 5 }
 0x24a   : > { %2926 = vst.msk [vmem:[#allocation3 + $0x18] sm:$0xf] %vm2919_vm3, %v2836_v32  ;;  %v2838_v38 = vpop.permute.xlu1 %2837 }
 0x24b   : > { %2927 = vst.msk [vmem:[#allocation3 + $0x1c] sm:$0xf] %vm2919_vm3, %v2838_v38  ;;  %2661 = vrot.lane.b32.xlu0 %v2576_v22, %s4401_s6  ;;  %v3671_v28 = vsel %vm4824_vm13, %v3669_v19, %v3670_v20  ;;  %v3885_v38 = vld [vmem:[%s5793_s2 + $0x8] sm:$0xff] }
 0x24c   : > { %2663 = vrot.lane.b32.xlu1 %v2579_v24, %s4401_s6  ;;  %v3668_v24 = vsel %vm4824_vm13, %v4207_v16, %v3667_v12  ;;  %s5748_s6 = scalar_lea.hbm %s5794_s3, %s4239_s29 }
 0x24d   : > { %v2868_v45 = vpop.permute.xlu0 %2867 }
 0x24e   : > { %2942 = vst.msk [vmem:[#allocation3 + $0x58] sm:$0xf] %vm2919_vm3, %v2868_v45  ;;  %v2870_v50 = vpop.permute.xlu1 %2869 }
 0x24f   : > { %2943 = vst.msk [vmem:[#allocation3 + $0x5c] sm:$0xf] %vm2919_vm3, %v2870_v50  ;;  %2823 = vrot.lane.b32.xlu0 %v2759_v18, %s4402_s7 }
 0x250   : > { %2825 = vrot.lane.b32.xlu1 %v2760_v46, %s4402_s7 }
 0x251   : > { %v3397_v21 = vpop.permute.xlu0 %3396 }
 0x252   : > { %3487 = vst.msk [vmem:[#allocation3 + $0x18] sm:$0xf] %vm3480_vm4, %v3397_v21  ;;  %v3399_v59 = vpop.permute.xlu1 %3398 }
 0x253   : > { %3488 = vst.msk [vmem:[#allocation3 + $0x1c] sm:$0xf] %vm3480_vm4, %v3399_v59  ;;  %2855 = vrot.lane.b32.xlu0 %v2775_v52, %s4402_s7 }
 0x254   : > { %2857 = vrot.lane.b32.xlu1 %v2776_v26, %s4402_s7  ;;  %s5750_s7 = scalar_lea.sflag [#allocation5], %s161_s25 }
 0x255   : > { %v3429_v54 = vpop.permute.xlu0 %3428 }
 0x256   : > { %3503 = vst.msk [vmem:[#allocation3 + $0x58] sm:$0xf] %vm3480_vm4, %v3429_v54  ;;  %v3431_v5 = vpop.permute.xlu1 %3430 }
 0x257   : > { %3504 = vst.msk [vmem:[#allocation3 + $0x5c] sm:$0xf] %vm3480_vm4, %v3431_v5  ;;  %3384 = vrot.lane.b32.xlu0 %v3013_v63, %s4403_s8 }
 0x258   : > { %3386 = vrot.lane.b32.xlu1 %v3023_v1, %s4403_s8 }
 0x259   : > { %v3734_v8 = vpop.permute.xlu0 %3733 }
 0x25a   : > { %3824 = vst.msk [vmem:[#allocation3 + $0x18] sm:$0xf] %vm3817_vm5, %v3734_v8  ;;  %v3736_v13 = vpop.permute.xlu1 %3735 }
 0x25b   : > { %3825 = vst.msk [vmem:[#allocation3 + $0x1c] sm:$0xf] %vm3817_vm5, %v3736_v13  ;;  %3416 = vrot.lane.b32.xlu0 %v3205_v41, %s4403_s8 }
 0x25c   : > { %3418 = vrot.lane.b32.xlu1 %v3215_v47, %s4403_s8  ;;  %s4334_s8 = scalar_lea.vmem %s5743_s28, 512 }
 0x25d   : > { %v3766_v35 = vpop.permute.xlu0 %3765  ;;  %p4335_p11 = scmp.ne.s32.totalorder %s5743_s28, %s4334_s8 }
 0x25e   : > { %3840 = vst.msk [vmem:[#allocation3 + $0x58] sm:$0xf] %vm3817_vm5, %v3766_v35  ;;  %v3768_v22 = vpop.permute.xlu1 %3767 }
 0x25f   : > { %3841 = vst.msk [vmem:[#allocation3 + $0x5c] sm:$0xf] %vm3817_vm5, %v3768_v22  ;;  %3721 = vrot.lane.b32.xlu0 %v3612_v14, %s4404_s9  ;;  %p4336_p12 = pnand %p4335_p11, %p4465_p5 }
 0x260   : > { %3723 = vrot.lane.b32.xlu1 %v3615_v17, %s4404_s9 }
 0x261   : > { %v2301_v27 = vpop.permute.xlu0 %2300  ;;  %p4337_p13 = pneg %p4336_p12 }
 0x262   : > { %2393 = vst.msk [vmem:[#allocation3 + $0x10] sm:$0xf] %vm2388_vm1, %v2301_v27  ;;  %v2303_v31 = vpop.permute.xlu1 %2302  ;;  %v4326_v32 = vld [vmem:[#allocation3 + $0x18] sm:$0xff]  }
 0x263   : > { %2394 = vst.msk [vmem:[#allocation3 + $0x14] sm:$0xf] %vm2388_vm1, %v2303_v31  ;;  %3753 = vrot.lane.b32.xlu0 %v3668_v24, %s4404_s9  ;;  %v3995_v36 = vsel %vm3981_vm6, %v4326_v32, 0 }
 0x264   : > { %3755 = vrot.lane.b32.xlu1 %v3671_v28, %s4404_s9  ;;  %s4338_s9 = sshll.u32 %s4405_s16, 4  ;;  %s4339_s9 = int_to_ptr.vmem [resolvable:$false] %s4338_s9 }
 0x265   : > { %v2333_v40 = vpop.permute.xlu0 %2332  ;;  %s4340_s10 = scalar_lea.vmem %s4339_s9, 1024  ;;  %p4341_p0 = scmp.lt.s32.totalorder %s5743_s28, %s4339_s9 }
 0x266   : > { %2409 = vst.msk [vmem:[#allocation3 + $0x50] sm:$0xf] %vm2388_vm1, %v2333_v40  ;;  %v2335_v33 = vpop.permute.xlu1 %2334  ;;  %v4325_v34 = vld [vmem:[#allocation3 + $0x58] sm:$0xff]   ;;  %p4342_p1 = scmp.lt.s32.totalorder %s4340_s10, %s4334_s8 }
 0x267   : > { %2410 = vst.msk [vmem:[#allocation3 + $0x54] sm:$0xf] %vm2388_vm1, %v2335_v33  ;;  %4262 = vmatprep.subr.msk.bf16.mxu0 %vm3981_vm6, %v4325_v34  ;;  %3888 = vperm.xlu0 %4315, %v3884_v37  }
 0x268   : > { %4249 = vmatpush3.bf16.xpose.msra.mxu0 %v3995_v36  ;;  %3893 = vperm.xlu1 %4316, %v3885_v38   ;;  %p4343_p2 = por %p4342_p1, %p4341_p0 }
 0x269   : > { %v2638_v39 = vpop.permute.xlu0 %2637 }
 0x26a   : > { %2730 = vst.msk [vmem:[#allocation3 + $0x10] sm:$0xf] %vm2725_vm2, %v2638_v39  ;;  %v2640_v18 = vpop.permute.xlu1 %2639  ;;  %p4344_p3 = pnand %p4343_p2, %p4337_p13 }
 0x26b   : > { %2731 = vst.msk [vmem:[#allocation3 + $0x14] sm:$0xf] %vm2725_vm2, %v2640_v18 }
 0x26d   : > { %v2670_v42 = vpop.permute.xlu0 %2669 }
 0x26e   : > { %2746 = vst.msk [vmem:[#allocation3 + $0x50] sm:$0xf] %vm2725_vm2, %v2670_v42  ;;  %v2672_v43 = vpop.permute.xlu1 %2671 }
 0x26f   : > { %2747 = vst.msk [vmem:[#allocation3 + $0x54] sm:$0xf] %vm2725_vm2, %v2672_v43 }
 0x271   : > { %v2832_v44 = vpop.permute.xlu0 %2831 }
 0x272   : > { %2924 = vst.msk [vmem:[#allocation3 + $0x10] sm:$0xf] %vm2919_vm3, %v2832_v44  ;;  %v2834_v45 = vpop.permute.xlu1 %2833 }
 0x273   : > { %2925 = vst.msk [vmem:[#allocation3 + $0x14] sm:$0xf] %vm2919_vm3, %v2834_v45 }
 0x275   : > { %v2864_v46 = vpop.permute.xlu0 %2863 }
 0x276   : > { %2940 = vst.msk [vmem:[#allocation3 + $0x50] sm:$0xf] %vm2919_vm3, %v2864_v46  ;;  %v2866_v48 = vpop.permute.xlu1 %2865 }
 0x277   : > { %2941 = vst.msk [vmem:[#allocation3 + $0x54] sm:$0xf] %vm2919_vm3, %v2866_v48 }
 0x279   : > { %v3393_v25 = vpop.permute.xlu0 %3392 }
 0x27a   : > { %3485 = vst.msk [vmem:[#allocation3 + $0x10] sm:$0xf] %vm3480_vm4, %v3393_v25  ;;  %v3395_v61 = vpop.permute.xlu1 %3394 }
 0x27b   : > { %3486 = vst.msk [vmem:[#allocation3 + $0x14] sm:$0xf] %vm3480_vm4, %v3395_v61 }
 0x27d   : > { %v3425_v49 = vpop.permute.xlu0 %3424 }
 0x27e   : > { %3501 = vst.msk [vmem:[#allocation3 + $0x50] sm:$0xf] %vm3480_vm4, %v3425_v49  ;;  %v3427_v50 = vpop.permute.xlu1 %3426 }
 0x27f   : > { %3502 = vst.msk [vmem:[#allocation3 + $0x54] sm:$0xf] %vm3480_vm4, %v3427_v50 }
 0x281   : > { %v3730_v51 = vpop.permute.xlu0 %3729 }
 0x282   : > { %3822 = vst.msk [vmem:[#allocation3 + $0x10] sm:$0xf] %vm3817_vm5, %v3730_v51  ;;  %v3732_v52 = vpop.permute.xlu1 %3731 }
 0x283   : > { %3823 = vst.msk [vmem:[#allocation3 + $0x14] sm:$0xf] %vm3817_vm5, %v3732_v52 }
 0x285   : > { %v3762_v53 = vpop.permute.xlu0 %3761 }
 0x286   : > { %3838 = vst.msk [vmem:[#allocation3 + $0x50] sm:$0xf] %vm3817_vm5, %v3762_v53  ;;  %v3764_v56 = vpop.permute.xlu1 %3763 }
 0x287   : > { %3839 = vst.msk [vmem:[#allocation3 + $0x54] sm:$0xf] %vm3817_vm5, %v3764_v56 }
 0x289   : > { %v2297_v21 = vpop.permute.xlu0 %2296 }
 0x28a   : > { %2391 = vst.msk [vmem:[#allocation3 + $0x8] sm:$0xf] %vm2388_vm1, %v2297_v21  ;;  %v2299_v26 = vpop.permute.xlu1 %2298  ;;  %v4328_v57 = vld [vmem:[#allocation3 + $0x10] sm:$0xff]  }
 0x28b   : > { %2392 = vst.msk [vmem:[#allocation3 + $0xc] sm:$0xf] %vm2388_vm1, %v2299_v26  ;;  %v3992_v59 = vsel %vm3981_vm6, %v4328_v57, 0 }
 0x28d   : > { %v2329_v23 = vpop.permute.xlu0 %2328 }
 0x28e   : > { %2407 = vst.msk [vmem:[#allocation3 + $0x48] sm:$0xf] %vm2388_vm1, %v2329_v23  ;;  %v2331_v58 = vpop.permute.xlu1 %2330  ;;  %v4327_v30 = vld [vmem:[#allocation3 + $0x50] sm:$0xff]  }
 0x28f   : > { %2408 = vst.msk [vmem:[#allocation3 + $0x4c] sm:$0xf] %vm2388_vm1, %v2331_v58  ;;  %4263 = vmatprep.subr.msk.bf16.mxu0 %vm3981_vm6, %v4327_v30 }
 0x290   : > { %4251 = vmatpush3.bf16.xpose.msra.mxu0 %v3992_v59 }
 0x291   : > { %v2634_v62 = vpop.permute.xlu0 %2633 }
 0x292   : > { %2728 = vst.msk [vmem:[#allocation3 + $0x8] sm:$0xf] %vm2725_vm2, %v2634_v62  ;;  %v2636_v63 = vpop.permute.xlu1 %2635 }
 0x293   : > { %2729 = vst.msk [vmem:[#allocation3 + $0xc] sm:$0xf] %vm2725_vm2, %v2636_v63 }
 0x295   : > { %v2666_v0 = vpop.permute.xlu0 %2665 }
 0x296   : > { %2744 = vst.msk [vmem:[#allocation3 + $0x48] sm:$0xf] %vm2725_vm2, %v2666_v0  ;;  %v2668_v54 = vpop.permute.xlu1 %2667 }
 0x297   : > { %2745 = vst.msk [vmem:[#allocation3 + $0x4c] sm:$0xf] %vm2725_vm2, %v2668_v54 }
 0x299   : > { %v2828_v1 = vpop.permute.xlu0 %2827 }
 0x29a   : > { %2922 = vst.msk [vmem:[#allocation3 + $0x8] sm:$0xf] %vm2919_vm3, %v2828_v1  ;;  %v2830_v2 = vpop.permute.xlu1 %2829 }
 0x29b   : > { %2923 = vst.msk [vmem:[#allocation3 + $0xc] sm:$0xf] %vm2919_vm3, %v2830_v2 }
 0x29d   : > { %v2860_v3 = vpop.permute.xlu0 %2859 }
 0x29e   : > { %2938 = vst.msk [vmem:[#allocation3 + $0x48] sm:$0xf] %vm2919_vm3, %v2860_v3  ;;  %v2862_v4 = vpop.permute.xlu1 %2861 }
 0x29f   : > { %2939 = vst.msk [vmem:[#allocation3 + $0x4c] sm:$0xf] %vm2919_vm3, %v2862_v4 }
 0x2a1   : > { %v3389_v60 = vpop.permute.xlu0 %3388 }
 0x2a2   : > { %3483 = vst.msk [vmem:[#allocation3 + $0x8] sm:$0xf] %vm3480_vm4, %v3389_v60  ;;  %v3391_v5 = vpop.permute.xlu1 %3390 }
 0x2a3   : > { %3484 = vst.msk [vmem:[#allocation3 + $0xc] sm:$0xf] %vm3480_vm4, %v3391_v5 }
 0x2a5   : > { %v3421_v6 = vpop.permute.xlu0 %3420 }
 0x2a6   : > { %3499 = vst.msk [vmem:[#allocation3 + $0x48] sm:$0xf] %vm3480_vm4, %v3421_v6  ;;  %v3423_v7 = vpop.permute.xlu1 %3422 }
 0x2a7   : > { %3500 = vst.msk [vmem:[#allocation3 + $0x4c] sm:$0xf] %vm3480_vm4, %v3423_v7 }
 0x2a9   : > { %v3726_v41 = vpop.permute.xlu0 %3725 }
 0x2aa   : > { %3820 = vst.msk [vmem:[#allocation3 + $0x8] sm:$0xf] %vm3817_vm5, %v3726_v41  ;;  %v3728_v55 = vpop.permute.xlu1 %3727 }
 0x2ab   : > { %3821 = vst.msk [vmem:[#allocation3 + $0xc] sm:$0xf] %vm3817_vm5, %v3728_v55 }
 0x2ad   : > { %v3758_v8 = vpop.permute.xlu0 %3757 }
 0x2ae   : > { %3836 = vst.msk [vmem:[#allocation3 + $0x48] sm:$0xf] %vm3817_vm5, %v3758_v8  ;;  %v3760_v47 = vpop.permute.xlu1 %3759 }
 0x2af   : > { %3837 = vst.msk [vmem:[#allocation3 + $0x4c] sm:$0xf] %vm3817_vm5, %v3760_v47 }
 0x2b1   : > { %v2293_v9 = vpop.permute.xlu0 %2292 }
 0x2b2   : > { %2389 = vst.msk [vmem:[#allocation3] sm:$0xf] %vm2388_vm1, %v2293_v9  ;;  %v2295_v10 = vpop.permute.xlu1 %2294  ;;  %v4330_v11 = vld [vmem:[#allocation3 + $0x8] sm:$0xff]  }
 0x2b3   : > { %2390 = vst.msk [vmem:[#allocation3 + $0x4] sm:$0xf] %vm2388_vm1, %v2295_v10  ;;  %v3989_v14 = vsel %vm3981_vm6, %v4330_v11, 0 }
 0x2b5   : > { %v2325_v12 = vpop.permute.xlu0 %2324 }
 0x2b6   : > { %2405 = vst.msk [vmem:[#allocation3 + $0x40] sm:$0xf] %vm2388_vm1, %v2325_v12  ;;  %v2327_v13 = vpop.permute.xlu1 %2326  ;;  %v4329_v15 = vld [vmem:[#allocation3 + $0x48] sm:$0xff]  }
 0x2b7   : > { %2406 = vst.msk [vmem:[#allocation3 + $0x44] sm:$0xf] %vm2388_vm1, %v2327_v13  ;;  %4264 = vmatprep.subr.msk.bf16.mxu0 %vm3981_vm6, %v4329_v15 }
 0x2b8   : > { %4253 = vmatpush3.bf16.xpose.msra.mxu0 %v3989_v14 }
 0x2b9   : > { %v2630_v16 = vpop.permute.xlu0 %2629 }
 0x2ba   : > { %2726 = vst.msk [vmem:[#allocation3] sm:$0xf] %vm2725_vm2, %v2630_v16  ;;  %v2632_v35 = vpop.permute.xlu1 %2631 }
 0x2bb   : > { %2727 = vst.msk [vmem:[#allocation3 + $0x4] sm:$0xf] %vm2725_vm2, %v2632_v35 }
 0x2bd   : > { %v2662_v17 = vpop.permute.xlu0 %2661 }
 0x2be   : > { %2742 = vst.msk [vmem:[#allocation3 + $0x40] sm:$0xf] %vm2725_vm2, %v2662_v17  ;;  %v2664_v19 = vpop.permute.xlu1 %2663 }
 0x2bf   : > { %2743 = vst.msk [vmem:[#allocation3 + $0x44] sm:$0xf] %vm2725_vm2, %v2664_v19 }
 0x2c1   : > { %v2824_v20 = vpop.permute.xlu0 %2823 }
 0x2c2   : > { %2920 = vst.msk [vmem:[#allocation3] sm:$0xf] %vm2919_vm3, %v2824_v20  ;;  %v2826_v22 = vpop.permute.xlu1 %2825 }
 0x2c3   : > { %2921 = vst.msk [vmem:[#allocation3 + $0x4] sm:$0xf] %vm2919_vm3, %v2826_v22 }
 0x2c5   : > { %v2856_v24 = vpop.permute.xlu0 %2855 }
 0x2c6   : > { %2936 = vst.msk [vmem:[#allocation3 + $0x40] sm:$0xf] %vm2919_vm3, %v2856_v24  ;;  %v2858_v27 = vpop.permute.xlu1 %2857 }
 0x2c7   : > { %2937 = vst.msk [vmem:[#allocation3 + $0x44] sm:$0xf] %vm2919_vm3, %v2858_v27 }
 0x2c9   : > { %v3385_v28 = vpop.permute.xlu0 %3384 }
 0x2ca   : > { %3481 = vst.msk [vmem:[#allocation3] sm:$0xf] %vm3480_vm4, %v3385_v28  ;;  %v3387_v31 = vpop.permute.xlu1 %3386 }
 0x2cb   : > { %3482 = vst.msk [vmem:[#allocation3 + $0x4] sm:$0xf] %vm3480_vm4, %v3387_v31 }
 0x2cd   : > { %v3417_v32 = vpop.permute.xlu0 %3416 }
 0x2ce   : > { %3497 = vst.msk [vmem:[#allocation3 + $0x40] sm:$0xf] %vm3480_vm4, %v3417_v32  ;;  %v3419_v40 = vpop.permute.xlu1 %3418 }
 0x2cf   : > { %3498 = vst.msk [vmem:[#allocation3 + $0x44] sm:$0xf] %vm3480_vm4, %v3419_v40 }
 0x2d1   : > { %v3722_v33 = vpop.permute.xlu0 %3721 }
 0x2d2   : > { %3818 = vst.msk [vmem:[#allocation3] sm:$0xf] %vm3817_vm5, %v3722_v33  ;;  %v3724_v34 = vpop.permute.xlu1 %3723 }
 0x2d3   : > { %3819 = vst.msk [vmem:[#allocation3 + $0x4] sm:$0xf] %vm3817_vm5, %v3724_v34 }
 0x2d5   : > { %v3754_v36 = vpop.permute.xlu0 %3753 }
 0x2d6   : > { %3834 = vst.msk [vmem:[#allocation3 + $0x40] sm:$0xf] %vm3817_vm5, %v3754_v36  ;;  %v3756_v37 = vpop.permute.xlu1 %3755 }
 0x2d7   : > { %3835 = vst.msk [vmem:[#allocation3 + $0x44] sm:$0xf] %vm3817_vm5, %v3756_v37 }
 0x2da   : > { %v4332_v38 = vld [vmem:[#allocation3] sm:$0xff]  }
 0x2db   : > { %v3986_v18 = vsel %vm3981_vm6, %v4332_v38, 0 }
 0x2de   : > { %v4331_v39 = vld [vmem:[#allocation3 + $0x40] sm:$0xff]  }
 0x2df   : > { %4265 = vmatprep.subr.msk.bf16.mxu0 %vm3981_vm6, %v4331_v39 }
 0x2e0   : > { %4255 = vmatpush3.bf16.xpose.msra.mxu0 %v3986_v18 }
 0x2e2   : > { %v3889_v42 = vpop.permute.xlu0 %3888 }
 0x2e3   : > { %v3894_v46 = vpop.permute.xlu1 %3893 }
 0x2e7   : > { %4257 = vmatmul.mubr.msk.bf16.vlgmr.msra.gmra.mxu0 %vm3981_vm6, %v5659_v29 }
 0x3a7   : > { %v4067_v43 = vpop.f32.mrf.mxu0 }
 0x3a8   : > { %v4068_v44 = vadd.f32 %v4067_v43, %v3889_v42 }
 0x3a9   : > { %v4069_v45 = vpop.f32.mrf.mxu0 }
 0x3aa   : > { %v4076_v48 = vmax.f32 %v4068_v44, 0.0  ;;  %v4070_v25 = vadd.f32 %v4069_v45, %v3889_v42 }
 0x3ab   : > { %v4071_v61 = vpop.f32.mrf.mxu0 }
 0x3ac   : > { %4080 = vst [vmem:[%s163_s27] sm:$0xff] %v4076_v48  ;;  %v4077_v49 = vmax.f32 %v4070_v25, 0.0  ;;  %v4072_v50 = vadd.f32 %v4071_v61, %v3894_v46 }
 0x3ad   : > { %v4073_v51 = vpop.f32.mrf.mxu0 }
 0x3ae   : > { %4081 = vst [vmem:[%s163_s27 + $0x8] sm:$0xff] %v4077_v49  ;;  %v4078_v29 = vmax.f32 %v4072_v50, 0.0  ;;  %v4074_v52 = vadd.f32 %v4073_v51, %v3894_v46 }
 0x3b0   : > { %4082 = vst [vmem:[%s163_s27 + $0x10] sm:$0xff] %v4078_v29  ;;  %v4079_v53 = vmax.f32 %v4074_v52, 0.0 }
 0x3b2   : > { %4083 = vst [vmem:[%s163_s27 + $0x18] sm:$0xff] %v4079_v53 }
 0x3b3   : > { %4347 = shalt.err (!%p4344_p3)
}
 0x3b4   : > { %s4348_s11 = scalar_lea.hbm %s5748_s6, 512  ;;  %s4352_s20 = scalar_lea.hbm %s5794_s3, 1024 }
 0x3b5   : > { %p4349_p4 = scmp.ne.s32.totalorder %s5748_s6, %s4348_s11  ;;  %p4353_p9 = scmp.lt.s32.totalorder %s5748_s6, %s5794_s3 }
 0x3b6   : > { %p4354_p10 = scmp.lt.s32.totalorder %s4352_s20, %s4348_s11 }
 0x3b7   : > { %p4350_p7 = pnand %p4349_p4, %p4465_p5 }
 0x3b8   : > { %p4355_p11 = por %p4354_p10, %p4353_p9 }
 0x3b9   : > { %p4351_p8 = pneg %p4350_p7 }
 0x3bb   : > { %p4356_p12 = pnand %p4355_p11, %p4351_p8 }
 0x3bd   : > { %4359 = shalt.err (!%p4356_p12)
}
 0x3be   : > { %s4406_s26 = smov 256  }
 0x3bf   : > { %4266 = dma.vmem_to_hbm [thread:$0]  (%p4465_p5), %s5743_s28, 512, %s5748_s6, %s5750_s7, %s4406_s26, %s4406_s26, %s4398_s30  }
 0x3c0 PF: > { %p4272_p13 = scmp.ge.s32.totalorder %s4394_s15, 2  ;;  %s4113_s27 = sand.u32 1, %s4382_s12  }
 0x3c1   : > { %s4114_s29 = scalar_lea.sflag [#allocation5], %s4113_s27 }
 0x3c2   : > { %p4269_p0 = pnand %p4272_p13, %p4469_p6 }
 0x3c4   : > { %p4270_p1 = pneg %p4269_p0 }
 0x3c6   : > { %4377 = dma.done.wait (%p4270_p1), %s4114_s29, 512  }
 0x3c7   : > { %4379 = vsyncadd (%p4270_p1), %s4114_s29, 4294966784  ;;  %p13_p2 = scmp.ge.s32.totalorder %s4452_s18, 4   ;;  %s5807_s12 = smov %s4386_s13 }
 0x3c8   : > { %s5808_s13 = smov %s4390_s14  ;;  %s5809_s14 = smov %s4463_s21 }
 0x3c9   : > { %s5810_s15 = smov %s4452_s18  ;;  %15 = sbr.rel (!%p13_p2) target bundleno = 3 (0x3), region = 69 }
 0x3ce   :  { %4119 = vsyncpa [#allocation5], 1 }
 0x3cf   :  { %4121 = vsyncpa [#allocation5 + $0x1], 1 }

</bundles_post_ra>
